<compile_context>
chip_gen: v7x
topology: tpu7x:2x2x1
jax: 0.10.0
libtpu: 0.0.40
codegen_flags: <defaults>
</compile_context>

<pallas_src>
import functools

import jax
import jax.numpy as jnp
from jax import lax
from jax.experimental import pallas as pl
from jax.experimental.pallas import tpu as pltpu

_EPS = 1e-5                      # PyTorch BatchNorm default eps
_VMEM_LIMIT = 32 * 1024 * 1024   # safe scoped-VMEM budget on v5e/v6e/v7x


def _act(y, kind):
    if kind == "relu":
        return jnp.maximum(y, 0.0)
    if kind == "leaky":          # nn.LeakyReLU default negative_slope = 0.01
        return jnp.where(y >= 0.0, y, 0.01 * y)
    return y


def bn_fold(bnp):
    """Eval-mode BatchNorm -> per-channel (scale, shift)."""
    g, b, m, v = bnp
    s = g / jnp.sqrt(v + _EPS)
    return s, b - m * s


# --------------------------- Pallas kernels ---------------------------------

def _conv3x3_fused_kernel(*refs, H, W, C, slab, act1, chain):
    """3x3 'SAME' conv (C -> 128) + bias + act1, optionally chained with a
    1x1 matmul + bias + leaky + per-channel affine + relu (SCSS_Conv k=1).

    The 1-pixel halo is built in a zero-bordered f32 VMEM scratch (no HBM pad,
    no HBM im2col); the conv is 9 accumulated MXU dots per row slab.  Only the
    final bf16 map is written back to HBM.
    """
    if chain:
        x_ref, w1_ref, vec_ref, w2_ref, o_ref, pad_ref = refs
    else:
        x_ref, w1_ref, vec_ref, o_ref, pad_ref = refs

    # In-kernel zero padding: border re-zeroed every step (megacore-safe),
    # interior overwritten from the current batch element.
    zrow = jnp.zeros((1, W + 2, C), jnp.float32)
    zcol = jnp.zeros((H + 2, 1, C), jnp.float32)
    pad_ref[0:1, :, :] = zrow
    pad_ref[H + 1:H + 2, :, :] = zrow
    pad_ref[:, 0:1, :] = zcol
    pad_ref[:, W + 1:W + 2, :] = zcol
    pad_ref[1:H + 1, 1:W + 1, :] = x_ref[0].astype(jnp.float32)

    b1 = vec_ref[0:1, :]
    for r0 in range(0, H, slab):              # row-slab loop bounds live temps
        rows = min(slab, H - r0)
        acc = jnp.zeros((rows * W, 128), jnp.float32)
        for kw in range(3):                   # 3 sublane-shifted slices / slab
            # (rows+2, W, C) window, collapsed to 2D (W mult-of-8 is fast path)
            col = pad_ref[r0:r0 + rows + 2, kw:kw + W, :].reshape(
                (rows + 2) * W, C)
            for kh in range(3):               # row shift = flat shift by kh*W
                patch = col[kh * W: kh * W + rows * W]
                acc = acc + jnp.dot(patch.astype(jnp.bfloat16),
                                    w1_ref[kh * 3 + kw],
                                    preferred_element_type=jnp.float32)
        y = _act(acc + b1, act1)
        if chain:                             # SCSS_Conv(k=1), fused epilogue
            y = jnp.dot(y.astype(w2_ref.dtype), w2_ref[...],
                        preferred_element_type=jnp.float32) + vec_ref[1:2, :]
            y = _act(y, "leaky")
            y = _act(y * vec_ref[2:3, :] + vec_ref[3:4, :], "relu")
        o_ref[0, r0 * W:(r0 + rows) * W, :] = y.astype(o_ref.dtype)


def conv3x3_fused(x, w1, vec, w2=None, act1="relu", out_dtype=jnp.bfloat16):
    """x:(B,H,W,C) -> (B,H*W,128). w1:(9,C,128) bf16, vec:(8,128) f32 packed."""
    B, H, W, C = x.shape
    chain = w2 is not None
    slab = max(1, 256 // max(W, 1))           # ~256 output rows per MXU dot

    in_specs = [
        pl.BlockSpec((1, H, W, C), lambda b: (b, 0, 0, 0)),
        pl.BlockSpec((9, C, 128), lambda b: (0, 0, 0)),   # resident weights
        pl.BlockSpec((8, 128), lambda b: (0, 0)),         # packed epilogue vecs
    ]
    args = [x, w1, vec]
    if chain:
        in_specs.append(pl.BlockSpec((128, 128), lambda b: (0, 0)))
        args.append(w2)

    return pl.pallas_call(
        functools.partial(_conv3x3_fused_kernel, H=H, W=W, C=C,
                          slab=slab, act1=act1, chain=chain),
        grid=(B,),
        in_specs=in_specs,
        out_specs=pl.BlockSpec((1, H * W, 128), lambda b: (b, 0, 0)),
        out_shape=jax.ShapeDtypeStruct((B, H * W, 128), out_dtype),
        scratch_shapes=[pltpu.VMEM((H + 2, W + 2, C), jnp.float32)],
        compiler_params=pltpu.CompilerParams(
            dimension_semantics=("parallel",),
            vmem_limit_bytes=_VMEM_LIMIT),
    )(*args)


def _dw_gap_heads_kernel(x_ref, dwv_ref, fcw_ref, fcb_ref, clsw_ref, clsb_ref,
                         feat_ref, pre_ref, pad_ref, *, H, W, C, slab):
    """relu(depthwise3x3(x)+b) -> GAP -> Linear(128,E) -> Linear(E,NC).

    The (H,W,128) map never leaves VMEM; only (B,E) and (B,NC) hit HBM.
    Accumulation is per row slab with the 9 taps innermost (acc in vregs).
    """
    zrow = jnp.zeros((1, W + 2, C), jnp.float32)
    zcol = jnp.zeros((H + 2, 1, C), jnp.float32)
    pad_ref[0:1, :, :] = zrow
    pad_ref[H + 1:H + 2, :, :] = zrow
    pad_ref[:, 0:1, :] = zcol
    pad_ref[:, W + 1:W + 2, :] = zcol
    pad_ref[1:H + 1, 1:W + 1, :] = x_ref[0].astype(jnp.float32)

    bias = dwv_ref[9:10, :]
    pooled = jnp.zeros((1, C), jnp.float32)
    for r0 in range(0, H, slab):
        rows = min(slab, H - r0)
        acc = jnp.zeros((rows * W, C), jnp.float32)
        for kw in range(3):
            col = pad_ref[r0:r0 + rows + 2, kw:kw + W, :].reshape(
                (rows + 2) * W, C)
            for kh in range(3):
                acc = acc + col[kh * W: kh * W + rows * W] * \
                    dwv_ref[kh * 3 + kw: kh * 3 + kw + 1, :]
        y = jnp.maximum(acc + bias, 0.0)
        pooled = pooled + jnp.sum(y, axis=0, keepdims=True)
    pooled = pooled * (1.0 / (H * W))                        # (1, C)

    feat = jnp.dot(pooled, fcw_ref[...],
                   preferred_element_type=jnp.float32) + fcb_ref[...]
    feat_ref[0] = feat
    pre_ref[0] = jnp.dot(feat, clsw_ref[...],
                         preferred_element_type=jnp.float32) + clsb_ref[...]


def dw_gap_heads(x, dwv, fc_w, fc_b, cls_w, cls_b):
    """x:(B,H,W,128) -> (pre:(B,NC), feat:(B,E))."""
    B, H, W, C = x.shape
    E = fc_w.shape[1]
    NC = cls_w.shape[1]
    slab = max(1, 128 // max(W, 1))
    feat, pre = pl.pallas_call(
        functools.partial(_dw_gap_heads_kernel, H=H, W=W, C=C, slab=slab),
        grid=(B,),
        in_specs=[
            pl.BlockSpec((1, H, W, C), lambda b: (b, 0, 0, 0)),
            pl.BlockSpec((16, C), lambda b: (0, 0)),   # dw taps (9) + bias packed
            pl.BlockSpec((C, E), lambda b: (0, 0)),
            pl.BlockSpec((1, E), lambda b: (0, 0)),
            pl.BlockSpec((E, NC), lambda b: (0, 0)),
            pl.BlockSpec((1, NC), lambda b: (0, 0)),
        ],
        out_specs=(
            pl.BlockSpec((1, 1, E), lambda b: (b, 0, 0)),
            pl.BlockSpec((1, 1, NC), lambda b: (b, 0, 0)),
        ),
        out_shape=(
            jax.ShapeDtypeStruct((B, 1, E), jnp.float32),
            jax.ShapeDtypeStruct((B, 1, NC), jnp.float32),
        ),
        scratch_shapes=[pltpu.VMEM((H + 2, W + 2, C), jnp.float32)],
        compiler_params=pltpu.CompilerParams(
            dimension_semantics=("parallel",),
            vmem_limit_bytes=_VMEM_LIMIT),
    )(x, dwv, fc_w, fc_b.reshape(1, E), cls_w, cls_b.reshape(1, NC))
    return pre.reshape(B, NC), feat.reshape(B, E)


# --------------------------- parameters -------------------------------------

def init_params(key, in_ch=8, embed_dim=32, num_class=7):
    keys = iter(jax.random.split(key, 64))

    def w(shape, fan_in):
        return jax.random.normal(next(keys), shape, jnp.float32) / (fan_in ** 0.5)

    def b(shape):
        return 0.01 * jax.random.normal(next(keys), shape, jnp.float32)

    def bn(c):
        g = 1.0 + 0.1 * jax.random.normal(next(keys), (c,), jnp.float32)
        be = 0.1 * jax.random.normal(next(keys), (c,), jnp.float32)
        m = 0.1 * jax.random.normal(next(keys), (c,), jnp.float32)
        v = 0.5 + 0.5 * jax.random.uniform(next(keys), (c,), jnp.float32)
        return (g, be, m, v)

    p = {}
    # SSMF
    p["ssmf_b1_w"] = w((in_ch, 3), in_ch);            p["ssmf_b1_b"] = b((3,))
    p["ssmf_b2_w"] = w((3, 3, in_ch, 64), 9 * in_ch); p["ssmf_b2_b"] = b((64,))
    p["ssmf_after_w"] = w((3 + 64, 128), 3 + 64);     p["ssmf_after_b"] = b((128,))
    p["ssmf_bn"] = bn(128)
    # Extractor.sematic_encoder
    p["scss1_bn"] = bn(128)
    p["scss1_point_w"] = w((128, 128), 128)                       # no bias
    p["scss1_depth_w"] = w((128,), 1);  p["scss1_depth_b"] = b((128,))
    p["se_conv_w"] = w((3, 3, 128, 128), 9 * 128); p["se_conv_b"] = b((128,))
    p["scss3_bn"] = bn(128)
    p["scss3_point_w"] = w((128, 128), 128)                       # no bias
    p["scss3_depth_w"] = w((3, 3, 128), 9); p["scss3_depth_b"] = b((128,))
    # afterlayer1 + classifier
    p["al1_bn2d"] = bn(128)
    p["al1_bn1d"] = bn(128)
    p["al1_fc_w"] = w((128, embed_dim), 128); p["al1_fc_b"] = b((embed_dim,))
    p["cls_w"] = w((embed_dim, num_class), embed_dim); p["cls_b"] = b((num_class,))
    return p


def prepare_params(p, in_ch):
    """One-time algebraic folding of BN / linear layers into kernel weights."""
    fp = {}

    # SSMF: branch1(1x1) + branch2(3x3) + concat + 1x1 + BN -> single 3x3 conv
    wa = p["ssmf_after_w"]                            # (67, 128)
    wa1, wa2 = wa[:3], wa[3:]
    w_eff = jnp.einsum("hwim,mo->hwio", p["ssmf_b2_w"], wa2)       # (3,3,Cin,128)
    w_eff = w_eff.at[1, 1].add(p["ssmf_b1_w"] @ wa1)               # 1x1 -> center
    b_eff = p["ssmf_b2_b"] @ wa2 + p["ssmf_b1_b"] @ wa1 + p["ssmf_after_b"]
    s, sh = bn_fold(p["ssmf_bn"])
    fp["ssmf_w"] = (w_eff * s).reshape(9, in_ch, 128).astype(jnp.bfloat16)
    b1 = b_eff * s + sh

    # SCSS_Conv(k=1): BN -> 1x1 (no bias); depthwise 1x1 affine in epilogue
    s, sh = bn_fold(p["scss1_bn"])
    fp["scss1_w"] = (p["scss1_point_w"] * s[:, None]).astype(jnp.bfloat16)
    b2 = sh @ p["scss1_point_w"]
    vec1 = jnp.zeros((8, 128), jnp.float32)
    vec1 = vec1.at[0].set(b1).at[1].set(b2)
    vec1 = vec1.at[2].set(p["scss1_depth_w"]).at[3].set(p["scss1_depth_b"])
    fp["vec1"] = vec1

    # Conv2d(3x3) + SCSS3.BN + SCSS3.pointwise folded -> one 3x3 conv (leaky)
    s, sh = bn_fold(p["scss3_bn"])
    w_se = jnp.einsum("hwim,m,mo->hwio", p["se_conv_w"], s, p["scss3_point_w"])
    fp["se_w"] = w_se.reshape(9, 128, 128).astype(jnp.bfloat16)
    vec2 = jnp.zeros((8, 128), jnp.float32)
    fp["vec2"] = vec2.at[0].set((p["se_conv_b"] * s + sh) @ p["scss3_point_w"])

    # SCSS3 depthwise 3x3 taps + bias packed into one (16,128) f32 operand
    dwv = jnp.zeros((16, 128), jnp.float32)
    dwv = dwv.at[:9].set(p["scss3_depth_w"].reshape(9, 128))
    fp["dwv"] = dwv.at[9].set(p["scss3_depth_b"])

    # afterlayer1 BN2d/BN1d (commute with GAP) folded into the FC; classifier
    s2, sh2 = bn_fold(p["al1_bn2d"])
    s1, sh1 = bn_fold(p["al1_bn1d"])
    S, SH = s2 * s1, sh2 * s1 + sh1
    fp["fc_w"] = p["al1_fc_w"] * S[:, None]
    fp["fc_b"] = SH @ p["al1_fc_w"] + p["al1_fc_b"]
    fp["cls_w"] = p["cls_w"]
    fp["cls_b"] = p["cls_b"]
    return fp


# --------------------------- forward (Pallas) --------------------------------

def cdfenet_forward(fp, x_nchw):
    """CDFENet mode='test' forward -> (pre_class, feat_class)."""
    x = jnp.transpose(x_nchw, (0, 2, 3, 1)).astype(jnp.bfloat16)   # NCHW -> NHWC
    B, H, W, _ = x.shape

    # SSMF (folded 3x3 conv, ReLU) + chained SCSS1 (1x1, leaky, affine, relu)
    h = conv3x3_fused(x, fp["ssmf_w"], fp["vec1"], w2=fp["scss1_w"], act1="relu")

    # Conv2d(3x3) + SCSS3.BN + SCSS3.pointwise folded -> leaky
    h = conv3x3_fused(h.reshape(B, H, W, 128), fp["se_w"], fp["vec2"],
                      act1="leaky")

    # SCSS3 depthwise 3x3 -> relu -> GAP -> afterlayer1 Linear -> classifier
    # (trailing nn.ReLU in the Sequential is a no-op after the in-kernel relu)
    pre_class, feat_class = dw_gap_heads(h.reshape(B, H, W, 128), fp["dwv"],
                                         fp["fc_w"], fp["fc_b"],
                                         fp["cls_w"], fp["cls_b"])
    return pre_class, feat_class


# --------------------------- pure-JAX reference ------------------------------

def ref_forward(p, x_nchw):
    x = jnp.transpose(x_nchw, (0, 2, 3, 1)).astype(jnp.float32)
    Cin = x.shape[-1]
    conv = lambda x, w, b, pad: lax.conv_general_dilated(
        x, w, (1, 1), pad, dimension_numbers=("NHWC", "HWIO", "NHWC")) + b
    dwconv = lambda x, w, b, pad: lax.conv_general_dilated(
        x, w, (1, 1), pad, dimension_numbers=("NHWC", "HWIO", "NHWC"),
        feature_group_count=x.shape[-1]) + b

    def bn(x, bnp):
        s, sh = bn_fold(bnp)
        return x * s + sh

    relu = lambda y: jnp.maximum(y, 0.0)
    leaky = lambda y: jnp.where(y >= 0.0, y, 0.01 * y)

    f1 = conv(x, p["ssmf_b1_w"].reshape(1, 1, Cin, 3), p["ssmf_b1_b"], "VALID")
    f2 = conv(x, p["ssmf_b2_w"], p["ssmf_b2_b"], "SAME")
    feat = jnp.concatenate([f1, f2], axis=-1)
    h = relu(bn(conv(feat, p["ssmf_after_w"].reshape(1, 1, 3 + 64, 128),
                     p["ssmf_after_b"], "VALID"), p["ssmf_bn"]))
    h = leaky(conv(bn(h, p["scss1_bn"]),
                   p["scss1_point_w"].reshape(1, 1, 128, 128), 0.0, "VALID"))
    h = relu(h * p["scss1_depth_w"] + p["scss1_depth_b"])
    h = conv(h, p["se_conv_w"], p["se_conv_b"], "SAME")
    h = leaky(conv(bn(h, p["scss3_bn"]),
                   p["scss3_point_w"].reshape(1, 1, 128, 128), 0.0, "VALID"))
    h = relu(dwconv(h, p["scss3_depth_w"].reshape(3, 3, 1, 128),
                    p["scss3_depth_b"], "SAME"))
    h = relu(h)
    pooled = jnp.mean(bn(h, p["al1_bn2d"]), axis=(1, 2))
    pooled = bn(pooled, p["al1_bn1d"])
    feat_class = pooled @ p["al1_fc_w"] + p["al1_fc_b"]
    pre_class = feat_class @ p["cls_w"] + p["cls_b"]
    return pre_class, feat_class


# --------------------------- main --------------------------------------------

if __name__ == "__main__":
    B, IN_CH, H, W = 2, 8, 16, 16      # small stand-in (PyTorch default Cin=102)
    EMBED, NCLS = 32, 7

    key = jax.random.PRNGKey(0)
    kp, kx = jax.random.split(key)
    params = init_params(kp, in_ch=IN_CH, embed_dim=EMBED, num_class=NCLS)
    x = jax.random.normal(kx, (B, IN_CH, H, W), jnp.float32)   # NCHW as PyTorch

    fused = prepare_params(params, IN_CH)      # one-time BN/linear folding
    fwd = jax.jit(cdfenet_forward)

    pre_class, feat_class = jax.block_until_ready(fwd(fused, x))
    pre_ref, feat_ref = jax.block_until_ready(ref_forward(params, x))

    assert pre_class.shape == (B, NCLS) and feat_class.shape == (B, EMBED)
    # bf16 activations/weights with f32 accumulation -> allow mixed-precision drift
    err_pre = float(jnp.max(jnp.abs(pre_class - pre_ref)))
    err_feat = float(jnp.max(jnp.abs(feat_class - feat_ref)))
    assert err_pre < 8e-2 and err_feat < 8e-2, (err_pre, err_feat)

    print("KERNEL_OK")
</pallas_src>

<mosaic_0001>
module attributes {stable_mosaic.version = 11 : i64} {
  func.func @_conv3x3_fused_kernel(%arg0: i32, %arg1: memref<1x16x16x8xbf16, #tpu.memory_space<vmem>>, %arg2: memref<9x8x128xbf16, #tpu.memory_space<vmem>>, %arg3: memref<8x128xf32, #tpu.memory_space<vmem>>, %arg4: memref<128x128xbf16, #tpu.memory_space<vmem>>, %arg5: memref<1x256x128xbf16, #tpu.memory_space<vmem>>, %arg6: memref<18x18x8xf32, #tpu.memory_space<vmem>>) attributes {dimension_semantics = [#tpu.dimension_semantics<parallel>], iteration_bounds = array<i64: 2>, scalar_prefetch = 0 : i64, scratch_operands = 1 : i64, tpu.core_type = #tpu.core_type<tc>, window_params = [{transform_indices = @transform_0, window_bounds = array<i64: 1, 16, 16, 8>}, {pipeline_mode = #tpu.pipeline_mode<synchronous>, transform_indices = @transform_1, window_bounds = array<i64: 9, 8, 128>}, {pipeline_mode = #tpu.pipeline_mode<synchronous>, transform_indices = @transform_2, window_bounds = array<i64: 8, 128>}, {pipeline_mode = #tpu.pipeline_mode<synchronous>, transform_indices = @transform_3, window_bounds = array<i64: 128, 128>}, {transform_indices = @transform_4, window_bounds = array<i64: 1, 256, 128>}]} {
    %cst = arith.constant 0.000000e+00 : f32
    %0 = vector.broadcast %cst : f32 to vector<1x18x8xf32>
    %cst_0 = arith.constant 0.000000e+00 : f32
    %1 = vector.broadcast %cst_0 : f32 to vector<18x1x8xf32>
    %c0 = arith.constant 0 : index
    %c0_1 = arith.constant 0 : index
    %c0_2 = arith.constant 0 : index
    %2 = vector.load %arg6[%c0, %c0_1, %c0_2] : memref<18x18x8xf32, #tpu.memory_space<vmem>>, vector<1x18x8xf32>
    tpu.vector_store %arg6[%c0, %c0_1, %c0_2], %0 {strides = array<i32>} : memref<18x18x8xf32, #tpu.memory_space<vmem>>, vector<1x18x8xf32>,
    %c17 = arith.constant 17 : index
    %c0_3 = arith.constant 0 : index
    %c0_4 = arith.constant 0 : index
    %3 = vector.load %arg6[%c17, %c0_3, %c0_4] : memref<18x18x8xf32, #tpu.memory_space<vmem>>, vector<1x18x8xf32>
    tpu.vector_store %arg6[%c17, %c0_3, %c0_4], %0 {strides = array<i32>} : memref<18x18x8xf32, #tpu.memory_space<vmem>>, vector<1x18x8xf32>,
    %c0_5 = arith.constant 0 : index
    %c0_6 = arith.constant 0 : index
    %c0_7 = arith.constant 0 : index
    %4 = vector.load %arg6[%c0_5, %c0_6, %c0_7] : memref<18x18x8xf32, #tpu.memory_space<vmem>>, vector<18x1x8xf32>
    tpu.vector_store %arg6[%c0_5, %c0_6, %c0_7], %1 {strides = array<i32>} : memref<18x18x8xf32, #tpu.memory_space<vmem>>, vector<18x1x8xf32>,
    %c0_8 = arith.constant 0 : index
    %c17_9 = arith.constant 17 : index
    %c0_10 = arith.constant 0 : index
    %5 = vector.load %arg6[%c0_8, %c17_9, %c0_10] : memref<18x18x8xf32, #tpu.memory_space<vmem>>, vector<18x1x8xf32>
    tpu.vector_store %arg6[%c0_8, %c17_9, %c0_10], %1 {strides = array<i32>} : memref<18x18x8xf32, #tpu.memory_space<vmem>>, vector<18x1x8xf32>,
    %c0_11 = arith.constant 0 : index
    %c0_12 = arith.constant 0 : index
    %c0_13 = arith.constant 0 : index
    %c0_14 = arith.constant 0 : index
    %6 = vector.load %arg1[%c0_11, %c0_12, %c0_13, %c0_14] : memref<1x16x16x8xbf16, #tpu.memory_space<vmem>>, vector<1x16x16x8xbf16>
    %7 = vector.shape_cast %6 : vector<1x16x16x8xbf16> to vector<16x16x8xbf16>
    %8 = arith.extf %7 : vector<16x16x8xbf16> to vector<16x16x8xf32>
    %c1 = arith.constant 1 : index
    %c1_15 = arith.constant 1 : index
    %c0_16 = arith.constant 0 : index
    %9 = vector.load %arg6[%c1, %c1_15, %c0_16] : memref<18x18x8xf32, #tpu.memory_space<vmem>>, vector<16x16x8xf32>
    tpu.vector_store %arg6[%c1, %c1_15, %c0_16], %8 {strides = array<i32>} : memref<18x18x8xf32, #tpu.memory_space<vmem>>, vector<16x16x8xf32>,
    %c0_17 = arith.constant 0 : index
    %c0_18 = arith.constant 0 : index
    %10 = vector.load %arg3[%c0_17, %c0_18] : memref<8x128xf32, #tpu.memory_space<vmem>>, vector<1x128xf32>
    %cst_19 = arith.constant 0.000000e+00 : f32
    %11 = vector.broadcast %cst_19 : f32 to vector<256x128xf32>
    %c0_20 = arith.constant 0 : index
    %c0_21 = arith.constant 0 : index
    %c0_22 = arith.constant 0 : index
    %12 = vector.load %arg6[%c0_20, %c0_21, %c0_22] : memref<18x18x8xf32, #tpu.memory_space<vmem>>, vector<18x16x8xf32>
    %13 = vector.shape_cast %12 : vector<18x16x8xf32> to vector<288x8xf32>
    %14 = vector.extract_strided_slice %13 {offsets = [0, 0], sizes = [256, 8], strides = [1, 1]} : vector<288x8xf32> to vector<256x8xf32>
    %15 = arith.truncf %14 : vector<256x8xf32> to vector<256x8xbf16>
    %c0_23 = arith.constant 0 : index
    %c0_24 = arith.constant 0 : index
    %c0_25 = arith.constant 0 : index
    %16 = vector.load %arg2[%c0_23, %c0_24, %c0_25] : memref<9x8x128xbf16, #tpu.memory_space<vmem>>, vector<1x8x128xbf16>
    %17 = vector.shape_cast %16 : vector<1x8x128xbf16> to vector<8x128xbf16>
    %cst_26 = arith.constant dense<0.000000e+00> : vector<256x128xf32>
    %18 = tpu.matmul %15, %17, %cst_26 {dimension_numbers = #tpu.dot_dimension_numbers<[1], [0], [0], [1], [0, 0, 1, 1], [], []>} : vector<256x8xbf16>, vector<8x128xbf16>, vector<256x128xf32> -> vector<256x128xf32>
    %19 = arith.addf %11, %18 : vector<256x128xf32>
    %20 = vector.extract_strided_slice %13 {offsets = [16, 0], sizes = [256, 8], strides = [1, 1]} : vector<288x8xf32> to vector<256x8xf32>
    %21 = arith.truncf %20 : vector<256x8xf32> to vector<256x8xbf16>
    %c3 = arith.constant 3 : index
    %c0_27 = arith.constant 0 : index
    %c0_28 = arith.constant 0 : index
    %22 = vector.load %arg2[%c3, %c0_27, %c0_28] : memref<9x8x128xbf16, #tpu.memory_space<vmem>>, vector<1x8x128xbf16>
    %23 = vector.shape_cast %22 : vector<1x8x128xbf16> to vector<8x128xbf16>
    %cst_29 = arith.constant dense<0.000000e+00> : vector<256x128xf32>
    %24 = tpu.matmul %21, %23, %cst_29 {dimension_numbers = #tpu.dot_dimension_numbers<[1], [0], [0], [1], [0, 0, 1, 1], [], []>} : vector<256x8xbf16>, vector<8x128xbf16>, vector<256x128xf32> -> vector<256x128xf32>
    %25 = arith.addf %19, %24 : vector<256x128xf32>
    %26 = vector.extract_strided_slice %13 {offsets = [32, 0], sizes = [256, 8], strides = [1, 1]} : vector<288x8xf32> to vector<256x8xf32>
    %27 = arith.truncf %26 : vector<256x8xf32> to vector<256x8xbf16>
    %c6 = arith.constant 6 : index
    %c0_30 = arith.constant 0 : index
    %c0_31 = arith.constant 0 : index
    %28 = vector.load %arg2[%c6, %c0_30, %c0_31] : memref<9x8x128xbf16, #tpu.memory_space<vmem>>, vector<1x8x128xbf16>
    %29 = vector.shape_cast %28 : vector<1x8x128xbf16> to vector<8x128xbf16>
    %cst_32 = arith.constant dense<0.000000e+00> : vector<256x128xf32>
    %30 = tpu.matmul %27, %29, %cst_32 {dimension_numbers = #tpu.dot_dimension_numbers<[1], [0], [0], [1], [0, 0, 1, 1], [], []>} : vector<256x8xbf16>, vector<8x128xbf16>, vector<256x128xf32> -> vector<256x128xf32>
    %31 = arith.addf %25, %30 : vector<256x128xf32>
    %c0_33 = arith.constant 0 : index
    %c1_34 = arith.constant 1 : index
    %c0_35 = arith.constant 0 : index
    %32 = vector.load %arg6[%c0_33, %c1_34, %c0_35] : memref<18x18x8xf32, #tpu.memory_space<vmem>>, vector<18x16x8xf32>
    %33 = vector.shape_cast %32 : vector<18x16x8xf32> to vector<288x8xf32>
    %34 = vector.extract_strided_slice %33 {offsets = [0, 0], sizes = [256, 8], strides = [1, 1]} : vector<288x8xf32> to vector<256x8xf32>
    %35 = arith.truncf %34 : vector<256x8xf32> to vector<256x8xbf16>
    %c1_36 = arith.constant 1 : index
    %c0_37 = arith.constant 0 : index
    %c0_38 = arith.constant 0 : index
    %36 = vector.load %arg2[%c1_36, %c0_37, %c0_38] : memref<9x8x128xbf16, #tpu.memory_space<vmem>>, vector<1x8x128xbf16>
    %37 = vector.shape_cast %36 : vector<1x8x128xbf16> to vector<8x128xbf16>
    %cst_39 = arith.constant dense<0.000000e+00> : vector<256x128xf32>
    %38 = tpu.matmul %35, %37, %cst_39 {dimension_numbers = #tpu.dot_dimension_numbers<[1], [0], [0], [1], [0, 0, 1, 1], [], []>} : vector<256x8xbf16>, vector<8x128xbf16>, vector<256x128xf32> -> vector<256x128xf32>
    %39 = arith.addf %31, %38 : vector<256x128xf32>
    %40 = vector.extract_strided_slice %33 {offsets = [16, 0], sizes = [256, 8], strides = [1, 1]} : vector<288x8xf32> to vector<256x8xf32>
    %41 = arith.truncf %40 : vector<256x8xf32> to vector<256x8xbf16>
    %c4 = arith.constant 4 : index
    %c0_40 = arith.constant 0 : index
    %c0_41 = arith.constant 0 : index
    %42 = vector.load %arg2[%c4, %c0_40, %c0_41] : memref<9x8x128xbf16, #tpu.memory_space<vmem>>, vector<1x8x128xbf16>
    %43 = vector.shape_cast %42 : vector<1x8x128xbf16> to vector<8x128xbf16>
    %cst_42 = arith.constant dense<0.000000e+00> : vector<256x128xf32>
    %44 = tpu.matmul %41, %43, %cst_42 {dimension_numbers = #tpu.dot_dimension_numbers<[1], [0], [0], [1], [0, 0, 1, 1], [], []>} : vector<256x8xbf16>, vector<8x128xbf16>, vector<256x128xf32> -> vector<256x128xf32>
    %45 = arith.addf %39, %44 : vector<256x128xf32>
    %46 = vector.extract_strided_slice %33 {offsets = [32, 0], sizes = [256, 8], strides = [1, 1]} : vector<288x8xf32> to vector<256x8xf32>
    %47 = arith.truncf %46 : vector<256x8xf32> to vector<256x8xbf16>
    %c7 = arith.constant 7 : index
    %c0_43 = arith.constant 0 : index
    %c0_44 = arith.constant 0 : index
    %48 = vector.load %arg2[%c7, %c0_43, %c0_44] : memref<9x8x128xbf16, #tpu.memory_space<vmem>>, vector<1x8x128xbf16>
    %49 = vector.shape_cast %48 : vector<1x8x128xbf16> to vector<8x128xbf16>
    %cst_45 = arith.constant dense<0.000000e+00> : vector<256x128xf32>
    %50 = tpu.matmul %47, %49, %cst_45 {dimension_numbers = #tpu.dot_dimension_numbers<[1], [0], [0], [1], [0, 0, 1, 1], [], []>} : vector<256x8xbf16>, vector<8x128xbf16>, vector<256x128xf32> -> vector<256x128xf32>
    %51 = arith.addf %45, %50 : vector<256x128xf32>
    %c0_46 = arith.constant 0 : index
    %c2 = arith.constant 2 : index
    %c0_47 = arith.constant 0 : index
    %52 = vector.load %arg6[%c0_46, %c2, %c0_47] : memref<18x18x8xf32, #tpu.memory_space<vmem>>, vector<18x16x8xf32>
    %53 = vector.shape_cast %52 : vector<18x16x8xf32> to vector<288x8xf32>
    %54 = vector.extract_strided_slice %53 {offsets = [0, 0], sizes = [256, 8], strides = [1, 1]} : vector<288x8xf32> to vector<256x8xf32>
    %55 = arith.truncf %54 : vector<256x8xf32> to vector<256x8xbf16>
    %c2_48 = arith.constant 2 : index
    %c0_49 = arith.constant 0 : index
    %c0_50 = arith.constant 0 : index
    %56 = vector.load %arg2[%c2_48, %c0_49, %c0_50] : memref<9x8x128xbf16, #tpu.memory_space<vmem>>, vector<1x8x128xbf16>
    %57 = vector.shape_cast %56 : vector<1x8x128xbf16> to vector<8x128xbf16>
    %cst_51 = arith.constant dense<0.000000e+00> : vector<256x128xf32>
    %58 = tpu.matmul %55, %57, %cst_51 {dimension_numbers = #tpu.dot_dimension_numbers<[1], [0], [0], [1], [0, 0, 1, 1], [], []>} : vector<256x8xbf16>, vector<8x128xbf16>, vector<256x128xf32> -> vector<256x128xf32>
    %59 = arith.addf %51, %58 : vector<256x128xf32>
    %60 = vector.extract_strided_slice %53 {offsets = [16, 0], sizes = [256, 8], strides = [1, 1]} : vector<288x8xf32> to vector<256x8xf32>
    %61 = arith.truncf %60 : vector<256x8xf32> to vector<256x8xbf16>
    %c5 = arith.constant 5 : index
    %c0_52 = arith.constant 0 : index
    %c0_53 = arith.constant 0 : index
    %62 = vector.load %arg2[%c5, %c0_52, %c0_53] : memref<9x8x128xbf16, #tpu.memory_space<vmem>>, vector<1x8x128xbf16>
    %63 = vector.shape_cast %62 : vector<1x8x128xbf16> to vector<8x128xbf16>
    %cst_54 = arith.constant dense<0.000000e+00> : vector<256x128xf32>
    %64 = tpu.matmul %61, %63, %cst_54 {dimension_numbers = #tpu.dot_dimension_numbers<[1], [0], [0], [1], [0, 0, 1, 1], [], []>} : vector<256x8xbf16>, vector<8x128xbf16>, vector<256x128xf32> -> vector<256x128xf32>
    %65 = arith.addf %59, %64 : vector<256x128xf32>
    %66 = vector.extract_strided_slice %53 {offsets = [32, 0], sizes = [256, 8], strides = [1, 1]} : vector<288x8xf32> to vector<256x8xf32>
    %67 = arith.truncf %66 : vector<256x8xf32> to vector<256x8xbf16>
    %c8 = arith.constant 8 : index
    %c0_55 = arith.constant 0 : index
    %c0_56 = arith.constant 0 : index
    %68 = vector.load %arg2[%c8, %c0_55, %c0_56] : memref<9x8x128xbf16, #tpu.memory_space<vmem>>, vector<1x8x128xbf16>
    %69 = vector.shape_cast %68 : vector<1x8x128xbf16> to vector<8x128xbf16>
    %cst_57 = arith.constant dense<0.000000e+00> : vector<256x128xf32>
    %70 = tpu.matmul %67, %69, %cst_57 {dimension_numbers = #tpu.dot_dimension_numbers<[1], [0], [0], [1], [0, 0, 1, 1], [], []>} : vector<256x8xbf16>, vector<8x128xbf16>, vector<256x128xf32> -> vector<256x128xf32>
    %71 = arith.addf %65, %70 : vector<256x128xf32>
    %72 = vector.broadcast %10 : vector<1x128xf32> to vector<256x128xf32>
    %73 = arith.addf %71, %72 : vector<256x128xf32>
    %cst_58 = arith.constant 0.000000e+00 : f32
    %74 = vector.broadcast %cst_58 : f32 to vector<256x128xf32>
    %75 = arith.maximumf %73, %74 : vector<256x128xf32>
    %76 = arith.truncf %75 : vector<256x128xf32> to vector<256x128xbf16>
    %c0_59 = arith.constant 0 : index
    %c0_60 = arith.constant 0 : index
    %77 = vector.load %arg4[%c0_59, %c0_60] : memref<128x128xbf16, #tpu.memory_space<vmem>>, vector<128x128xbf16>
    %cst_61 = arith.constant dense<0.000000e+00> : vector<256x128xf32>
    %78 = tpu.matmul %76, %77, %cst_61 {dimension_numbers = #tpu.dot_dimension_numbers<[1], [0], [0], [1], [0, 0, 1, 1], [], []>} : vector<256x128xbf16>, vector<128x128xbf16>, vector<256x128xf32> -> vector<256x128xf32>
    %c1_62 = arith.constant 1 : index
    %c0_63 = arith.constant 0 : index
    %79 = vector.load %arg3[%c1_62, %c0_63] : memref<8x128xf32, #tpu.memory_space<vmem>>, vector<1x128xf32>
    %80 = vector.broadcast %79 : vector<1x128xf32> to vector<256x128xf32>
    %81 = arith.addf %78, %80 : vector<256x128xf32>
    %cst_64 = arith.constant 0.000000e+00 : f32
    %82 = vector.broadcast %cst_64 : f32 to vector<256x128xf32>
    %83 = arith.cmpf oge, %81, %82 : vector<256x128xf32>
    %cst_65 = arith.constant 0.00999999977 : f32
    %84 = vector.broadcast %cst_65 : f32 to vector<256x128xf32>
    %85 = arith.mulf %84, %81 : vector<256x128xf32>
    %86 = arith.select %83, %81, %85 : vector<256x128xi1>, vector<256x128xf32>
    %c2_66 = arith.constant 2 : index
    %c0_67 = arith.constant 0 : index
    %87 = vector.load %arg3[%c2_66, %c0_67] : memref<8x128xf32, #tpu.memory_space<vmem>>, vector<1x128xf32>
    %88 = vector.broadcast %87 : vector<1x128xf32> to vector<256x128xf32>
    %89 = arith.mulf %86, %88 : vector<256x128xf32>
    %c3_68 = arith.constant 3 : index
    %c0_69 = arith.constant 0 : index
    %90 = vector.load %arg3[%c3_68, %c0_69] : memref<8x128xf32, #tpu.memory_space<vmem>>, vector<1x128xf32>
    %91 = vector.broadcast %90 : vector<1x128xf32> to vector<256x128xf32>
    %92 = arith.addf %89, %91 : vector<256x128xf32>
    %cst_70 = arith.constant 0.000000e+00 : f32
    %93 = vector.broadcast %cst_70 : f32 to vector<256x128xf32>
    %94 = arith.maximumf %92, %93 : vector<256x128xf32>
    %95 = arith.truncf %94 : vector<256x128xf32> to vector<256x128xbf16>
    %c0_71 = arith.constant 0 : index
    %c0_72 = arith.constant 0 : index
    %c0_73 = arith.constant 0 : index
    %96 = vector.load %arg5[%c0_71, %c0_72, %c0_73] : memref<1x256x128xbf16, #tpu.memory_space<vmem>>, vector<1x256x128xbf16>
    %97 = vector.shape_cast %96 : vector<1x256x128xbf16> to vector<256x128xbf16>
    %98 = vector.shape_cast %95 : vector<256x128xbf16> to vector<1x256x128xbf16>
    tpu.vector_store %arg5[%c0_71, %c0_72, %c0_73], %98 {strides = array<i32>} : memref<1x256x128xbf16, #tpu.memory_space<vmem>>, vector<1x256x128xbf16>,
    return
  }
  func.func @transform_0(%arg0: i32) -> (i32, i32, i32, i32) {
    %c0_i32 = arith.constant 0 : i32
    %c0_i32_0 = arith.constant 0 : i32
    %c0_i32_1 = arith.constant 0 : i32
    %c0_i32_2 = arith.constant 0 : i32
    return %arg0, %c0_i32, %c0_i32_0, %c0_i32_1 : i32, i32, i32, i32
  }
  func.func @transform_1(%arg0: i32) -> (i32, i32, i32) {
    %c0_i32 = arith.constant 0 : i32
    %c0_i32_0 = arith.constant 0 : i32
    %c0_i32_1 = arith.constant 0 : i32
    %c0_i32_2 = arith.constant 0 : i32
    return %c0_i32, %c0_i32_0, %c0_i32_1 : i32, i32, i32
  }
  func.func @transform_2(%arg0: i32) -> (i32, i32) {
    %c0_i32 = arith.constant 0 : i32
    %c0_i32_0 = arith.constant 0 : i32
    %c0_i32_1 = arith.constant 0 : i32
    return %c0_i32, %c0_i32_0 : i32, i32
  }
  func.func @transform_3(%arg0: i32) -> (i32, i32) {
    %c0_i32 = arith.constant 0 : i32
    %c0_i32_0 = arith.constant 0 : i32
    %c0_i32_1 = arith.constant 0 : i32
    return %c0_i32, %c0_i32_0 : i32, i32
  }
  func.func @transform_4(%arg0: i32) -> (i32, i32, i32) {
    %c0_i32 = arith.constant 0 : i32
    %c0_i32_0 = arith.constant 0 : i32
    %c0_i32_1 = arith.constant 0 : i32
    return %arg0, %c0_i32, %c0_i32_0 : i32, i32, i32
  }
}

module attributes {stable_mosaic.version = 11 : i64} {
  func.func @_conv3x3_fused_kernel(%arg0: i32, %arg1: memref<1x16x16x128xbf16, #tpu.memory_space<vmem>>, %arg2: memref<9x128x128xbf16, #tpu.memory_space<vmem>>, %arg3: memref<8x128xf32, #tpu.memory_space<vmem>>, %arg4: memref<1x256x128xbf16, #tpu.memory_space<vmem>>, %arg5: memref<18x18x128xf32, #tpu.memory_space<vmem>>) attributes {dimension_semantics = [#tpu.dimension_semantics<parallel>], iteration_bounds = array<i64: 2>, scalar_prefetch = 0 : i64, scratch_operands = 1 : i64, tpu.core_type = #tpu.core_type<tc>, window_params = [{transform_indices = @transform_0, window_bounds = array<i64: 1, 16, 16, 128>}, {pipeline_mode = #tpu.pipeline_mode<synchronous>, transform_indices = @transform_1, window_bounds = array<i64: 9, 128, 128>}, {pipeline_mode = #tpu.pipeline_mode<synchronous>, transform_indices = @transform_2, window_bounds = array<i64: 8, 128>}, {transform_indices = @transform_3, window_bounds = array<i64: 1, 256, 128>}]} {
    %cst = arith.constant 0.000000e+00 : f32
    %0 = vector.broadcast %cst : f32 to vector<1x18x128xf32>
    %cst_0 = arith.constant 0.000000e+00 : f32
    %1 = vector.broadcast %cst_0 : f32 to vector<18x1x128xf32>
    %c0 = arith.constant 0 : index
    %c0_1 = arith.constant 0 : index
    %c0_2 = arith.constant 0 : index
    %2 = vector.load %arg5[%c0, %c0_1, %c0_2] : memref<18x18x128xf32, #tpu.memory_space<vmem>>, vector<1x18x128xf32>
    tpu.vector_store %arg5[%c0, %c0_1, %c0_2], %0 {strides = array<i32>} : memref<18x18x128xf32, #tpu.memory_space<vmem>>, vector<1x18x128xf32>,
    %c17 = arith.constant 17 : index
    %c0_3 = arith.constant 0 : index
    %c0_4 = arith.constant 0 : index
    %3 = vector.load %arg5[%c17, %c0_3, %c0_4] : memref<18x18x128xf32, #tpu.memory_space<vmem>>, vector<1x18x128xf32>
    tpu.vector_store %arg5[%c17, %c0_3, %c0_4], %0 {strides = array<i32>} : memref<18x18x128xf32, #tpu.memory_space<vmem>>, vector<1x18x128xf32>,
    %c0_5 = arith.constant 0 : index
    %c0_6 = arith.constant 0 : index
    %c0_7 = arith.constant 0 : index
    %4 = vector.load %arg5[%c0_5, %c0_6, %c0_7] : memref<18x18x128xf32, #tpu.memory_space<vmem>>, vector<18x1x128xf32>
    tpu.vector_store %arg5[%c0_5, %c0_6, %c0_7], %1 {strides = array<i32>} : memref<18x18x128xf32, #tpu.memory_space<vmem>>, vector<18x1x128xf32>,
    %c0_8 = arith.constant 0 : index
    %c17_9 = arith.constant 17 : index
    %c0_10 = arith.constant 0 : index
    %5 = vector.load %arg5[%c0_8, %c17_9, %c0_10] : memref<18x18x128xf32, #tpu.memory_space<vmem>>, vector<18x1x128xf32>
    tpu.vector_store %arg5[%c0_8, %c17_9, %c0_10], %1 {strides = array<i32>} : memref<18x18x128xf32, #tpu.memory_space<vmem>>, vector<18x1x128xf32>,
    %c0_11 = arith.constant 0 : index
    %c0_12 = arith.constant 0 : index
    %c0_13 = arith.constant 0 : index
    %c0_14 = arith.constant 0 : index
    %6 = vector.load %arg1[%c0_11, %c0_12, %c0_13, %c0_14] : memref<1x16x16x128xbf16, #tpu.memory_space<vmem>>, vector<1x16x16x128xbf16>
    %7 = vector.shape_cast %6 : vector<1x16x16x128xbf16> to vector<16x16x128xbf16>
    %8 = arith.extf %7 : vector<16x16x128xbf16> to vector<16x16x128xf32>
    %c1 = arith.constant 1 : index
    %c1_15 = arith.constant 1 : index
    %c0_16 = arith.constant 0 : index
    %9 = vector.load %arg5[%c1, %c1_15, %c0_16] : memref<18x18x128xf32, #tpu.memory_space<vmem>>, vector<16x16x128xf32>
    tpu.vector_store %arg5[%c1, %c1_15, %c0_16], %8 {strides = array<i32>} : memref<18x18x128xf32, #tpu.memory_space<vmem>>, vector<16x16x128xf32>,
    %c0_17 = arith.constant 0 : index
    %c0_18 = arith.constant 0 : index
    %10 = vector.load %arg3[%c0_17, %c0_18] : memref<8x128xf32, #tpu.memory_space<vmem>>, vector<1x128xf32>
    %cst_19 = arith.constant 0.000000e+00 : f32
    %11 = vector.broadcast %cst_19 : f32 to vector<256x128xf32>
    %c0_20 = arith.constant 0 : index
    %c0_21 = arith.constant 0 : index
    %c0_22 = arith.constant 0 : index
    %12 = vector.load %arg5[%c0_20, %c0_21, %c0_22] : memref<18x18x128xf32, #tpu.memory_space<vmem>>, vector<18x16x128xf32>
    %13 = vector.shape_cast %12 : vector<18x16x128xf32> to vector<288x128xf32>
    %14 = vector.extract_strided_slice %13 {offsets = [0, 0], sizes = [256, 128], strides = [1, 1]} : vector<288x128xf32> to vector<256x128xf32>
    %15 = arith.truncf %14 : vector<256x128xf32> to vector<256x128xbf16>
    %c0_23 = arith.constant 0 : index
    %c0_24 = arith.constant 0 : index
    %c0_25 = arith.constant 0 : index
    %16 = vector.load %arg2[%c0_23, %c0_24, %c0_25] : memref<9x128x128xbf16, #tpu.memory_space<vmem>>, vector<1x128x128xbf16>
    %17 = vector.shape_cast %16 : vector<1x128x128xbf16> to vector<128x128xbf16>
    %cst_26 = arith.constant dense<0.000000e+00> : vector<256x128xf32>
    %18 = tpu.matmul %15, %17, %cst_26 {dimension_numbers = #tpu.dot_dimension_numbers<[1], [0], [0], [1], [0, 0, 1, 1], [], []>} : vector<256x128xbf16>, vector<128x128xbf16>, vector<256x128xf32> -> vector<256x128xf32>
    %19 = arith.addf %11, %18 : vector<256x128xf32>
    %20 = vector.extract_strided_slice %13 {offsets = [16, 0], sizes = [256, 128], strides = [1, 1]} : vector<288x128xf32> to vector<256x128xf32>
    %21 = arith.truncf %20 : vector<256x128xf32> to vector<256x128xbf16>
    %c3 = arith.constant 3 : index
    %c0_27 = arith.constant 0 : index
    %c0_28 = arith.constant 0 : index
    %22 = vector.load %arg2[%c3, %c0_27, %c0_28] : memref<9x128x128xbf16, #tpu.memory_space<vmem>>, vector<1x128x128xbf16>
    %23 = vector.shape_cast %22 : vector<1x128x128xbf16> to vector<128x128xbf16>
    %cst_29 = arith.constant dense<0.000000e+00> : vector<256x128xf32>
    %24 = tpu.matmul %21, %23, %cst_29 {dimension_numbers = #tpu.dot_dimension_numbers<[1], [0], [0], [1], [0, 0, 1, 1], [], []>} : vector<256x128xbf16>, vector<128x128xbf16>, vector<256x128xf32> -> vector<256x128xf32>
    %25 = arith.addf %19, %24 : vector<256x128xf32>
    %26 = vector.extract_strided_slice %13 {offsets = [32, 0], sizes = [256, 128], strides = [1, 1]} : vector<288x128xf32> to vector<256x128xf32>
    %27 = arith.truncf %26 : vector<256x128xf32> to vector<256x128xbf16>
    %c6 = arith.constant 6 : index
    %c0_30 = arith.constant 0 : index
    %c0_31 = arith.constant 0 : index
    %28 = vector.load %arg2[%c6, %c0_30, %c0_31] : memref<9x128x128xbf16, #tpu.memory_space<vmem>>, vector<1x128x128xbf16>
    %29 = vector.shape_cast %28 : vector<1x128x128xbf16> to vector<128x128xbf16>
    %cst_32 = arith.constant dense<0.000000e+00> : vector<256x128xf32>
    %30 = tpu.matmul %27, %29, %cst_32 {dimension_numbers = #tpu.dot_dimension_numbers<[1], [0], [0], [1], [0, 0, 1, 1], [], []>} : vector<256x128xbf16>, vector<128x128xbf16>, vector<256x128xf32> -> vector<256x128xf32>
    %31 = arith.addf %25, %30 : vector<256x128xf32>
    %c0_33 = arith.constant 0 : index
    %c1_34 = arith.constant 1 : index
    %c0_35 = arith.constant 0 : index
    %32 = vector.load %arg5[%c0_33, %c1_34, %c0_35] : memref<18x18x128xf32, #tpu.memory_space<vmem>>, vector<18x16x128xf32>
    %33 = vector.shape_cast %32 : vector<18x16x128xf32> to vector<288x128xf32>
    %34 = vector.extract_strided_slice %33 {offsets = [0, 0], sizes = [256, 128], strides = [1, 1]} : vector<288x128xf32> to vector<256x128xf32>
    %35 = arith.truncf %34 : vector<256x128xf32> to vector<256x128xbf16>
    %c1_36 = arith.constant 1 : index
    %c0_37 = arith.constant 0 : index
    %c0_38 = arith.constant 0 : index
    %36 = vector.load %arg2[%c1_36, %c0_37, %c0_38] : memref<9x128x128xbf16, #tpu.memory_space<vmem>>, vector<1x128x128xbf16>
    %37 = vector.shape_cast %36 : vector<1x128x128xbf16> to vector<128x128xbf16>
    %cst_39 = arith.constant dense<0.000000e+00> : vector<256x128xf32>
    %38 = tpu.matmul %35, %37, %cst_39 {dimension_numbers = #tpu.dot_dimension_numbers<[1], [0], [0], [1], [0, 0, 1, 1], [], []>} : vector<256x128xbf16>, vector<128x128xbf16>, vector<256x128xf32> -> vector<256x128xf32>
    %39 = arith.addf %31, %38 : vector<256x128xf32>
    %40 = vector.extract_strided_slice %33 {offsets = [16, 0], sizes = [256, 128], strides = [1, 1]} : vector<288x128xf32> to vector<256x128xf32>
    %41 = arith.truncf %40 : vector<256x128xf32> to vector<256x128xbf16>
    %c4 = arith.constant 4 : index
    %c0_40 = arith.constant 0 : index
    %c0_41 = arith.constant 0 : index
    %42 = vector.load %arg2[%c4, %c0_40, %c0_41] : memref<9x128x128xbf16, #tpu.memory_space<vmem>>, vector<1x128x128xbf16>
    %43 = vector.shape_cast %42 : vector<1x128x128xbf16> to vector<128x128xbf16>
    %cst_42 = arith.constant dense<0.000000e+00> : vector<256x128xf32>
    %44 = tpu.matmul %41, %43, %cst_42 {dimension_numbers = #tpu.dot_dimension_numbers<[1], [0], [0], [1], [0, 0, 1, 1], [], []>} : vector<256x128xbf16>, vector<128x128xbf16>, vector<256x128xf32> -> vector<256x128xf32>
    %45 = arith.addf %39, %44 : vector<256x128xf32>
    %46 = vector.extract_strided_slice %33 {offsets = [32, 0], sizes = [256, 128], strides = [1, 1]} : vector<288x128xf32> to vector<256x128xf32>
    %47 = arith.truncf %46 : vector<256x128xf32> to vector<256x128xbf16>
    %c7 = arith.constant 7 : index
    %c0_43 = arith.constant 0 : index
    %c0_44 = arith.constant 0 : index
    %48 = vector.load %arg2[%c7, %c0_43, %c0_44] : memref<9x128x128xbf16, #tpu.memory_space<vmem>>, vector<1x128x128xbf16>
    %49 = vector.shape_cast %48 : vector<1x128x128xbf16> to vector<128x128xbf16>
    %cst_45 = arith.constant dense<0.000000e+00> : vector<256x128xf32>
    %50 = tpu.matmul %47, %49, %cst_45 {dimension_numbers = #tpu.dot_dimension_numbers<[1], [0], [0], [1], [0, 0, 1, 1], [], []>} : vector<256x128xbf16>, vector<128x128xbf16>, vector<256x128xf32> -> vector<256x128xf32>
    %51 = arith.addf %45, %50 : vector<256x128xf32>
    %c0_46 = arith.constant 0 : index
    %c2 = arith.constant 2 : index
    %c0_47 = arith.constant 0 : index
    %52 = vector.load %arg5[%c0_46, %c2, %c0_47] : memref<18x18x128xf32, #tpu.memory_space<vmem>>, vector<18x16x128xf32>
    %53 = vector.shape_cast %52 : vector<18x16x128xf32> to vector<288x128xf32>
    %54 = vector.extract_strided_slice %53 {offsets = [0, 0], sizes = [256, 128], strides = [1, 1]} : vector<288x128xf32> to vector<256x128xf32>
    %55 = arith.truncf %54 : vector<256x128xf32> to vector<256x128xbf16>
    %c2_48 = arith.constant 2 : index
    %c0_49 = arith.constant 0 : index
    %c0_50 = arith.constant 0 : index
    %56 = vector.load %arg2[%c2_48, %c0_49, %c0_50] : memref<9x128x128xbf16, #tpu.memory_space<vmem>>, vector<1x128x128xbf16>
    %57 = vector.shape_cast %56 : vector<1x128x128xbf16> to vector<128x128xbf16>
    %cst_51 = arith.constant dense<0.000000e+00> : vector<256x128xf32>
    %58 = tpu.matmul %55, %57, %cst_51 {dimension_numbers = #tpu.dot_dimension_numbers<[1], [0], [0], [1], [0, 0, 1, 1], [], []>} : vector<256x128xbf16>, vector<128x128xbf16>, vector<256x128xf32> -> vector<256x128xf32>
    %59 = arith.addf %51, %58 : vector<256x128xf32>
    %60 = vector.extract_strided_slice %53 {offsets = [16, 0], sizes = [256, 128], strides = [1, 1]} : vector<288x128xf32> to vector<256x128xf32>
    %61 = arith.truncf %60 : vector<256x128xf32> to vector<256x128xbf16>
    %c5 = arith.constant 5 : index
    %c0_52 = arith.constant 0 : index
    %c0_53 = arith.constant 0 : index
    %62 = vector.load %arg2[%c5, %c0_52, %c0_53] : memref<9x128x128xbf16, #tpu.memory_space<vmem>>, vector<1x128x128xbf16>
    %63 = vector.shape_cast %62 : vector<1x128x128xbf16> to vector<128x128xbf16>
    %cst_54 = arith.constant dense<0.000000e+00> : vector<256x128xf32>
    %64 = tpu.matmul %61, %63, %cst_54 {dimension_numbers = #tpu.dot_dimension_numbers<[1], [0], [0], [1], [0, 0, 1, 1], [], []>} : vector<256x128xbf16>, vector<128x128xbf16>, vector<256x128xf32> -> vector<256x128xf32>
    %65 = arith.addf %59, %64 : vector<256x128xf32>
    %66 = vector.extract_strided_slice %53 {offsets = [32, 0], sizes = [256, 128], strides = [1, 1]} : vector<288x128xf32> to vector<256x128xf32>
    %67 = arith.truncf %66 : vector<256x128xf32> to vector<256x128xbf16>
    %c8 = arith.constant 8 : index
    %c0_55 = arith.constant 0 : index
    %c0_56 = arith.constant 0 : index
    %68 = vector.load %arg2[%c8, %c0_55, %c0_56] : memref<9x128x128xbf16, #tpu.memory_space<vmem>>, vector<1x128x128xbf16>
    %69 = vector.shape_cast %68 : vector<1x128x128xbf16> to vector<128x128xbf16>
    %cst_57 = arith.constant dense<0.000000e+00> : vector<256x128xf32>
    %70 = tpu.matmul %67, %69, %cst_57 {dimension_numbers = #tpu.dot_dimension_numbers<[1], [0], [0], [1], [0, 0, 1, 1], [], []>} : vector<256x128xbf16>, vector<128x128xbf16>, vector<256x128xf32> -> vector<256x128xf32>
    %71 = arith.addf %65, %70 : vector<256x128xf32>
    %72 = vector.broadcast %10 : vector<1x128xf32> to vector<256x128xf32>
    %73 = arith.addf %71, %72 : vector<256x128xf32>
    %cst_58 = arith.constant 0.000000e+00 : f32
    %74 = vector.broadcast %cst_58 : f32 to vector<256x128xf32>
    %75 = arith.cmpf oge, %73, %74 : vector<256x128xf32>
    %cst_59 = arith.constant 0.00999999977 : f32
    %76 = vector.broadcast %cst_59 : f32 to vector<256x128xf32>
    %77 = arith.mulf %76, %73 : vector<256x128xf32>
    %78 = arith.select %75, %73, %77 : vector<256x128xi1>, vector<256x128xf32>
    %79 = arith.truncf %78 : vector<256x128xf32> to vector<256x128xbf16>
    %c0_60 = arith.constant 0 : index
    %c0_61 = arith.constant 0 : index
    %c0_62 = arith.constant 0 : index
    %80 = vector.load %arg4[%c0_60, %c0_61, %c0_62] : memref<1x256x128xbf16, #tpu.memory_space<vmem>>, vector<1x256x128xbf16>
    %81 = vector.shape_cast %80 : vector<1x256x128xbf16> to vector<256x128xbf16>
    %82 = vector.shape_cast %79 : vector<256x128xbf16> to vector<1x256x128xbf16>
    tpu.vector_store %arg4[%c0_60, %c0_61, %c0_62], %82 {strides = array<i32>} : memref<1x256x128xbf16, #tpu.memory_space<vmem>>, vector<1x256x128xbf16>,
    return
  }
  func.func @transform_0(%arg0: i32) -> (i32, i32, i32, i32) {
    %c0_i32 = arith.constant 0 : i32
    %c0_i32_0 = arith.constant 0 : i32
    %c0_i32_1 = arith.constant 0 : i32
    %c0_i32_2 = arith.constant 0 : i32
    return %arg0, %c0_i32, %c0_i32_0, %c0_i32_1 : i32, i32, i32, i32
  }
  func.func @transform_1(%arg0: i32) -> (i32, i32, i32) {
    %c0_i32 = arith.constant 0 : i32
    %c0_i32_0 = arith.constant 0 : i32
    %c0_i32_1 = arith.constant 0 : i32
    %c0_i32_2 = arith.constant 0 : i32
    return %c0_i32, %c0_i32_0, %c0_i32_1 : i32, i32, i32
  }
  func.func @transform_2(%arg0: i32) -> (i32, i32) {
    %c0_i32 = arith.constant 0 : i32
    %c0_i32_0 = arith.constant 0 : i32
    %c0_i32_1 = arith.constant 0 : i32
    return %c0_i32, %c0_i32_0 : i32, i32
  }
  func.func @transform_3(%arg0: i32) -> (i32, i32, i32) {
    %c0_i32 = arith.constant 0 : i32
    %c0_i32_0 = arith.constant 0 : i32
    %c0_i32_1 = arith.constant 0 : i32
    return %arg0, %c0_i32, %c0_i32_0 : i32, i32, i32
  }
}

module attributes {stable_mosaic.version = 11 : i64} {
  func.func @_dw_gap_heads_kernel(%arg0: i32, %arg1: memref<1x16x16x128xbf16, #tpu.memory_space<vmem>>, %arg2: memref<16x128xf32, #tpu.memory_space<vmem>>, %arg3: memref<128x32xf32, #tpu.memory_space<vmem>>, %arg4: memref<1x32xf32, #tpu.memory_space<vmem>>, %arg5: memref<32x7xf32, #tpu.memory_space<vmem>>, %arg6: memref<1x7xf32, #tpu.memory_space<vmem>>, %arg7: memref<1x1x32xf32, #tpu.memory_space<vmem>>, %arg8: memref<1x1x7xf32, #tpu.memory_space<vmem>>, %arg9: memref<18x18x128xf32, #tpu.memory_space<vmem>>) attributes {dimension_semantics = [#tpu.dimension_semantics<parallel>], iteration_bounds = array<i64: 2>, scalar_prefetch = 0 : i64, scratch_operands = 1 : i64, tpu.core_type = #tpu.core_type<tc>, window_params = [{transform_indices = @transform_0, window_bounds = array<i64: 1, 16, 16, 128>}, {pipeline_mode = #tpu.pipeline_mode<synchronous>, transform_indices = @transform_1, window_bounds = array<i64: 16, 128>}, {pipeline_mode = #tpu.pipeline_mode<synchronous>, transform_indices = @transform_2, window_bounds = array<i64: 128, 32>}, {pipeline_mode = #tpu.pipeline_mode<synchronous>, transform_indices = @transform_3, window_bounds = array<i64: 1, 32>}, {pipeline_mode = #tpu.pipeline_mode<synchronous>, transform_indices = @transform_4, window_bounds = array<i64: 32, 7>}, {pipeline_mode = #tpu.pipeline_mode<synchronous>, transform_indices = @transform_5, window_bounds = array<i64: 1, 7>}, {transform_indices = @transform_6, window_bounds = array<i64: 1, 1, 32>}, {transform_indices = @transform_7, window_bounds = array<i64: 1, 1, 7>}]} {
    %cst = arith.constant 0.000000e+00 : f32
    %0 = vector.broadcast %cst : f32 to vector<1x18x128xf32>
    %cst_0 = arith.constant 0.000000e+00 : f32
    %1 = vector.broadcast %cst_0 : f32 to vector<18x1x128xf32>
    %c0 = arith.constant 0 : index
    %c0_1 = arith.constant 0 : index
    %c0_2 = arith.constant 0 : index
    %2 = vector.load %arg9[%c0, %c0_1, %c0_2] : memref<18x18x128xf32, #tpu.memory_space<vmem>>, vector<1x18x128xf32>
    tpu.vector_store %arg9[%c0, %c0_1, %c0_2], %0 {strides = array<i32>} : memref<18x18x128xf32, #tpu.memory_space<vmem>>, vector<1x18x128xf32>,
    %c17 = arith.constant 17 : index
    %c0_3 = arith.constant 0 : index
    %c0_4 = arith.constant 0 : index
    %3 = vector.load %arg9[%c17, %c0_3, %c0_4] : memref<18x18x128xf32, #tpu.memory_space<vmem>>, vector<1x18x128xf32>
    tpu.vector_store %arg9[%c17, %c0_3, %c0_4], %0 {strides = array<i32>} : memref<18x18x128xf32, #tpu.memory_space<vmem>>, vector<1x18x128xf32>,
    %c0_5 = arith.constant 0 : index
    %c0_6 = arith.constant 0 : index
    %c0_7 = arith.constant 0 : index
    %4 = vector.load %arg9[%c0_5, %c0_6, %c0_7] : memref<18x18x128xf32, #tpu.memory_space<vmem>>, vector<18x1x128xf32>
    tpu.vector_store %arg9[%c0_5, %c0_6, %c0_7], %1 {strides = array<i32>} : memref<18x18x128xf32, #tpu.memory_space<vmem>>, vector<18x1x128xf32>,
    %c0_8 = arith.constant 0 : index
    %c17_9 = arith.constant 17 : index
    %c0_10 = arith.constant 0 : index
    %5 = vector.load %arg9[%c0_8, %c17_9, %c0_10] : memref<18x18x128xf32, #tpu.memory_space<vmem>>, vector<18x1x128xf32>
    tpu.vector_store %arg9[%c0_8, %c17_9, %c0_10], %1 {strides = array<i32>} : memref<18x18x128xf32, #tpu.memory_space<vmem>>, vector<18x1x128xf32>,
    %c0_11 = arith.constant 0 : index
    %c0_12 = arith.constant 0 : index
    %c0_13 = arith.constant 0 : index
    %c0_14 = arith.constant 0 : index
    %6 = vector.load %arg1[%c0_11, %c0_12, %c0_13, %c0_14] : memref<1x16x16x128xbf16, #tpu.memory_space<vmem>>, vector<1x16x16x128xbf16>
    %7 = vector.shape_cast %6 : vector<1x16x16x128xbf16> to vector<16x16x128xbf16>
    %8 = arith.extf %7 : vector<16x16x128xbf16> to vector<16x16x128xf32>
    %c1 = arith.constant 1 : index
    %c1_15 = arith.constant 1 : index
    %c0_16 = arith.constant 0 : index
    %9 = vector.load %arg9[%c1, %c1_15, %c0_16] : memref<18x18x128xf32, #tpu.memory_space<vmem>>, vector<16x16x128xf32>
    tpu.vector_store %arg9[%c1, %c1_15, %c0_16], %8 {strides = array<i32>} : memref<18x18x128xf32, #tpu.memory_space<vmem>>, vector<16x16x128xf32>,
    %c9 = arith.constant 9 : index
    %c0_17 = arith.constant 0 : index
    %10 = vector.load %arg2[%c9, %c0_17] : memref<16x128xf32, #tpu.memory_space<vmem>>, vector<1x128xf32>
    %cst_18 = arith.constant 0.000000e+00 : f32
    %11 = vector.broadcast %cst_18 : f32 to vector<1x128xf32>
    %cst_19 = arith.constant 0.000000e+00 : f32
    %12 = vector.broadcast %cst_19 : f32 to vector<128x128xf32>
    %c0_20 = arith.constant 0 : index
    %c0_21 = arith.constant 0 : index
    %c0_22 = arith.constant 0 : index
    %13 = vector.load %arg9[%c0_20, %c0_21, %c0_22] : memref<18x18x128xf32, #tpu.memory_space<vmem>>, vector<10x16x128xf32>
    %14 = vector.shape_cast %13 : vector<10x16x128xf32> to vector<160x128xf32>
    %15 = vector.extract_strided_slice %14 {offsets = [0, 0], sizes = [128, 128], strides = [1, 1]} : vector<160x128xf32> to vector<128x128xf32>
    %c0_23 = arith.constant 0 : index
    %c0_24 = arith.constant 0 : index
    %16 = vector.load %arg2[%c0_23, %c0_24] : memref<16x128xf32, #tpu.memory_space<vmem>>, vector<1x128xf32>
    %17 = vector.broadcast %16 : vector<1x128xf32> to vector<128x128xf32>
    %18 = arith.mulf %15, %17 : vector<128x128xf32>
    %19 = arith.addf %12, %18 : vector<128x128xf32>
    %20 = vector.extract_strided_slice %14 {offsets = [16, 0], sizes = [128, 128], strides = [1, 1]} : vector<160x128xf32> to vector<128x128xf32>
    %c3 = arith.constant 3 : index
    %c0_25 = arith.constant 0 : index
    %21 = vector.load %arg2[%c3, %c0_25] : memref<16x128xf32, #tpu.memory_space<vmem>>, vector<1x128xf32>
    %22 = vector.broadcast %21 : vector<1x128xf32> to vector<128x128xf32>
    %23 = arith.mulf %20, %22 : vector<128x128xf32>
    %24 = arith.addf %19, %23 : vector<128x128xf32>
    %25 = vector.extract_strided_slice %14 {offsets = [32, 0], sizes = [128, 128], strides = [1, 1]} : vector<160x128xf32> to vector<128x128xf32>
    %c6 = arith.constant 6 : index
    %c0_26 = arith.constant 0 : index
    %26 = vector.load %arg2[%c6, %c0_26] : memref<16x128xf32, #tpu.memory_space<vmem>>, vector<1x128xf32>
    %27 = vector.broadcast %26 : vector<1x128xf32> to vector<128x128xf32>
    %28 = arith.mulf %25, %27 : vector<128x128xf32>
    %29 = arith.addf %24, %28 : vector<128x128xf32>
    %c0_27 = arith.constant 0 : index
    %c1_28 = arith.constant 1 : index
    %c0_29 = arith.constant 0 : index
    %30 = vector.load %arg9[%c0_27, %c1_28, %c0_29] : memref<18x18x128xf32, #tpu.memory_space<vmem>>, vector<10x16x128xf32>
    %31 = vector.shape_cast %30 : vector<10x16x128xf32> to vector<160x128xf32>
    %32 = vector.extract_strided_slice %31 {offsets = [0, 0], sizes = [128, 128], strides = [1, 1]} : vector<160x128xf32> to vector<128x128xf32>
    %c1_30 = arith.constant 1 : index
    %c0_31 = arith.constant 0 : index
    %33 = vector.load %arg2[%c1_30, %c0_31] : memref<16x128xf32, #tpu.memory_space<vmem>>, vector<1x128xf32>
    %34 = vector.broadcast %33 : vector<1x128xf32> to vector<128x128xf32>
    %35 = arith.mulf %32, %34 : vector<128x128xf32>
    %36 = arith.addf %29, %35 : vector<128x128xf32>
    %37 = vector.extract_strided_slice %31 {offsets = [16, 0], sizes = [128, 128], strides = [1, 1]} : vector<160x128xf32> to vector<128x128xf32>
    %c4 = arith.constant 4 : index
    %c0_32 = arith.constant 0 : index
    %38 = vector.load %arg2[%c4, %c0_32] : memref<16x128xf32, #tpu.memory_space<vmem>>, vector<1x128xf32>
    %39 = vector.broadcast %38 : vector<1x128xf32> to vector<128x128xf32>
    %40 = arith.mulf %37, %39 : vector<128x128xf32>
    %41 = arith.addf %36, %40 : vector<128x128xf32>
    %42 = vector.extract_strided_slice %31 {offsets = [32, 0], sizes = [128, 128], strides = [1, 1]} : vector<160x128xf32> to vector<128x128xf32>
    %c7 = arith.constant 7 : index
    %c0_33 = arith.constant 0 : index
    %43 = vector.load %arg2[%c7, %c0_33] : memref<16x128xf32, #tpu.memory_space<vmem>>, vector<1x128xf32>
    %44 = vector.broadcast %43 : vector<1x128xf32> to vector<128x128xf32>
    %45 = arith.mulf %42, %44 : vector<128x128xf32>
    %46 = arith.addf %41, %45 : vector<128x128xf32>
    %c0_34 = arith.constant 0 : index
    %c2 = arith.constant 2 : index
    %c0_35 = arith.constant 0 : index
    %47 = vector.load %arg9[%c0_34, %c2, %c0_35] : memref<18x18x128xf32, #tpu.memory_space<vmem>>, vector<10x16x128xf32>
    %48 = vector.shape_cast %47 : vector<10x16x128xf32> to vector<160x128xf32>
    %49 = vector.extract_strided_slice %48 {offsets = [0, 0], sizes = [128, 128], strides = [1, 1]} : vector<160x128xf32> to vector<128x128xf32>
    %c2_36 = arith.constant 2 : index
    %c0_37 = arith.constant 0 : index
    %50 = vector.load %arg2[%c2_36, %c0_37] : memref<16x128xf32, #tpu.memory_space<vmem>>, vector<1x128xf32>
    %51 = vector.broadcast %50 : vector<1x128xf32> to vector<128x128xf32>
    %52 = arith.mulf %49, %51 : vector<128x128xf32>
    %53 = arith.addf %46, %52 : vector<128x128xf32>
    %54 = vector.extract_strided_slice %48 {offsets = [16, 0], sizes = [128, 128], strides = [1, 1]} : vector<160x128xf32> to vector<128x128xf32>
    %c5 = arith.constant 5 : index
    %c0_38 = arith.constant 0 : index
    %55 = vector.load %arg2[%c5, %c0_38] : memref<16x128xf32, #tpu.memory_space<vmem>>, vector<1x128xf32>
    %56 = vector.broadcast %55 : vector<1x128xf32> to vector<128x128xf32>
    %57 = arith.mulf %54, %56 : vector<128x128xf32>
    %58 = arith.addf %53, %57 : vector<128x128xf32>
    %59 = vector.extract_strided_slice %48 {offsets = [32, 0], sizes = [128, 128], strides = [1, 1]} : vector<160x128xf32> to vector<128x128xf32>
    %c8 = arith.constant 8 : index
    %c0_39 = arith.constant 0 : index
    %60 = vector.load %arg2[%c8, %c0_39] : memref<16x128xf32, #tpu.memory_space<vmem>>, vector<1x128xf32>
    %61 = vector.broadcast %60 : vector<1x128xf32> to vector<128x128xf32>
    %62 = arith.mulf %59, %61 : vector<128x128xf32>
    %63 = arith.addf %58, %62 : vector<128x128xf32>
    %64 = vector.broadcast %10 : vector<1x128xf32> to vector<128x128xf32>
    %65 = arith.addf %63, %64 : vector<128x128xf32>
    %cst_40 = arith.constant 0.000000e+00 : f32
    %66 = vector.broadcast %cst_40 : f32 to vector<128x128xf32>
    %67 = arith.maximumf %65, %66 : vector<128x128xf32>
    %cst_41 = arith.constant dense<0.000000e+00> : vector<128xf32>
    %68 = vector.multi_reduction <add>, %67, %cst_41 [0] : vector<128x128xf32> to vector<128xf32>
    %69 = vector.shape_cast %68 : vector<128xf32> to vector<1x128xf32>
    %70 = arith.addf %11, %69 : vector<1x128xf32>
    %cst_42 = arith.constant 0.000000e+00 : f32
    %71 = vector.broadcast %cst_42 : f32 to vector<128x128xf32>
    %c8_43 = arith.constant 8 : index
    %c0_44 = arith.constant 0 : index
    %c0_45 = arith.constant 0 : index
    %72 = vector.load %arg9[%c8_43, %c0_44, %c0_45] : memref<18x18x128xf32, #tpu.memory_space<vmem>>, vector<10x16x128xf32>
    %73 = vector.shape_cast %72 : vector<10x16x128xf32> to vector<160x128xf32>
    %74 = vector.extract_strided_slice %73 {offsets = [0, 0], sizes = [128, 128], strides = [1, 1]} : vector<160x128xf32> to vector<128x128xf32>
    %c0_46 = arith.constant 0 : index
    %c0_47 = arith.constant 0 : index
    %75 = vector.load %arg2[%c0_46, %c0_47] : memref<16x128xf32, #tpu.memory_space<vmem>>, vector<1x128xf32>
    %76 = vector.broadcast %75 : vector<1x128xf32> to vector<128x128xf32>
    %77 = arith.mulf %74, %76 : vector<128x128xf32>
    %78 = arith.addf %71, %77 : vector<128x128xf32>
    %79 = vector.extract_strided_slice %73 {offsets = [16, 0], sizes = [128, 128], strides = [1, 1]} : vector<160x128xf32> to vector<128x128xf32>
    %c3_48 = arith.constant 3 : index
    %c0_49 = arith.constant 0 : index
    %80 = vector.load %arg2[%c3_48, %c0_49] : memref<16x128xf32, #tpu.memory_space<vmem>>, vector<1x128xf32>
    %81 = vector.broadcast %80 : vector<1x128xf32> to vector<128x128xf32>
    %82 = arith.mulf %79, %81 : vector<128x128xf32>
    %83 = arith.addf %78, %82 : vector<128x128xf32>
    %84 = vector.extract_strided_slice %73 {offsets = [32, 0], sizes = [128, 128], strides = [1, 1]} : vector<160x128xf32> to vector<128x128xf32>
    %c6_50 = arith.constant 6 : index
    %c0_51 = arith.constant 0 : index
    %85 = vector.load %arg2[%c6_50, %c0_51] : memref<16x128xf32, #tpu.memory_space<vmem>>, vector<1x128xf32>
    %86 = vector.broadcast %85 : vector<1x128xf32> to vector<128x128xf32>
    %87 = arith.mulf %84, %86 : vector<128x128xf32>
    %88 = arith.addf %83, %87 : vector<128x128xf32>
    %c8_52 = arith.constant 8 : index
    %c1_53 = arith.constant 1 : index
    %c0_54 = arith.constant 0 : index
    %89 = vector.load %arg9[%c8_52, %c1_53, %c0_54] : memref<18x18x128xf32, #tpu.memory_space<vmem>>, vector<10x16x128xf32>
    %90 = vector.shape_cast %89 : vector<10x16x128xf32> to vector<160x128xf32>
    %91 = vector.extract_strided_slice %90 {offsets = [0, 0], sizes = [128, 128], strides = [1, 1]} : vector<160x128xf32> to vector<128x128xf32>
    %c1_55 = arith.constant 1 : index
    %c0_56 = arith.constant 0 : index
    %92 = vector.load %arg2[%c1_55, %c0_56] : memref<16x128xf32, #tpu.memory_space<vmem>>, vector<1x128xf32>
    %93 = vector.broadcast %92 : vector<1x128xf32> to vector<128x128xf32>
    %94 = arith.mulf %91, %93 : vector<128x128xf32>
    %95 = arith.addf %88, %94 : vector<128x128xf32>
    %96 = vector.extract_strided_slice %90 {offsets = [16, 0], sizes = [128, 128], strides = [1, 1]} : vector<160x128xf32> to vector<128x128xf32>
    %c4_57 = arith.constant 4 : index
    %c0_58 = arith.constant 0 : index
    %97 = vector.load %arg2[%c4_57, %c0_58] : memref<16x128xf32, #tpu.memory_space<vmem>>, vector<1x128xf32>
    %98 = vector.broadcast %97 : vector<1x128xf32> to vector<128x128xf32>
    %99 = arith.mulf %96, %98 : vector<128x128xf32>
    %100 = arith.addf %95, %99 : vector<128x128xf32>
    %101 = vector.extract_strided_slice %90 {offsets = [32, 0], sizes = [128, 128], strides = [1, 1]} : vector<160x128xf32> to vector<128x128xf32>
    %c7_59 = arith.constant 7 : index
    %c0_60 = arith.constant 0 : index
    %102 = vector.load %arg2[%c7_59, %c0_60] : memref<16x128xf32, #tpu.memory_space<vmem>>, vector<1x128xf32>
    %103 = vector.broadcast %102 : vector<1x128xf32> to vector<128x128xf32>
    %104 = arith.mulf %101, %103 : vector<128x128xf32>
    %105 = arith.addf %100, %104 : vector<128x128xf32>
    %c8_61 = arith.constant 8 : index
    %c2_62 = arith.constant 2 : index
    %c0_63 = arith.constant 0 : index
    %106 = vector.load %arg9[%c8_61, %c2_62, %c0_63] : memref<18x18x128xf32, #tpu.memory_space<vmem>>, vector<10x16x128xf32>
    %107 = vector.shape_cast %106 : vector<10x16x128xf32> to vector<160x128xf32>
    %108 = vector.extract_strided_slice %107 {offsets = [0, 0], sizes = [128, 128], strides = [1, 1]} : vector<160x128xf32> to vector<128x128xf32>
    %c2_64 = arith.constant 2 : index
    %c0_65 = arith.constant 0 : index
    %109 = vector.load %arg2[%c2_64, %c0_65] : memref<16x128xf32, #tpu.memory_space<vmem>>, vector<1x128xf32>
    %110 = vector.broadcast %109 : vector<1x128xf32> to vector<128x128xf32>
    %111 = arith.mulf %108, %110 : vector<128x128xf32>
    %112 = arith.addf %105, %111 : vector<128x128xf32>
    %113 = vector.extract_strided_slice %107 {offsets = [16, 0], sizes = [128, 128], strides = [1, 1]} : vector<160x128xf32> to vector<128x128xf32>
    %c5_66 = arith.constant 5 : index
    %c0_67 = arith.constant 0 : index
    %114 = vector.load %arg2[%c5_66, %c0_67] : memref<16x128xf32, #tpu.memory_space<vmem>>, vector<1x128xf32>
    %115 = vector.broadcast %114 : vector<1x128xf32> to vector<128x128xf32>
    %116 = arith.mulf %113, %115 : vector<128x128xf32>
    %117 = arith.addf %112, %116 : vector<128x128xf32>
    %118 = vector.extract_strided_slice %107 {offsets = [32, 0], sizes = [128, 128], strides = [1, 1]} : vector<160x128xf32> to vector<128x128xf32>
    %c8_68 = arith.constant 8 : index
    %c0_69 = arith.constant 0 : index
    %119 = vector.load %arg2[%c8_68, %c0_69] : memref<16x128xf32, #tpu.memory_space<vmem>>, vector<1x128xf32>
    %120 = vector.broadcast %119 : vector<1x128xf32> to vector<128x128xf32>
    %121 = arith.mulf %118, %120 : vector<128x128xf32>
    %122 = arith.addf %117, %121 : vector<128x128xf32>
    %123 = vector.broadcast %10 : vector<1x128xf32> to vector<128x128xf32>
    %124 = arith.addf %122, %123 : vector<128x128xf32>
    %cst_70 = arith.constant 0.000000e+00 : f32
    %125 = vector.broadcast %cst_70 : f32 to vector<128x128xf32>
    %126 = arith.maximumf %124, %125 : vector<128x128xf32>
    %cst_71 = arith.constant dense<0.000000e+00> : vector<128xf32>
    %127 = vector.multi_reduction <add>, %126, %cst_71 [0] : vector<128x128xf32> to vector<128xf32>
    %128 = vector.shape_cast %127 : vector<128xf32> to vector<1x128xf32>
    %129 = arith.addf %70, %128 : vector<1x128xf32>
    %cst_72 = arith.constant 3.906250e-03 : f32
    %130 = vector.broadcast %cst_72 : f32 to vector<1x128xf32>
    %131 = arith.mulf %129, %130 : vector<1x128xf32>
    %c0_73 = arith.constant 0 : index
    %c0_74 = arith.constant 0 : index
    %132 = vector.load %arg3[%c0_73, %c0_74] : memref<128x32xf32, #tpu.memory_space<vmem>>, vector<128x32xf32>
    %cst_75 = arith.constant dense<0.000000e+00> : vector<1x32xf32>
    %133 = tpu.matmul %131, %132, %cst_75 {dimension_numbers = #tpu.dot_dimension_numbers<[1], [0], [0], [1], [0, 0, 1, 1], [], []>} : vector<1x128xf32>, vector<128x32xf32>, vector<1x32xf32> -> vector<1x32xf32>
    %c0_76 = arith.constant 0 : index
    %c0_77 = arith.constant 0 : index
    %134 = vector.load %arg4[%c0_76, %c0_77] : memref<1x32xf32, #tpu.memory_space<vmem>>, vector<1x32xf32>
    %135 = arith.addf %133, %134 : vector<1x32xf32>
    %c0_78 = arith.constant 0 : index
    %c0_79 = arith.constant 0 : index
    %c0_80 = arith.constant 0 : index
    %136 = vector.load %arg7[%c0_78, %c0_79, %c0_80] : memref<1x1x32xf32, #tpu.memory_space<vmem>>, vector<1x1x32xf32>
    %137 = vector.shape_cast %136 : vector<1x1x32xf32> to vector<1x32xf32>
    %138 = vector.shape_cast %135 : vector<1x32xf32> to vector<1x1x32xf32>
    tpu.vector_store %arg7[%c0_78, %c0_79, %c0_80], %138 {strides = array<i32>} : memref<1x1x32xf32, #tpu.memory_space<vmem>>, vector<1x1x32xf32>,
    %c0_81 = arith.constant 0 : index
    %c0_82 = arith.constant 0 : index
    %139 = vector.load %arg5[%c0_81, %c0_82] : memref<32x7xf32, #tpu.memory_space<vmem>>, vector<32x7xf32>
    %cst_83 = arith.constant dense<0.000000e+00> : vector<1x7xf32>
    %140 = tpu.matmul %135, %139, %cst_83 {dimension_numbers = #tpu.dot_dimension_numbers<[1], [0], [0], [1], [0, 0, 1, 1], [], []>} : vector<1x32xf32>, vector<32x7xf32>, vector<1x7xf32> -> vector<1x7xf32>
    %c0_84 = arith.constant 0 : index
    %c0_85 = arith.constant 0 : index
    %141 = vector.load %arg6[%c0_84, %c0_85] : memref<1x7xf32, #tpu.memory_space<vmem>>, vector<1x7xf32>
    %142 = arith.addf %140, %141 : vector<1x7xf32>
    %c0_86 = arith.constant 0 : index
    %c0_87 = arith.constant 0 : index
    %c0_88 = arith.constant 0 : index
    %143 = vector.load %arg8[%c0_86, %c0_87, %c0_88] : memref<1x1x7xf32, #tpu.memory_space<vmem>>, vector<1x1x7xf32>
    %144 = vector.shape_cast %143 : vector<1x1x7xf32> to vector<1x7xf32>
    %145 = vector.shape_cast %142 : vector<1x7xf32> to vector<1x1x7xf32>
    tpu.vector_store %arg8[%c0_86, %c0_87, %c0_88], %145 {strides = array<i32>} : memref<1x1x7xf32, #tpu.memory_space<vmem>>, vector<1x1x7xf32>,
    return
  }
  func.func @transform_0(%arg0: i32) -> (i32, i32, i32, i32) {
    %c0_i32 = arith.constant 0 : i32
    %c0_i32_0 = arith.constant 0 : i32
    %c0_i32_1 = arith.constant 0 : i32
    %c0_i32_2 = arith.constant 0 : i32
    return %arg0, %c0_i32, %c0_i32_0, %c0_i32_1 : i32, i32, i32, i32
  }
  func.func @transform_1(%arg0: i32) -> (i32, i32) {
    %c0_i32 = arith.constant 0 : i32
    %c0_i32_0 = arith.constant 0 : i32
    %c0_i32_1 = arith.constant 0 : i32
    return %c0_i32, %c0_i32_0 : i32, i32
  }
  func.func @transform_2(%arg0: i32) -> (i32, i32) {
    %c0_i32 = arith.constant 0 : i32
    %c0_i32_0 = arith.constant 0 : i32
    %c0_i32_1 = arith.constant 0 : i32
    return %c0_i32, %c0_i32_0 : i32, i32
  }
  func.func @transform_3(%arg0: i32) -> (i32, i32) {
    %c0_i32 = arith.constant 0 : i32
    %c0_i32_0 = arith.constant 0 : i32
    %c0_i32_1 = arith.constant 0 : i32
    return %c0_i32, %c0_i32_0 : i32, i32
  }
  func.func @transform_4(%arg0: i32) -> (i32, i32) {
    %c0_i32 = arith.constant 0 : i32
    %c0_i32_0 = arith.constant 0 : i32
    %c0_i32_1 = arith.constant 0 : i32
    return %c0_i32, %c0_i32_0 : i32, i32
  }
  func.func @transform_5(%arg0: i32) -> (i32, i32) {
    %c0_i32 = arith.constant 0 : i32
    %c0_i32_0 = arith.constant 0 : i32
    %c0_i32_1 = arith.constant 0 : i32
    return %c0_i32, %c0_i32_0 : i32, i32
  }
  func.func @transform_6(%arg0: i32) -> (i32, i32, i32) {
    %c0_i32 = arith.constant 0 : i32
    %c0_i32_0 = arith.constant 0 : i32
    %c0_i32_1 = arith.constant 0 : i32
    return %arg0, %c0_i32, %c0_i32_0 : i32, i32, i32
  }
  func.func @transform_7(%arg0: i32) -> (i32, i32, i32) {
    %c0_i32 = arith.constant 0 : i32
    %c0_i32_0 = arith.constant 0 : i32
    %c0_i32_1 = arith.constant 0 : i32
    return %arg0, %c0_i32, %c0_i32_0 : i32, i32, i32
  }
}

</mosaic_0001>

<bundles_post_ra>
// kernel: cdfenet_forward.5
= control target key start
LH: loop header
LB: loop body
LE: loop exit
PB: predicated region body
PF: predicated region fallthrough
CT: control target
= control target key end

     0   :  { %13 = vsyncpa [#allocation4], 0  ;;  %s2958_s0 = inlined_call_operand.vmem [shape: bf16[2,16,16,128], index: 0, kind: input, shape index: {}]   ;;  %s2959_s1 = inlined_call_operand.vmem [shape: f32[16,128], index: 1, kind: input, shape index: {}]   ;;  %s2960_s2 = inlined_call_operand.vmem [shape: f32[128,32], index: 2, kind: input, shape index: {}]   ;;  %s2961_s3 = inlined_call_operand.vmem [shape: f32[1,32], index: 3, kind: input, shape index: {}]   ;;  %s2962_s4 = inlined_call_operand.vmem [shape: f32[32,7], index: 4, kind: input, shape index: {}]   ;;  %s2963_s5 = inlined_call_operand.vmem [shape: f32[1,7], index: 5, kind: input, shape index: {}]   ;;  %s2964_s6 = inlined_call_operand.hbm [shape: f32[2,1,32], index: 6, kind: output, shape index: {0}]   ;;  %s2965_s7 = inlined_call_operand.hbm [shape: f32[2,1,7], index: 7, kind: output, shape index: {1}]  }
   0x1   :  { %15 = vsyncpa [#allocation4 + $0x1], 0 }
   0x2   :  { %16 = vsyncpa [#allocation6], 0 }
   0x3   :  { %18 = vsyncpa [#allocation6 + $0x1], 0  ;;  %s1954_s24 = smov 0   ;;  %s1956_s25 = smov 0  }
   0x4   :  { %s1958_s26 = smov 0   ;;  %s1960_s27 = smov 0  }
   0x5 LB: > { %s1975_s28 = sadd.s32 4294967295, %s1907_s27   ;;  %s1565_s29 = sadd.s32 4294967294, %s1907_s27   ;;  %s1907_s27 = sphi %s1960_s27, %s3148_s27   ;;  %s1903_s26 = sphi %s1958_s26, %s3147_s26   ;;  %s1899_s25 = sphi %s1956_s25, %s3146_s25   ;;  %s1895_s24 = sphi %s1954_s24, %s3145_s24  }
   0x6   : > { %s1979_s30 = sadd.s32 1, %s1907_s27   ;;  %s162_s8 = sadd.s32 1, %s1903_s26 }
   0x7   : > { %s159_s9 = ssub.s32 %s1907_s27, %s1979_s30  ;;  %p172_p0 = scmp.ne.s32.totalorder %s1903_s26, %s1899_s25 }
   0x8   : > { %p160_p1 = scmp.eq.s32.totalorder %s159_s9, 0  ;;  %p173_p2 = scmp.eq.s32.totalorder %s1975_s28, 1 }
   0x9   : > { %p178_p3 = scmp.ne.s32.totalorder %s1899_s25, %s1895_s24  ;;  %p179_p4 = scmp.eq.s32.totalorder %s1565_s29, 1 }
   0xa   : > { %s1990_s10 = scalar_select %p160_p1, %s1903_s26, %s162_s8  }
   0xb   : > { %p1992_p5 = por %p173_p2, %p172_p0  ;;  %p1996_p6 = por %p179_p4, %p178_p3 }
   0xc   : > { %p1568_p7 = scmp.ge.s32.totalorder %s1907_s27, 1  ;;  %p246_p8 = scmp.lt.s32.totalorder %s1907_s27, 3 }
   0xe   : > { %p247_p9 = pnand %p1568_p7, %p246_p8 }
  0x10   : > { %250 = sbr.rel (%p247_p9) target bundleno = 697 (0x2b9), region = 44 }
  0x17   : > { %v1282_v0 = vld [vmem:[%s2960_s2] sm:$0xff]  ;;  %v1283_v1 = vld [vmem:[%s2960_s2 + $0x8] sm:$0xff]  ;;  %v2011_v2 = vld [vmem:[%s2960_s2 + $0x10] sm:$0xff]  ;;  %v2968_v3 = vmov 0.0|0.0   ;;  %vm1910_vm0 = vmmov 0   ;;  %v1911_v8 = vmov 0.0  }
  0x18   : > { %1734 = vmatprep.subr.bf16.mxu0 %v2968_v3  ;;  %v1735_v4 = vpack.c.bf16 %v1283_v1, %v1282_v0  ;;  %v2017_v5 = vld [vmem:[%s2960_s2 + $0x18] sm:$0xff]  ;;  %v2022_v6 = vld [vmem:[%s2960_s2 + $0x20] sm:$0xff]  ;;  %v2027_v7 = vld [vmem:[%s2960_s2 + $0x28] sm:$0xff]  ;;  %1720 = vmatprep.mubr.msk.f32.mxu0 %vm1910_vm0, %v1911_v8  ;;  %286 = vst [vmem:[#allocation2] sm:$0xff] %v1911_v8  ;;  %p281_p10 = scmp.lt.s32.totalorder %s1975_s28, 1  ;;  %vm1376_vm1 = vcmask 261120  }
  0x19   : > { %287 = vst [vmem:[#allocation2 + $0x8] sm:$0xff] %v1911_v8  ;;  %288 = vst [vmem:[#allocation2 + $0x10] sm:$0x3] %v1911_v8  ;;  %v2034_v9 = vld [vmem:[%s2960_s2 + $0x30] sm:$0xff]  ;;  %v2039_v10 = vld [vmem:[%s2960_s2 + $0x38] sm:$0xff]  ;;  %1758 = vmatprep.subr.bf16.mxu1 %v2968_v3  ;;  %1731 = vmatprep.mubr.msk.f32.mxu1 %vm1910_vm0, %v1911_v8  ;;  %v1738_v12 = vpack.c.bf16 %v2017_v5, %v2011_v2  ;;  %v1741_v21 = vpack.c.bf16 %v2027_v7, %v2022_v6  ;;  %vm1369_vm2 = vcmask 253952  }
  0x1a   : > { %290 = vst [vmem:[#allocation2 + $0x198] sm:$0xff] %v1911_v8  ;;  %291 = vst [vmem:[#allocation2 + $0x1a0] sm:$0xff] %v1911_v8  ;;  %v2044_v11 = vld [vmem:[%s2960_s2 + $0x40] sm:$0xff]  ;;  %1736 = vmatpush3.bf16.msra.mxu0 %v1735_v4  ;;  %v2053_v13 = vld [vmem:[%s2960_s2 + $0x48] sm:$0xff]  ;;  %s282_s23 = scalar_select %p281_p10, %s1975_s28, 1  ;;  %v1744_v22 = vpack.c.bf16 %v2039_v10, %v2034_v9 }
  0x1b   : > { %292 = vst [vmem:[#allocation2 + $0x1a8] sm:$0x3] %v1911_v8  ;;  %294 = vst [vmem:[#allocation2 + $0x18] sm:$0x1] %v1911_v8  ;;  %v2058_v14 = vld [vmem:[%s2960_s2 + $0x50] sm:$0xff]  ;;  %v2063_v15 = vld [vmem:[%s2960_s2 + $0x58] sm:$0xff]  ;;  %1737 = vmatprep.subr.bf16.mxu0 %v2968_v3  ;;  %v1747_v23 = vpack.c.bf16 %v2053_v13, %v2044_v11 }
  0x1c   : > { %295 = vst [vmem:[#allocation2 + $0x30] sm:$0x1] %v1911_v8  ;;  %296 = vst [vmem:[#allocation2 + $0x48] sm:$0x1] %v1911_v8  ;;  %v2072_v16 = vld [vmem:[%s2960_s2 + $0x60] sm:$0xff]  ;;  %v2077_v17 = vld [vmem:[%s2960_s2 + $0x68] sm:$0xff] }
  0x1d   : > { %297 = vst [vmem:[#allocation2 + $0x60] sm:$0x1] %v1911_v8  ;;  %298 = vst [vmem:[#allocation2 + $0x78] sm:$0x1] %v1911_v8  ;;  %v2082_v18 = vld [vmem:[%s2960_s2 + $0x70] sm:$0xff]  ;;  %v2087_v19 = vld [vmem:[%s2960_s2 + $0x78] sm:$0xff] }
  0x1e   : > { %299 = vst [vmem:[#allocation2 + $0x90] sm:$0x1] %v1911_v8  ;;  %300 = vst [vmem:[#allocation2 + $0xa8] sm:$0x1] %v1911_v8  ;;  %s1586_s18 = sshll.u32 %s282_s23, 7  ;;  %1739 = vmatpush3.bf16.msra.mxu0 %v1738_v12  ;;  %s2874_s23 = sand.u32 1, %s1899_s25  }
  0x1f   : > { %301 = vst [vmem:[#allocation2 + $0xc0] sm:$0x1] %v1911_v8  ;;  %302 = vst [vmem:[#allocation2 + $0xd8] sm:$0x1] %v1911_v8  ;;  %v2092_v20 = vld [vmem:[%s2959_s1] ss:$0 sm:$0xff]  ;;  %s2103_s29 = scalar_lea.vmem %s2958_s0, %s1586_s18  ;;  %1740 = vmatprep.subr.bf16.mxu0 %v2968_v3 }
  0x20   : > { %303 = vst [vmem:[#allocation2 + $0xf0] sm:$0x1] %v1911_v8  ;;  %304 = vst [vmem:[#allocation2 + $0x108] sm:$0x1] %v1911_v8  ;;  %v1588_v27 = vld [vmem:[%s2103_s29] sm:$0xff]   ;;  %v1651_v28 = vld [vmem:[%s2103_s29 + $0x8] sm:$0xff]  }
  0x21   : > { %305 = vst [vmem:[#allocation2 + $0x120] sm:$0x1] %v1911_v8  ;;  %306 = vst [vmem:[#allocation2 + $0x138] sm:$0x1] %v1911_v8  ;;  %v1652_v29 = vld [vmem:[%s2103_s29 + $0x10] sm:$0xff]   ;;  %v2115_v30 = vmul.f32 0.0, %v2092_v20  ;;  %v2118_v31 = vunpack.c.l.bf16 %v1588_v27  ;;  %v2120_v32 = vunpack.c.h.bf16 %v1588_v27  ;;  %v2122_v33 = vunpack.c.l.bf16 %v1651_v28 }
  0x22   : > { %307 = vst [vmem:[#allocation2 + $0x150] sm:$0x1] %v1911_v8  ;;  %308 = vst [vmem:[#allocation2 + $0x168] sm:$0x1] %v1911_v8  ;;  %v2124_v34 = vunpack.c.h.bf16 %v1651_v28  ;;  %v1653_v35 = vld [vmem:[%s2103_s29 + $0x18] sm:$0xff]   ;;  %v1654_v36 = vld [vmem:[%s2103_s29 + $0x20] sm:$0xff]   ;;  %v2129_v38 = vunpack.c.l.bf16 %v1652_v29  ;;  %v2131_v39 = vunpack.c.h.bf16 %v1652_v29  ;;  %1742 = vmatpush3.bf16.msra.mxu0 %v1741_v21 }
  0x23   : > { %309 = vst [vmem:[#allocation2 + $0x180] sm:$0x1] %v1911_v8  ;;  %312 = vst [vmem:[#allocation2 + $0x29] sm:$0x1] %v1911_v8  ;;  %v1655_v37 = vld [vmem:[%s2103_s29 + $0x28] sm:$0xff]   ;;  %v2133_v40 = vunpack.c.l.bf16 %v1653_v35  ;;  %v2135_v41 = vunpack.c.h.bf16 %v1653_v35  ;;  %v1656_v42 = vld [vmem:[%s2103_s29 + $0x30] sm:$0xff]   ;;  %v2142_v45 = vunpack.c.l.bf16 %v1654_v36  ;;  %v2144_v46 = vunpack.c.h.bf16 %v1654_v36  ;;  %1743 = vmatprep.subr.bf16.mxu0 %v2968_v3 }
  0x24   : > { %313 = vst [vmem:[#allocation2 + $0x41] sm:$0x1] %v1911_v8  ;;  %314 = vst [vmem:[#allocation2 + $0x59] sm:$0x1] %v1911_v8  ;;  %v1657_v43 = vld [vmem:[%s2103_s29 + $0x38] sm:$0xff]   ;;  %v2140_v44 = vld [vmem:[%s2103_s29 + $0x40] sm:$0xff]   ;;  %v2146_v47 = vunpack.c.l.bf16 %v1655_v37  ;;  %v2148_v48 = vunpack.c.h.bf16 %v1655_v37  ;;  %v2157_v52 = vunpack.c.l.bf16 %v1656_v42  ;;  %v2159_v53 = vunpack.c.h.bf16 %v1656_v42 }
  0x25   : > { %315 = vst [vmem:[#allocation2 + $0x71] sm:$0x1] %v1911_v8  ;;  %316 = vst [vmem:[#allocation2 + $0x89] sm:$0x1] %v1911_v8  ;;  %v1659_v49 = vld [vmem:[%s2103_s29 + $0x48] sm:$0xff]   ;;  %v1660_v50 = vld [vmem:[%s2103_s29 + $0x50] sm:$0xff]   ;;  %v2161_v54 = vunpack.c.l.bf16 %v1657_v43  ;;  %v2163_v55 = vunpack.c.h.bf16 %v1657_v43  ;;  %v2967_v58 = vunpack.c.l.bf16 %v2140_v44  ;;  %v2966_v59 = vunpack.c.h.bf16 %v2140_v44 }
  0x26   : > { %317 = vst [vmem:[#allocation2 + $0xa1] sm:$0x1] %v1911_v8  ;;  %318 = vst [vmem:[#allocation2 + $0xb9] sm:$0x1] %v1911_v8  ;;  %v1661_v51 = vld [vmem:[%s2103_s29 + $0x58] sm:$0xff]   ;;  %v1662_v56 = vld [vmem:[%s2103_s29 + $0x60] sm:$0xff]   ;;  %v1625_v60 = vunpack.c.l.bf16 %v1659_v49  ;;  %v1626_v61 = vunpack.c.h.bf16 %v1659_v49  ;;  %v1629_v1 = vunpack.c.l.bf16 %v1660_v50  ;;  %v1630_v2 = vunpack.c.h.bf16 %v1660_v50  ;;  %1745 = vmatpush3.bf16.msra.mxu0 %v1744_v22 }
  0x27   : > { %319 = vst [vmem:[#allocation2 + $0xd1] sm:$0x1] %v1911_v8  ;;  %320 = vst [vmem:[#allocation2 + $0xe9] sm:$0x1] %v1911_v8  ;;  %v1663_v57 = vld [vmem:[%s2103_s29 + $0x68] sm:$0xff]   ;;  %v1664_v62 = vld [vmem:[%s2103_s29 + $0x70] sm:$0xff]   ;;  %v1633_v4 = vunpack.c.l.bf16 %v1661_v51  ;;  %v1634_v5 = vunpack.c.h.bf16 %v1661_v51  ;;  %v1637_v12 = vunpack.c.l.bf16 %v1662_v56  ;;  %v1638_v21 = vunpack.c.h.bf16 %v1662_v56  ;;  %1746 = vmatprep.subr.bf16.mxu0 %v2968_v3 }
  0x28   : > { %321 = vst [vmem:[#allocation2 + $0x101] sm:$0x1] %v1911_v8  ;;  %322 = vst [vmem:[#allocation2 + $0x119] sm:$0x1] %v1911_v8  ;;  %v1665_v63 = vld [vmem:[%s2103_s29 + $0x78] sm:$0xff]   ;;  %v558_v7 = vld [vmem:[#allocation2 + $0x1] sm:$0xff]  ;;  %v1641_v27 = vunpack.c.l.bf16 %v1663_v57  ;;  %v1642_v28 = vunpack.c.h.bf16 %v1663_v57  ;;  %v1645_v29 = vunpack.c.l.bf16 %v1664_v62  ;;  %v1646_v35 = vunpack.c.h.bf16 %v1664_v62 }
  0x29   : > { %323 = vst [vmem:[#allocation2 + $0x131] sm:$0x1] %v1911_v8  ;;  %324 = vst [vmem:[#allocation2 + $0x149] sm:$0x1] %v1911_v8  ;;  %v2183_v0 = vld [vmem:[%s2959_s1 + $0x1] ss:$0 sm:$0xff]  ;;  %v1649_v36 = vunpack.c.l.bf16 %v1665_v63  ;;  %v1650_v37 = vunpack.c.h.bf16 %v1665_v63 }
  0x2a   : > { %325 = vst [vmem:[#allocation2 + $0x161] sm:$0x1] %v1911_v8  ;;  %326 = vst [vmem:[#allocation2 + $0x179] sm:$0x1] %v1911_v8  ;;  %v2199_v42 = vld [vmem:[%s2959_s1 + $0x3] ss:$0 sm:$0xff]  ;;  %v2204_v10 = vmul.f32 %v2183_v0, %v558_v7  ;;  %v2211_v43 = vmul.f32 %v2118_v31, %v2183_v0  ;;  %v2217_v56 = vmul.f32 %v2120_v32, %v2183_v0  ;;  %1748 = vmatpush3.bf16.msra.mxu0 %v1747_v23 }
  0x2b   : > { %327 = vst [vmem:[#allocation2 + $0x191] sm:$0x1] %v1911_v8  ;;  %293 = vst [vmem:[#allocation2] sm:$0x1] %v1911_v8  ;;  %v2221_v57 = vmul.f32 %v2122_v33, %v2183_v0  ;;  %1749 = vmatprep.subr.bf16.mxu0 %v2968_v3  ;;  %s274_s13 = scalar_lea.vmem [#allocation3], %s2874_s23  ;;  %s1582_s14 = sshll.u32 %s1975_s28, 4 }
  0x2c   : > { %310 = vst [vmem:[#allocation2 + $0x198] sm:$0x1] %v1911_v8  ;;  %311 = vst [vmem:[#allocation2 + $0x11] sm:$0x1] %v1911_v8  ;;  %s2886_s17 = scalar_lea.hbm %s2964_s6, %s1582_s14  ;;  %s1469_s18 = sshll.u32 %s274_s13, 4  ;;  %s1470_s18 = int_to_ptr.vmem [resolvable:$true] %s1469_s18 }
  0x2d   : > { %328 = vst [vmem:[#allocation2 + $0x1a9] sm:$0x1] %v1911_v8  ;;  %3042 = vst [vmem:[#allocation9_spill] sm:$0xff] %v2092_v20  ;;  %v559_v8 = vld [vmem:[#allocation2 + $0x9] sm:$0xff]  ;;  %s1453_s19 = scalar_lea.sflag [#allocation4], %s2874_s23  ;;  %s1813_s20 = scalar_lea.vmem %s1470_s18, 16 }
  0x2e   : > { %3043 = vst [vmem:[#allocation10_spill] sm:$0xff] %v2118_v31  ;;  %3044 = vst [vmem:[#allocation11_spill] sm:$0xff] %v2120_v32  ;;  %v2207_v22 = vmul.f32 %v2183_v0, %v559_v8  ;;  %p1814_p11 = scmp.ne.s32.totalorder %s1470_s18, %s1813_s20  ;;  %s1912_s21 = smov [#allocation3]  }
  0x2f   : > { %3045 = vst [vmem:[#allocation12_spill] sm:$0xff] %v2122_v33  ;;  %3046 = vst [vmem:[#allocation13_spill] sm:$0xff] %v2124_v34  ;;  %s1817_s22 = sshll.u32 %s1912_s21, 4  ;;  %s1818_s22 = int_to_ptr.vmem [resolvable:$false] %s1817_s22 }
  0x30   : > { %3047 = vst [vmem:[#allocation14_spill] sm:$0xff] %v2129_v38  ;;  %3048 = vst [vmem:[#allocation15_spill] sm:$0xff] %v2131_v39  ;;  %p1815_p12 = pnand %p1814_p11, %p1992_p5  ;;  %s1819_s29 = scalar_lea.vmem %s1818_s22, 32 }
  0x31   : > { %3049 = vst [vmem:[#allocation16_spill] sm:$0xff] %v2133_v40  ;;  %3050 = vst [vmem:[#allocation17_spill] sm:$0xff] %v2135_v41  ;;  %p1820_p0 = scmp.lt.s32.totalorder %s1470_s18, %s1818_s22  ;;  %p1821_p1 = scmp.lt.s32.totalorder %s1819_s29, %s1813_s20 }
  0x32   : > { %3051 = vst [vmem:[#allocation18_spill] sm:$0xff] %v2140_v44  ;;  %3052 = vst [vmem:[#allocation19_spill] sm:$0xff] %v2142_v45  ;;  %v427_v6 = vld [vmem:[#allocation2] sm:$0xff]  ;;  %p1816_p13 = pneg %p1815_p12 }
  0x33   : > { %3053 = vst [vmem:[#allocation20_spill] sm:$0xff] %v2144_v46  ;;  %3054 = vst [vmem:[#allocation21_spill] sm:$0xff] %v2146_v47  ;;  %v452_v9 = vmul.f32 %v2092_v20, %v427_v6  ;;  %p1822_p2 = por %p1821_p1, %p1820_p0 }
  0x34   : > { %3055 = vst [vmem:[#allocation22_spill] sm:$0xff] %v2148_v48  ;;  %394 = vst [vmem:[#allocation2 + $0x19] sm:$0xff] %v2118_v31 }
  0x35   : > { %395 = vst [vmem:[#allocation2 + $0x21] sm:$0xff] %v2120_v32  ;;  %396 = vst [vmem:[#allocation2 + $0x31] sm:$0xff] %v2122_v33  ;;  %p1823_p3 = pnand %p1822_p2, %p1816_p13 }
  0x36   : > { %397 = vst [vmem:[#allocation2 + $0x39] sm:$0xff] %v2124_v34  ;;  %3056 = vst [vmem:[#allocation23_spill] sm:$0xff] %v2157_v52 }
  0x37   : > { %3057 = vst [vmem:[#allocation24_spill] sm:$0xff] %v2159_v53  ;;  %3058 = vst [vmem:[#allocation25_spill] sm:$0xff] %v2161_v54 }
  0x38   : > { %3059 = vst [vmem:[#allocation26_spill] sm:$0xff] %v2163_v55  ;;  %398 = vst [vmem:[#allocation2 + $0x49] sm:$0xff] %v2129_v38 }
  0x39   : > { %399 = vst [vmem:[#allocation2 + $0x51] sm:$0xff] %v2131_v39  ;;  %400 = vst [vmem:[#allocation2 + $0x61] sm:$0xff] %v2133_v40 }
  0x3a   : > { %401 = vst [vmem:[#allocation2 + $0x69] sm:$0xff] %v2135_v41  ;;  %402 = vst [vmem:[#allocation2 + $0x79] sm:$0xff] %v2142_v45  ;;  %v3072_v45 = vpack.c.bf16 %v2077_v17, %v2072_v16 }
  0x3b   : > { %403 = vst [vmem:[#allocation2 + $0x81] sm:$0xff] %v2144_v46  ;;  %404 = vst [vmem:[#allocation2 + $0x91] sm:$0xff] %v2146_v47  ;;  %v429_v49 = vld [vmem:[#allocation2 + $0x18] sm:$0xff]  ;;  %v2297_v46 = vld [vmem:[%s2959_s1 + $0x6] ss:$0 sm:$0xff] }
  0x3c   : > { %405 = vst [vmem:[#allocation2 + $0x99] sm:$0xff] %v2148_v48  ;;  %406 = vst [vmem:[#allocation2 + $0xa9] sm:$0xff] %v2157_v52  ;;  %v430_v50 = vld [vmem:[#allocation2 + $0x20] sm:$0xff]  ;;  %v2213_v51 = vld [vmem:[#allocation2 + $0x30] sm:$0xff]  ;;  %v489_v6 = vmul.f32 %v2199_v42, %v429_v49 }
  0x3d   : > { %407 = vst [vmem:[#allocation2 + $0xb1] sm:$0xff] %v2159_v53  ;;  %408 = vst [vmem:[#allocation2 + $0xc1] sm:$0xff] %v2161_v54  ;;  %v2231_v62 = vld [vmem:[#allocation2 + $0x38] sm:$0xff] }
  0x3e   : > { %409 = vst [vmem:[#allocation2 + $0xc9] sm:$0xff] %v2163_v55  ;;  %410 = vst [vmem:[#allocation2 + $0xd9] sm:$0xff] %v2967_v58  ;;  %v492_v3 = vmul.f32 %v2199_v42, %v2231_v62 }
  0x3f   : > { %411 = vst [vmem:[#allocation2 + $0xe1] sm:$0xff] %v2966_v59  ;;  %412 = vst [vmem:[#allocation2 + $0xf1] sm:$0xff] %v1625_v60  ;;  %v2225_v60 = vmul.f32 %v2124_v34, %v2183_v0  ;;  %v2233_v63 = vld [vmem:[#allocation2 + $0x48] sm:$0xff] }
  0x40   : > { %413 = vst [vmem:[#allocation2 + $0xf9] sm:$0xff] %v1626_v61  ;;  %414 = vst [vmem:[#allocation2 + $0x109] sm:$0xff] %v1629_v1  ;;  %v2229_v61 = vmul.f32 %v2129_v38, %v2183_v0  ;;  %v2235_v1 = vld [vmem:[#allocation2 + $0x50] sm:$0xff]  ;;  %v435_v7 = vld [vmem:[#allocation2 + $0x60] sm:$0xff]  ;;  %v493_v55 = vmul.f32 %v2199_v42, %v2233_v63  ;;  %v3068_v38 = vpack.c.bf16 %v2063_v15, %v2058_v14 }
  0x41   : > { %415 = vst [vmem:[#allocation2 + $0x111] sm:$0xff] %v1630_v2  ;;  %416 = vst [vmem:[#allocation2 + $0x121] sm:$0xff] %v1633_v4  ;;  %v454_v2 = vmul.f32 %v2092_v20, %v429_v49  ;;  %v455_v4 = vmul.f32 %v2092_v20, %v430_v50  ;;  %v436_v8 = vld [vmem:[#allocation2 + $0x68] sm:$0xff]  ;;  %v460_v23 = vmul.f32 %v2092_v20, %v435_v7 }
  0x42   : > { %417 = vst [vmem:[#allocation2 + $0x129] sm:$0xff] %v1634_v5  ;;  %3060 = vst [vmem:[#allocation27_spill] sm:$0xff] %v2199_v42  ;;  %v456_v5 = vmul.f32 %v2092_v20, %v2213_v51  ;;  %v439_v11 = vld [vmem:[#allocation2 + $0x90] sm:$0xff]  ;;  %v491_v49 = vmul.f32 %v2199_v42, %v2213_v51  ;;  %v494_v54 = vmul.f32 %v2199_v42, %v2235_v1  ;;  %1751 = vmatpush3.bf16.msra.mxu0 %v3068_v38 }
  0x43   : > { %418 = vst [vmem:[#allocation2 + $0x139] sm:$0xff] %v1637_v12  ;;  %419 = vst [vmem:[#allocation2 + $0x141] sm:$0xff] %v1638_v21  ;;  %v2245_v12 = vld [vmem:[#allocation2 + $0x78] sm:$0xff]  ;;  %v457_v21 = vmul.f32 %v2092_v20, %v2231_v62  ;;  %v441_v59 = vld [vmem:[#allocation2 + $0xa8] sm:$0xff]  ;;  %v495_v34 = vmul.f32 %v2199_v42, %v435_v7  ;;  %v496_v33 = vmul.f32 %v2199_v42, %v436_v8 }
  0x44   : > { %420 = vst [vmem:[#allocation2 + $0x151] sm:$0xff] %v1641_v27  ;;  %421 = vst [vmem:[#allocation2 + $0x159] sm:$0xff] %v1642_v28  ;;  %v458_v27 = vmul.f32 %v2092_v20, %v2233_v63  ;;  %v459_v28 = vmul.f32 %v2092_v20, %v2235_v1  ;;  %v440_v13 = vld [vmem:[#allocation2 + $0x98] sm:$0xff]  ;;  %v442_v58 = vld [vmem:[#allocation2 + $0xb0] sm:$0xff]  ;;  %v466_v24 = vmul.f32 %v2092_v20, %v441_v59 }
  0x45   : > { %3061 = vst [vmem:[#allocation28_spill] sm:$0xff] %v2204_v10  ;;  %3062 = vst [vmem:[#allocation29_spill] sm:$0xff] %v2207_v22  ;;  %v465_v25 = vmul.f32 %v2092_v20, %v440_v13  ;;  %v467_v44 = vmul.f32 %v2092_v20, %v442_v58  ;;  %v497_v32 = vmul.f32 %v2199_v42, %v2245_v12 }
  0x46   : > { %3063 = vst [vmem:[#allocation30_spill] sm:$0xff] %v2211_v43  ;;  %422 = vst [vmem:[#allocation2 + $0x169] sm:$0xff] %v1645_v29  ;;  %v490_v29 = vmul.f32 %v2199_v42, %v430_v50  ;;  %v464_v50 = vmul.f32 %v2092_v20, %v439_v11  ;;  %v500_v14 = vmul.f32 %v2199_v42, %v440_v13 }
  0x47   : > { %423 = vst [vmem:[#allocation2 + $0x171] sm:$0xff] %v1646_v35  ;;  %424 = vst [vmem:[#allocation2 + $0x181] sm:$0xff] %v1649_v36  ;;  %v438_v35 = vld [vmem:[#allocation2 + $0x80] sm:$0xff]  ;;  %v461_v36 = vmul.f32 %v2092_v20, %v436_v8  ;;  %v501_v15 = vmul.f32 %v2199_v42, %v441_v59  ;;  %v502_v38 = vmul.f32 %v2199_v42, %v442_v58 }
  0x48   : > { %425 = vst [vmem:[#allocation2 + $0x189] sm:$0xff] %v1650_v37  ;;  %3064 = vst [vmem:[#allocation31_spill] sm:$0xff] %v2217_v56  ;;  %v462_v37 = vmul.f32 %v2092_v20, %v2245_v12  ;;  %v463_v26 = vmul.f32 %v2092_v20, %v438_v35  ;;  %v498_v31 = vmul.f32 %v2199_v42, %v438_v35  ;;  %v3069_v20 = vmov 0.0|0.0  }
  0x49   : > { %3065 = vst [vmem:[#allocation32_spill] sm:$0xff] %v2221_v57  ;;  %3066 = vst [vmem:[#allocation33_spill] sm:$0xff] %v2225_v60  ;;  %1752 = vmatprep.subr.bf16.mxu0 %v3069_v20  ;;  %v2283_v60 = vld [vmem:[#allocation2 + $0xc8] sm:$0xff]  ;;  %v499_v57 = vmul.f32 %v2199_v42, %v439_v11  ;;  %v505_v22 = vadd.f32 %v489_v6, %v452_v9  ;;  %v506_v10 = vadd.f32 %v490_v29, %v2115_v30 }
  0x4a   : > { %3067 = vst [vmem:[#allocation34_spill] sm:$0xff] %v2229_v61  ;;  %v2281_v61 = vld [vmem:[#allocation2 + $0xc0] sm:$0xff]  ;;  %3070 = vst [vmem:[#allocation35_spill] sm:$0xff] %v2283_v60  ;;  %v504_v43 = vmul.f32 %v2199_v42, %v2283_v60  ;;  %v507_v53 = vadd.f32 %v491_v49, %v454_v2  ;;  %v508_v52 = vadd.f32 %v492_v3, %v455_v4  ;;  %1754 = vmatpush3.bf16.msra.mxu0 %v3072_v45 }
  0x4b   : > { %v503_v56 = vmul.f32 %v2199_v42, %v2281_v61  ;;  %v509_v48 = vadd.f32 %v493_v55, %v456_v5  ;;  %v510_v47 = vadd.f32 %v494_v54, %v457_v21  ;;  %3071 = vst [vmem:[#allocation36_spill] sm:$0xff] %v2297_v46  ;;  %v511_v41 = vadd.f32 %v495_v34, %v458_v27  ;;  %v2323_v45 = vld [vmem:[#allocation2 + $0xe0] sm:$0xff] }
  0x4c   : > { %v512_v40 = vadd.f32 %v496_v33, %v459_v28  ;;  %v513_v39 = vadd.f32 %v497_v32, %v460_v23  ;;  %v514_v42 = vadd.f32 %v498_v31, %v461_v36  ;;  %1755 = vmatprep.subr.bf16.mxu0 %v3069_v20  ;;  %v515_v30 = vadd.f32 %v499_v57, %v462_v37  ;;  %v3076_v23 = vld [vmem:[#allocation15_spill] sm:$0xff]  ;;  %v3082_v37 = vld [vmem:[#allocation22_spill] sm:$0xff] }
  0x4d   : > { %v516_v9 = vadd.f32 %v500_v14, %v463_v26  ;;  %v517_v3 = vadd.f32 %v501_v15, %v464_v50  ;;  %v518_v55 = vadd.f32 %v502_v38, %v465_v25  ;;  %v519_v54 = vadd.f32 %v503_v56, %v466_v24  ;;  %3075 = vst [vmem:[#allocation38_spill] sm:$0xff] %v2323_v45  ;;  %v3083_v50 = vld [vmem:[#allocation23_spill] sm:$0xff]  ;;  %v3084_v15 = vld [vmem:[#allocation24_spill] sm:$0xff] }
  0x4e   : > { %v520_v2 = vadd.f32 %v504_v43, %v467_v44  ;;  %v526_v4 = vmul.f32 %v2297_v46, %v2213_v51  ;;  %v527_v5 = vmul.f32 %v2297_v46, %v2231_v62  ;;  %v528_v16 = vmul.f32 %v2297_v46, %v2233_v63  ;;  %v2321_v44 = vld [vmem:[#allocation2 + $0xd8] sm:$0xff] }
  0x4f   : > { %v529_v17 = vmul.f32 %v2297_v46, %v2235_v1  ;;  %v530_v31 = vmul.f32 %v2297_v46, %v435_v7  ;;  %v531_v26 = vmul.f32 %v2297_v46, %v436_v8  ;;  %v3073_v24 = vpack.c.bf16 %v2087_v19, %v2082_v18  ;;  %3074 = vst [vmem:[#allocation37_spill] sm:$0xff] %v2321_v44 }
  0x50   : > { %v532_v25 = vmul.f32 %v2297_v46, %v2245_v12  ;;  %v533_v32 = vmul.f32 %v2297_v46, %v438_v35  ;;  %v534_v33 = vmul.f32 %v2297_v46, %v439_v11  ;;  %v535_v34 = vmul.f32 %v2297_v46, %v440_v13 }
  0x51   : > { %1757 = vmatpush3.bf16.msra.mxu0 %v3073_v24  ;;  %v536_v43 = vmul.f32 %v2297_v46, %v441_v59  ;;  %v537_v51 = vmul.f32 %v2297_v46, %v442_v58  ;;  %v538_v18 = vmul.f32 %v2297_v46, %v2281_v61  ;;  %v539_v19 = vmul.f32 %v2297_v46, %v2283_v60 }
  0x52   : > { %v540_v56 = vmul.f32 %v2297_v46, %v2321_v44  ;;  %v541_v57 = vmul.f32 %v2297_v46, %v2323_v45  ;;  %v542_v62 = vadd.f32 %v526_v4, %v505_v22  ;;  %v543_v63 = vadd.f32 %v527_v5, %v506_v10  ;;  %v3077_v22 = vld [vmem:[#allocation16_spill] sm:$0xff]  ;;  %v3088_v4 = vld [vmem:[#allocation31_spill] sm:$0xff] }
  0x53   : > { %v544_v1 = vadd.f32 %v528_v16, %v507_v53  ;;  %v545_v6 = vadd.f32 %v529_v17, %v508_v52  ;;  %v546_v7 = vadd.f32 %v530_v31, %v509_v48  ;;  %v547_v59 = vadd.f32 %v531_v26, %v510_v47  ;;  %v3078_v52 = vld [vmem:[#allocation17_spill] sm:$0xff]  ;;  %v3089_v16 = vld [vmem:[#allocation32_spill] sm:$0xff]  ;;  %v2361_v31 = vld [vmem:[%s2959_s1 + $0x4] ss:$0 sm:$0xff] }
  0x54   : > { %v548_v8 = vadd.f32 %v532_v25, %v511_v41  ;;  %v549_v58 = vadd.f32 %v533_v32, %v512_v40  ;;  %v550_v12 = vadd.f32 %v534_v33, %v513_v39  ;;  %v551_v21 = vadd.f32 %v535_v34, %v514_v42  ;;  %v3079_v41 = vld [vmem:[#allocation19_spill] sm:$0xff]  ;;  %v3080_v39 = vld [vmem:[#allocation20_spill] sm:$0xff]  ;;  %v3081_v53 = vld [vmem:[#allocation21_spill] sm:$0xff]  ;;  %3090 = vst [vmem:[#allocation15_spill] sm:$0xff] %v2361_v31 }
  0x55   : > { %v552_v27 = vadd.f32 %v536_v43, %v515_v30  ;;  %v553_v28 = vadd.f32 %v537_v51, %v516_v9  ;;  %v554_v29 = vadd.f32 %v538_v18, %v517_v3  ;;  %v555_v35 = vadd.f32 %v539_v19, %v518_v55  ;;  %v3085_v30 = vld [vmem:[#allocation28_spill] sm:$0xff]  ;;  %v3086_v3 = vld [vmem:[#allocation29_spill] sm:$0xff]  ;;  %v3092_v25 = vld [vmem:[#allocation34_spill] sm:$0xff] }
  0x56   : > { %v556_v11 = vadd.f32 %v540_v56, %v519_v54  ;;  %v557_v13 = vadd.f32 %v541_v57, %v520_v2  ;;  %v590_v36 = vmul.f32 %v3076_v23, %v2183_v0  ;;  %v591_v10 = vmul.f32 %v3077_v22, %v2183_v0  ;;  %v3087_v54 = vld [vmem:[#allocation30_spill] sm:$0xff]  ;;  %v3091_v26 = vld [vmem:[#allocation33_spill] sm:$0xff] }
  0x57   : > { %v592_v48 = vmul.f32 %v3078_v52, %v2183_v0  ;;  %v593_v40 = vmul.f32 %v3079_v41, %v2183_v0  ;;  %v594_v47 = vmul.f32 %v3080_v39, %v2183_v0  ;;  %v595_v42 = vmul.f32 %v3081_v53, %v2183_v0 }
  0x58   : > { %v596_v49 = vmul.f32 %v3082_v37, %v2183_v0  ;;  %v597_v14 = vmul.f32 %v3083_v50, %v2183_v0  ;;  %v598_v38 = vmul.f32 %v3084_v15, %v2183_v0  ;;  %v599_v9 = vadd.f32 %v3085_v30, %v542_v62  ;;  %v3093_v62 = vld [vmem:[#allocation10_spill] sm:$0xff] }
  0x59   : > { %v600_v55 = vadd.f32 %v3086_v3, %v543_v63  ;;  %v601_v2 = vadd.f32 %v3087_v54, %v544_v1  ;;  %v602_v5 = vadd.f32 %v3088_v4, %v545_v6  ;;  %v603_v17 = vadd.f32 %v3089_v16, %v546_v7  ;;  %v3094_v1 = vld [vmem:[#allocation11_spill] sm:$0xff]  ;;  %v3095_v7 = vld [vmem:[#allocation12_spill] sm:$0xff] }
  0x5a   : > { %v604_v24 = vadd.f32 %v3091_v26, %v547_v59  ;;  %v605_v32 = vadd.f32 %v3092_v25, %v548_v8  ;;  %v606_v0 = vadd.f32 %v590_v36, %v549_v58  ;;  %v607_v33 = vadd.f32 %v591_v10, %v550_v12  ;;  %v3096_v8 = vld [vmem:[#allocation13_spill] sm:$0xff]  ;;  %v3097_v12 = vld [vmem:[#allocation14_spill] sm:$0xff]  ;;  %v2400_v4 = vld [vmem:[%s2959_s1 + $0x7] ss:$0 sm:$0xff] }
  0x5b   : > { %v608_v34 = vadd.f32 %v592_v48, %v551_v21  ;;  %v609_v43 = vadd.f32 %v593_v40, %v552_v27  ;;  %v610_v51 = vadd.f32 %v594_v47, %v553_v28  ;;  %v611_v18 = vadd.f32 %v595_v42, %v554_v29  ;;  %v3098_v40 = vld [vmem:[#allocation25_spill] sm:$0xff]  ;;  %v3099_v42 = vld [vmem:[#allocation26_spill] sm:$0xff]  ;;  %3100 = vst [vmem:[#allocation16_spill] sm:$0xff] %v2400_v4 }
  0x5c   : > { %v612_v19 = vadd.f32 %v596_v49, %v555_v35  ;;  %v613_v56 = vadd.f32 %v597_v14, %v556_v11  ;;  %v614_v57 = vadd.f32 %v598_v38, %v557_v13  ;;  %v620_v63 = vmul.f32 %v3093_v62, %v2361_v31 }
  0x5d   : > { %v621_v6 = vmul.f32 %v3094_v1, %v2361_v31  ;;  %v622_v59 = vmul.f32 %v3095_v7, %v2361_v31  ;;  %v623_v58 = vmul.f32 %v3096_v8, %v2361_v31  ;;  %v624_v21 = vmul.f32 %v3097_v12, %v2361_v31 }
  0x5e   : > { %v625_v27 = vmul.f32 %v3076_v23, %v2361_v31  ;;  %v626_v28 = vmul.f32 %v3077_v22, %v2361_v31  ;;  %v627_v29 = vmul.f32 %v3078_v52, %v2361_v31  ;;  %v628_v35 = vmul.f32 %v3079_v41, %v2361_v31 }
  0x5f   : > { %v629_v11 = vmul.f32 %v3080_v39, %v2361_v31  ;;  %v630_v13 = vmul.f32 %v3081_v53, %v2361_v31  ;;  %v631_v36 = vmul.f32 %v3082_v37, %v2361_v31  ;;  %v632_v10 = vmul.f32 %v3083_v50, %v2361_v31 }
  0x60   : > { %v633_v48 = vmul.f32 %v3084_v15, %v2361_v31  ;;  %v634_v47 = vmul.f32 %v3098_v40, %v2361_v31  ;;  %v635_v49 = vmul.f32 %v3099_v42, %v2361_v31  ;;  %v636_v14 = vadd.f32 %v620_v63, %v599_v9 }
  0x61   : > { %v637_v38 = vadd.f32 %v621_v6, %v600_v55  ;;  %v638_v30 = vadd.f32 %v622_v59, %v601_v2  ;;  %v639_v3 = vadd.f32 %v623_v58, %v602_v5  ;;  %v640_v54 = vadd.f32 %v624_v21, %v603_v17 }
  0x62   : > { %v641_v16 = vadd.f32 %v625_v27, %v604_v24  ;;  %v642_v26 = vadd.f32 %v626_v28, %v605_v32  ;;  %v643_v25 = vadd.f32 %v627_v29, %v606_v0  ;;  %v644_v62 = vadd.f32 %v628_v35, %v607_v33  ;;  %v689_v35 = vld [vmem:[#allocation2 + $0x2] sm:$0xff] }
  0x63   : > { %v645_v1 = vadd.f32 %v629_v11, %v608_v34  ;;  %v646_v20 = vadd.f32 %v630_v13, %v609_v43  ;;  %v647_v45 = vadd.f32 %v631_v36, %v610_v51  ;;  %v648_v44 = vadd.f32 %v632_v10, %v611_v18  ;;  %v2447_v11 = vld [vmem:[%s2959_s1 + $0x2] ss:$0 sm:$0xff]  ;;  %v690_v13 = vld [vmem:[#allocation2 + $0xa] sm:$0xff]  ;;  %v691_v36 = vld [vmem:[#allocation2 + $0x1a] sm:$0xff] }
  0x64   : > { %v649_v60 = vadd.f32 %v633_v48, %v612_v19  ;;  %v650_v31 = vadd.f32 %v634_v47, %v613_v56  ;;  %v651_v9 = vadd.f32 %v635_v49, %v614_v57  ;;  %v657_v55 = vmul.f32 %v3095_v7, %v2400_v4  ;;  %3104 = vst [vmem:[#allocation17_spill] sm:$0xff] %v2447_v11  ;;  %v695_v48 = vld [vmem:[#allocation2 + $0x4a] sm:$0xff]  ;;  %v696_v47 = vld [vmem:[#allocation2 + $0x52] sm:$0xff] }
  0x65   : > { %v658_v2 = vmul.f32 %v3096_v8, %v2400_v4  ;;  %v659_v5 = vmul.f32 %v3097_v12, %v2400_v4  ;;  %v660_v17 = vmul.f32 %v3076_v23, %v2400_v4  ;;  %v661_v24 = vmul.f32 %v3077_v22, %v2400_v4 }
  0x66   : > { %v662_v32 = vmul.f32 %v3078_v52, %v2400_v4  ;;  %v663_v0 = vmul.f32 %v3079_v41, %v2400_v4  ;;  %v664_v33 = vmul.f32 %v3080_v39, %v2400_v4  ;;  %v665_v34 = vmul.f32 %v3081_v53, %v2400_v4  ;;  %v3101_v39 = vld [vmem:[#allocation18_spill] sm:$0xff] }
  0x67   : > { %v666_v43 = vmul.f32 %v3082_v37, %v2400_v4  ;;  %v667_v23 = vmul.f32 %v3083_v50, %v2400_v4  ;;  %v668_v22 = vmul.f32 %v3084_v15, %v2400_v4  ;;  %v669_v52 = vmul.f32 %v3098_v40, %v2400_v4 }
  0x68   : > { %v670_v41 = vmul.f32 %v3099_v42, %v2400_v4  ;;  %v3102_v51 = vunpack.c.l.bf16 %v3101_v39  ;;  %v3103_v53 = vunpack.c.h.bf16 %v3101_v39  ;;  %v673_v19 = vadd.f32 %v657_v55, %v636_v14  ;;  %v697_v42 = vld [vmem:[#allocation2 + $0x62] sm:$0xff] }
  0x69   : > { %v674_v56 = vadd.f32 %v658_v2, %v637_v38  ;;  %v675_v50 = vadd.f32 %v659_v5, %v638_v30  ;;  %v676_v57 = vadd.f32 %v660_v17, %v639_v3  ;;  %v677_v63 = vadd.f32 %v661_v24, %v640_v54  ;;  %v698_v3 = vld [vmem:[#allocation2 + $0x6a] sm:$0xff]  ;;  %v2461_v54 = vld [vmem:[#allocation2 + $0x7a] sm:$0xff]  ;;  %v2477_v24 = vld [vmem:[%s2959_s1 + $0x8] ss:$0 sm:$0xff] }
  0x6a   : > { %v671_v18 = vmul.f32 %v3102_v51, %v2400_v4  ;;  %v672_v37 = vmul.f32 %v3103_v53, %v2400_v4  ;;  %v678_v15 = vadd.f32 %v662_v32, %v641_v16  ;;  %v679_v6 = vadd.f32 %v663_v0, %v642_v26  ;;  %3106 = vst [vmem:[#allocation20_spill] sm:$0xff] %v2477_v24  ;;  %v2479_v32 = vld [vmem:[#allocation2 + $0x9a] sm:$0xff]  ;;  %v2481_v0 = vld [vmem:[#allocation2 + $0xaa] sm:$0xff] }
  0x6b   : > { %v680_v7 = vadd.f32 %v664_v33, %v643_v25  ;;  %v681_v59 = vadd.f32 %v665_v34, %v644_v62  ;;  %v682_v8 = vadd.f32 %v666_v43, %v645_v1  ;;  %v683_v58 = vadd.f32 %v667_v23, %v646_v20  ;;  %v692_v20 = vld [vmem:[#allocation2 + $0x22] sm:$0xff]  ;;  %v2483_v33 = vld [vmem:[#allocation2 + $0xb2] sm:$0xff] }
  0x6c   : > { %v684_v12 = vadd.f32 %v668_v22, %v647_v45  ;;  %v2436_v21 = vadd.f32 %v669_v52, %v648_v44  ;;  %v2438_v27 = vadd.f32 %v670_v41, %v649_v60  ;;  %v2440_v28 = vadd.f32 %v671_v18, %v650_v31  ;;  %v2454_v60 = vld [vmem:[%s2959_s1 + $0x5] ss:$0 sm:$0xff]  ;;  %v693_v45 = vld [vmem:[#allocation2 + $0x32] sm:$0xff]  ;;  %v694_v31 = vld [vmem:[#allocation2 + $0x3a] sm:$0xff] }
  0x6d   : > { %v2442_v29 = vadd.f32 %v672_v37, %v651_v9  ;;  %v714_v10 = vmul.f32 %v2447_v11, %v689_v35  ;;  %v715_v44 = vmul.f32 %v2447_v11, %v690_v13  ;;  %3105 = vst [vmem:[#allocation19_spill] sm:$0xff] %v2454_v60  ;;  %v716_v40 = vmul.f32 %v2447_v11, %v691_v36  ;;  %v2466_v1 = vld [vmem:[#allocation2 + $0x82] sm:$0xff]  ;;  %v2468_v9 = vld [vmem:[#allocation2 + $0x92] sm:$0xff] }
  0x6e   : > { %v717_v49 = vmul.f32 %v2447_v11, %v692_v20  ;;  %v718_v14 = vmul.f32 %v2447_v11, %v693_v45  ;;  %v719_v38 = vmul.f32 %v2447_v11, %v694_v31  ;;  %v720_v30 = vmul.f32 %v2447_v11, %v695_v48 }
  0x6f   : > { %v721_v16 = vmul.f32 %v2447_v11, %v696_v47  ;;  %v722_v26 = vmul.f32 %v2447_v11, %v697_v42  ;;  %v730_v25 = vadd.f32 %v714_v10, %v673_v19  ;;  %v751_v62 = vmul.f32 %v2454_v60, %v691_v36 }
  0x70   : > { %v723_v55 = vmul.f32 %v2447_v11, %v698_v3  ;;  %v724_v2 = vmul.f32 %v2447_v11, %v2461_v54  ;;  %v731_v5 = vadd.f32 %v715_v44, %v674_v56  ;;  %v752_v17 = vmul.f32 %v2454_v60, %v692_v20 }
  0x71   : > { %v725_v34 = vmul.f32 %v2447_v11, %v2466_v1  ;;  %v726_v43 = vmul.f32 %v2447_v11, %v2468_v9  ;;  %v732_v23 = vadd.f32 %v716_v40, %v675_v50  ;;  %v753_v22 = vmul.f32 %v2454_v60, %v693_v45 }
  0x72   : > { %v727_v52 = vmul.f32 %v2447_v11, %v2479_v32  ;;  %v728_v41 = vmul.f32 %v2447_v11, %v2481_v0  ;;  %v729_v39 = vmul.f32 %v2447_v11, %v2483_v33  ;;  %v733_v51 = vadd.f32 %v717_v49, %v676_v57 }
  0x73   : > { %v734_v18 = vadd.f32 %v718_v14, %v677_v63  ;;  %v754_v53 = vmul.f32 %v2454_v60, %v694_v31  ;;  %v767_v37 = vadd.f32 %v751_v62, %v730_v25  ;;  %v788_v19 = vmul.f32 %v2477_v24, %v693_v45 }
  0x74   : > { %v735_v56 = vadd.f32 %v719_v38, %v678_v15  ;;  %v736_v50 = vadd.f32 %v720_v30, %v679_v6  ;;  %v768_v35 = vadd.f32 %v752_v17, %v731_v5  ;;  %v789_v13 = vmul.f32 %v2477_v24, %v694_v31  ;;  %v2506_v6 = vld [vmem:[%s2959_s1 + $0x9] ss:$0 sm:$0xff]  ;;  %v2530_v5 = vld [vmem:[#allocation2 + $0xca] sm:$0xff] }
  0x75   : > { %v737_v36 = vadd.f32 %v721_v16, %v680_v7  ;;  %v755_v10 = vmul.f32 %v2454_v60, %v695_v48  ;;  %v769_v20 = vadd.f32 %v753_v22, %v732_v23  ;;  %v790_v44 = vmul.f32 %v2477_v24, %v695_v48  ;;  %3107 = vst [vmem:[#allocation21_spill] sm:$0xff] %v2506_v6 }
  0x76   : > { %v738_v40 = vadd.f32 %v722_v26, %v681_v59  ;;  %v739_v11 = vadd.f32 %v723_v55, %v682_v8  ;;  %v740_v57 = vadd.f32 %v724_v2, %v683_v58  ;;  %v741_v63 = vadd.f32 %v725_v34, %v684_v12  ;;  %v2528_v2 = vld [vmem:[#allocation2 + $0xc2] sm:$0xff]  ;;  %3109 = vst [vmem:[#allocation23_spill] sm:$0xff] %v2530_v5 }
  0x77   : > { %v756_v49 = vmul.f32 %v2454_v60, %v696_v47  ;;  %v770_v14 = vadd.f32 %v754_v53, %v733_v51  ;;  %v791_v45 = vmul.f32 %v2477_v24, %v696_v47  ;;  %v804_v15 = vadd.f32 %v788_v19, %v767_v37  ;;  %3108 = vst [vmem:[#allocation22_spill] sm:$0xff] %v2528_v2 }
  0x78   : > { %v742_v7 = vadd.f32 %v726_v43, %v2436_v21  ;;  %v743_v31 = vadd.f32 %v727_v52, %v2438_v27  ;;  %v744_v59 = vadd.f32 %v728_v41, %v2440_v28  ;;  %v805_v8 = vadd.f32 %v789_v13, %v768_v35 }
  0x79   : > { %v757_v58 = vmul.f32 %v2454_v60, %v697_v42  ;;  %v771_v12 = vadd.f32 %v755_v10, %v734_v18  ;;  %v792_v48 = vmul.f32 %v2477_v24, %v697_v42  ;;  %v806_v38 = vadd.f32 %v790_v44, %v769_v20 }
  0x7a   : > { %v745_v47 = vadd.f32 %v729_v39, %v2442_v29  ;;  %v758_v30 = vmul.f32 %v2454_v60, %v698_v3  ;;  %v759_v16 = vmul.f32 %v2454_v60, %v2461_v54  ;;  %v760_v21 = vmul.f32 %v2454_v60, %v2466_v1 }
  0x7b   : > { %v772_v27 = vadd.f32 %v756_v49, %v735_v56  ;;  %v793_v28 = vmul.f32 %v2477_v24, %v698_v3  ;;  %v807_v26 = vadd.f32 %v791_v45, %v770_v14  ;;  %v824_v25 = vadd.f32 %v2506_v6, %v804_v15 }
  0x7c   : > { %v761_v42 = vmul.f32 %v2454_v60, %v2468_v9  ;;  %v762_v29 = vmul.f32 %v2454_v60, %v2479_v32  ;;  %v763_v62 = vmul.f32 %v2454_v60, %v2481_v0  ;;  %v825_v55 = vadd.f32 %v2506_v6, %v805_v8  ;;  %v2554_v8 = vld [vmem:[#allocation2 + $0xda] sm:$0xff] }
  0x7d   : > { %v773_v17 = vadd.f32 %v757_v58, %v736_v50  ;;  %v794_v3 = vmul.f32 %v2477_v24, %v2461_v54  ;;  %v808_v34 = vadd.f32 %v792_v48, %v771_v12  ;;  %v826_v43 = vadd.f32 %v2506_v6, %v806_v38  ;;  %3110 = vst [vmem:[#allocation24_spill] sm:$0xff] %v2554_v8 }
  0x7e   : > { %v764_v23 = vmul.f32 %v2454_v60, %v2483_v33  ;;  %v765_v22 = vmul.f32 %v2454_v60, %v2528_v2  ;;  %v766_v52 = vmul.f32 %v2454_v60, %v2530_v5  ;;  %v774_v41 = vadd.f32 %v758_v30, %v737_v36 }
  0x7f   : > { %v795_v39 = vmul.f32 %v2477_v24, %v2466_v1  ;;  %v809_v51 = vadd.f32 %v793_v28, %v772_v27  ;;  %v827_v18 = vadd.f32 %v2506_v6, %v807_v26  ;;  %v840_v54 = vmax.f32 %v824_v25, 0.0 }
  0x80   : > { %v775_v53 = vadd.f32 %v759_v16, %v738_v40  ;;  %v776_v37 = vadd.f32 %v760_v21, %v739_v11  ;;  %v777_v19 = vadd.f32 %v761_v42, %v740_v57  ;;  %v841_v56 = vmax.f32 %v825_v55, 0.0 }
  0x81   : > { %v796_v50 = vmul.f32 %v2477_v24, %v2468_v9  ;;  %v810_v35 = vadd.f32 %v794_v3, %v773_v17  ;;  %v828_v13 = vadd.f32 %v2506_v6, %v808_v34  ;;  %v842_v10 = vmax.f32 %v826_v43, 0.0 }
  0x82   : > { %v778_v20 = vadd.f32 %v762_v29, %v741_v63  ;;  %v779_v36 = vadd.f32 %v763_v62, %v742_v7  ;;  %v780_v44 = vadd.f32 %v764_v23, %v743_v31  ;;  %v797_v1 = vmul.f32 %v2477_v24, %v2479_v32  ;;  %v2556_v63 = vld [vmem:[#allocation2 + $0xe2] sm:$0xff] }
  0x83   : > { %v811_v49 = vadd.f32 %v795_v39, %v774_v41  ;;  %v829_v14 = vadd.f32 %v2506_v6, %v809_v51  ;;  %v843_v40 = vmax.f32 %v827_v18, 0.0  ;;  %v856_v11 = vadd.f32 %v841_v56, %v840_v54  ;;  %3111 = vst [vmem:[#allocation28_spill] sm:$0xff] %v2556_v63 }
  0x84   : > { %v781_v57 = vadd.f32 %v765_v22, %v744_v59  ;;  %v782_v45 = vadd.f32 %v766_v52, %v745_v47  ;;  %v798_v9 = vmul.f32 %v2477_v24, %v2481_v0  ;;  %v799_v15 = vmul.f32 %v2477_v24, %v2483_v33 }
  0x85   : > { %v812_v7 = vadd.f32 %v796_v50, %v775_v53  ;;  %v830_v32 = vadd.f32 %v2506_v6, %v810_v35  ;;  %v844_v31 = vmax.f32 %v828_v13, 0.0  ;;  %v857_v58 = vadd.f32 %v856_v11, %v842_v10  ;;  %v1811_v35 = vld [vmem:[#allocation2 + $0x8] sm:$0xff]  ;;  %v2593_v11 = vld [vmem:[#allocation2 + $0x110] sm:$0xff] }
  0x86   : > { %v800_v12 = vmul.f32 %v2477_v24, %v2528_v2  ;;  %v801_v59 = vmul.f32 %v2477_v24, %v2530_v5  ;;  %v802_v0 = vmul.f32 %v2477_v24, %v2554_v8  ;;  %v803_v33 = vmul.f32 %v2477_v24, %v2556_v63  ;;  %3116 = vst [vmem:[#allocation32_spill] sm:$0xff] %v2593_v11 }
  0x87   : > { %v813_v48 = vadd.f32 %v797_v1, %v776_v37  ;;  %v831_v38 = vadd.f32 %v2506_v6, %v811_v49  ;;  %v845_v47 = vmax.f32 %v829_v14, 0.0  ;;  %v858_v30 = vadd.f32 %v857_v58, %v843_v40  ;;  %v2587_v1 = vld [vmem:[#allocation2 + $0xf8] sm:$0xff]  ;;  %v2591_v40 = vld [vmem:[#allocation2 + $0x108] sm:$0xff] }
  0x88   : > { %v814_v16 = vadd.f32 %v798_v9, %v777_v19  ;;  %v832_v21 = vadd.f32 %v2506_v6, %v812_v7  ;;  %v846_v27 = vmax.f32 %v830_v32, 0.0  ;;  %v815_v26 = vadd.f32 %v799_v15, %v778_v20  ;;  %3113 = vst [vmem:[#allocation30_spill] sm:$0xff] %v2587_v1  ;;  %v3114_v49 = vld [vmem:[#allocation9_spill] sm:$0xff]  ;;  %3115 = vst [vmem:[#allocation31_spill] sm:$0xff] %v2591_v40  ;;  %v3120_v32 = vld [vmem:[#allocation38_spill] sm:$0xff] }
  0x89   : > { %v859_v28 = vadd.f32 %v858_v30, %v844_v31  ;;  %v816_v25 = vadd.f32 %v800_v12, %v779_v36  ;;  %v817_v42 = vadd.f32 %v801_v59, %v780_v44  ;;  %v818_v29 = vadd.f32 %v802_v0, %v781_v57  ;;  %v2585_v44 = vld [vmem:[#allocation2 + $0xf0] sm:$0xff]  ;;  %v2595_v57 = vld [vmem:[#allocation2 + $0x120] sm:$0xff]  ;;  %v889_v59 = vld [vmem:[#allocation2 + $0x138] sm:$0xff] }
  0x8a   : > { %v819_v62 = vadd.f32 %v803_v33, %v782_v45  ;;  %v833_v55 = vadd.f32 %v2506_v6, %v813_v48  ;;  %v847_v17 = vmax.f32 %v831_v38, 0.0  ;;  %v834_v34 = vadd.f32 %v2506_v6, %v814_v16  ;;  %3117 = vst [vmem:[#allocation33_spill] sm:$0xff] %v2595_v57  ;;  %v3118_v45 = vld [vmem:[#allocation35_spill] sm:$0xff]  ;;  %v3119_v15 = vld [vmem:[#allocation37_spill] sm:$0xff] }
  0x8b   : > { %v860_v3 = vadd.f32 %v859_v28, %v845_v47  ;;  %v848_v43 = vmax.f32 %v832_v21, 0.0  ;;  %v835_v22 = vadd.f32 %v2506_v6, %v815_v26  ;;  %v836_v52 = vadd.f32 %v2506_v6, %v816_v25  ;;  %v890_v0 = vld [vmem:[#allocation2 + $0x140] sm:$0xff]  ;;  %v891_v47 = vld [vmem:[#allocation2 + $0x150] sm:$0xff]  ;;  %v892_v30 = vld [vmem:[#allocation2 + $0x158] sm:$0xff] }
  0x8c   : > { %v837_v41 = vadd.f32 %v2506_v6, %v817_v42  ;;  %v2575_v39 = vadd.f32 %v2506_v6, %v818_v29  ;;  %v2578_v51 = vadd.f32 %v2506_v6, %v819_v62  ;;  %v849_v18 = vmax.f32 %v833_v55, 0.0  ;;  %v893_v16 = vld [vmem:[#allocation2 + $0x168] sm:$0xff]  ;;  %v894_v42 = vld [vmem:[#allocation2 + $0x170] sm:$0xff] }
  0x8d   : > { %v861_v23 = vadd.f32 %v860_v3, %v846_v27  ;;  %v850_v53 = vmax.f32 %v834_v34, 0.0  ;;  %v851_v19 = vmax.f32 %v835_v22, 0.0  ;;  %v852_v56 = vmax.f32 %v836_v52, 0.0  ;;  %v3121_v3 = vld [vmem:[#allocation27_spill] sm:$0xff] }
  0x8e   : > { %v853_v50 = vmax.f32 %v837_v41, 0.0  ;;  %v2581_v13 = vmul.f32 %v1811_v35, %v2297_v46  ;;  %v854_v10 = vmax.f32 %v2575_v39, 0.0  ;;  %v855_v20 = vmax.f32 %v2578_v51, 0.0  ;;  %v897_v46 = vld [vmem:[#allocation2 + $0x198] sm:$0xff] }
  0x8f   : > { %v862_v54 = vadd.f32 %v861_v23, %v847_v17  ;;  %v899_v14 = vmul.f32 %v3114_v49, %v2281_v61  ;;  %v900_v9 = vmul.f32 %v3114_v49, %v3118_v45  ;;  %v901_v7 = vmul.f32 %v3114_v49, %v3119_v15  ;;  %v888_v61 = vld [vmem:[#allocation2 + $0x128] sm:$0xff] }
  0x90   : > { %3112 = vst [vmem:[#allocation29_spill] sm:$0xff] %v2581_v13  ;;  %v902_v31 = vmul.f32 %v3114_v49, %v3120_v32  ;;  %v903_v58 = vmul.f32 %v3114_v49, %v2585_v44  ;;  %v904_v33 = vmul.f32 %v3114_v49, %v2587_v1  ;;  %v905_v48 = vmul.f32 %v3114_v49, %v2591_v40 }
  0x91   : > { %v863_v37 = vadd.f32 %v862_v54, %v848_v43  ;;  %v906_v38 = vmul.f32 %v3114_v49, %v2593_v11  ;;  %v907_v21 = vmul.f32 %v3114_v49, %v2595_v57  ;;  %v908_v27 = vmul.f32 %v3114_v49, %v888_v61 }
  0x92   : > { %v909_v28 = vmul.f32 %v3114_v49, %v889_v59  ;;  %v910_v26 = vmul.f32 %v3114_v49, %v890_v0  ;;  %v911_v29 = vmul.f32 %v3114_v49, %v891_v47  ;;  %v912_v62 = vmul.f32 %v3114_v49, %v892_v30 }
  0x93   : > { %v864_v36 = vadd.f32 %v863_v37, %v849_v18  ;;  %v913_v55 = vmul.f32 %v3114_v49, %v893_v16  ;;  %v914_v17 = vmul.f32 %v3114_v49, %v894_v42  ;;  %v931_v34 = vmul.f32 %v3121_v3, %v3119_v15 }
  0x94   : > { %v932_v43 = vmul.f32 %v3121_v3, %v3120_v32  ;;  %v933_v23 = vmul.f32 %v3121_v3, %v2585_v44  ;;  %v934_v52 = vmul.f32 %v3121_v3, %v2587_v1  ;;  %v935_v41 = vmul.f32 %v3121_v3, %v2591_v40 }
  0x95   : > { %v865_v12 = vadd.f32 %v864_v36, %v850_v53  ;;  %v936_v39 = vmul.f32 %v3121_v3, %v2593_v11  ;;  %v937_v51 = vmul.f32 %v3121_v3, %v2595_v57  ;;  %v938_v18 = vmul.f32 %v3121_v3, %v888_v61 }
  0x96   : > { %v939_v54 = vmul.f32 %v3121_v3, %v889_v59  ;;  %v940_v53 = vmul.f32 %v3121_v3, %v890_v0  ;;  %v941_v35 = vmul.f32 %v3121_v3, %v891_v47  ;;  %v942_v36 = vmul.f32 %v3121_v3, %v892_v30 }
  0x97   : > { %v866_v25 = vadd.f32 %v865_v12, %v851_v19  ;;  %v895_v19 = vld [vmem:[#allocation2 + $0x180] sm:$0xff]  ;;  %v943_v49 = vmul.f32 %v3121_v3, %v893_v16  ;;  %v944_v45 = vmul.f32 %v3121_v3, %v894_v42  ;;  %v947_v12 = vadd.f32 %v931_v34, %v899_v14  ;;  %v3123_v14 = vld [vmem:[#allocation36_spill] sm:$0xff] }
  0x98   : > { %v945_v15 = vmul.f32 %v3121_v3, %v895_v19  ;;  %v948_v6 = vadd.f32 %v932_v43, %v900_v9  ;;  %v949_v24 = vadd.f32 %v933_v23, %v901_v7  ;;  %v950_v60 = vadd.f32 %v934_v52, %v902_v31  ;;  %v3124_v9 = vld [vmem:[#allocation30_spill] sm:$0xff]  ;;  %v3125_v31 = vld [vmem:[#allocation31_spill] sm:$0xff] }
  0x99   : > { %v867_v22 = vadd.f32 %v866_v25, %v852_v56  ;;  %v896_v56 = vld [vmem:[#allocation2 + $0x188] sm:$0xff]  ;;  %v953_v63 = vadd.f32 %v937_v51, %v905_v48  ;;  %v954_v8 = vadd.f32 %v938_v18, %v906_v38  ;;  %v955_v2 = vadd.f32 %v939_v54, %v907_v21  ;;  %v3127_v48 = vld [vmem:[#allocation33_spill] sm:$0xff] }
  0x9a   : > { %v946_v32 = vmul.f32 %v3121_v3, %v896_v56  ;;  %v956_v4 = vadd.f32 %v940_v53, %v908_v27  ;;  %v957_v13 = vadd.f32 %v941_v35, %v909_v28  ;;  %v958_v57 = vadd.f32 %v942_v36, %v910_v26  ;;  %v996_v51 = vld [vmem:[#allocation2 + $0xc9] sm:$0xff]  ;;  %v998_v53 = vld [vmem:[#allocation2 + $0xe1] sm:$0xff] }
  0x9b   : > { %v868_v37 = vadd.f32 %v867_v22, %v853_v50  ;;  %v951_v50 = vadd.f32 %v935_v41, %v903_v58  ;;  %v952_v22 = vadd.f32 %v936_v39, %v904_v33  ;;  %v959_v11 = vadd.f32 %v943_v49, %v911_v29  ;;  %v3126_v33 = vld [vmem:[#allocation32_spill] sm:$0xff]  ;;  %v2683_v36 = vld [vmem:[#allocation2 + $0x141] sm:$0xff] }
  0x9c   : > { %v960_v40 = vadd.f32 %v944_v45, %v912_v62  ;;  %v961_v1 = vadd.f32 %v945_v15, %v913_v55  ;;  %v964_v7 = vmul.f32 %v3123_v14, %v3124_v9  ;;  %v965_v58 = vmul.f32 %v3123_v14, %v3125_v31  ;;  %v2685_v49 = vld [vmem:[#allocation2 + $0x151] sm:$0xff] }
  0x9d   : > { %v869_v25 = vadd.f32 %v868_v37, %v854_v10  ;;  %v963_v10 = vmul.f32 %v3123_v14, %v2585_v44  ;;  %v967_v38 = vmul.f32 %v3123_v14, %v3127_v48  ;;  %v968_v21 = vmul.f32 %v3123_v14, %v888_v61 }
  0x9e   : > { %v969_v27 = vmul.f32 %v3123_v14, %v889_v59  ;;  %v970_v28 = vmul.f32 %v3123_v14, %v890_v0  ;;  %v971_v44 = vmul.f32 %v3123_v14, %v891_v47  ;;  %v972_v26 = vmul.f32 %v3123_v14, %v892_v30  ;;  %v995_v30 = vld [vmem:[#allocation2 + $0xc1] sm:$0xff] }
  0x9f   : > { %v2643_v5 = vadd.f32 %v869_v25, %v855_v20  ;;  %v966_v20 = vmul.f32 %v3123_v14, %v3126_v33  ;;  %v973_v29 = vmul.f32 %v3123_v14, %v893_v16  ;;  %v974_v62 = vmul.f32 %v3123_v14, %v894_v42  ;;  %v997_v16 = vld [vmem:[#allocation2 + $0xd9] sm:$0xff] }
  0xa0   : > { %v962_v55 = vadd.f32 %v946_v32, %v914_v17  ;;  %v975_v3 = vmul.f32 %v3123_v14, %v895_v19  ;;  %v976_v34 = vmul.f32 %v3123_v14, %v896_v56  ;;  %v977_v43 = vmul.f32 %v3123_v14, %v897_v46  ;;  %v3128_v46 = vld [vmem:[#allocation29_spill] sm:$0xff] }
  0xa1   : > { %3122 = vst [vmem:[#allocation34_spill] sm:$0xff] %v2643_v5  ;;  %v979_v61 = vadd.f32 %v963_v10, %v947_v12  ;;  %v980_v23 = vadd.f32 %v964_v7, %v948_v6  ;;  %v981_v59 = vadd.f32 %v965_v58, %v949_v24  ;;  %v982_v52 = vadd.f32 %v966_v20, %v950_v60  ;;  %v2666_v6 = vld [vmem:[#allocation2 + $0xf1] sm:$0xff]  ;;  %v2668_v60 = vld [vmem:[#allocation2 + $0xf9] sm:$0xff]  ;;  %v2670_v24 = vld [vmem:[#allocation2 + $0x109] sm:$0xff] }
  0xa2   : > { %v983_v0 = vadd.f32 %v967_v38, %v951_v50  ;;  %v984_v41 = vadd.f32 %v968_v21, %v952_v22  ;;  %v985_v47 = vadd.f32 %v969_v27, %v953_v63  ;;  %v986_v39 = vadd.f32 %v970_v28, %v954_v8  ;;  %v2672_v8 = vld [vmem:[#allocation2 + $0x111] sm:$0xff]  ;;  %v2674_v63 = vld [vmem:[#allocation2 + $0x121] sm:$0xff]  ;;  %v2691_v25 = vld [vmem:[#allocation2 + $0x159] sm:$0xff] }
  0xa3   : > { %v987_v18 = vadd.f32 %v971_v44, %v955_v2  ;;  %v988_v42 = vadd.f32 %v972_v26, %v956_v4  ;;  %v989_v17 = vadd.f32 %v973_v29, %v957_v13  ;;  %v990_v54 = vadd.f32 %v974_v62, %v958_v57  ;;  %v2676_v2 = vld [vmem:[#allocation2 + $0x129] sm:$0xff]  ;;  %v1812_v4 = vld [vmem:[%s2959_s1 + $0x1] ss:$0 sm:$0xff]  ;;  %v2681_v57 = vld [vmem:[#allocation2 + $0x139] sm:$0xff] }
  0xa4   : > { %v991_v37 = vadd.f32 %v975_v3, %v959_v11  ;;  %v992_v19 = vadd.f32 %v976_v34, %v960_v40  ;;  %v993_v56 = vadd.f32 %v977_v43, %v961_v1  ;;  %v994_v35 = vadd.f32 %v3128_v46, %v962_v55  ;;  %v2693_v50 = vld [vmem:[#allocation2 + $0x169] sm:$0xff]  ;;  %v2695_v22 = vld [vmem:[#allocation2 + $0x171] sm:$0xff] }
  0xa5   : > { %v1015_v13 = vmul.f32 %v1812_v4, %v995_v30  ;;  %v1016_v1 = vmul.f32 %v1812_v4, %v996_v51  ;;  %v1017_v40 = vmul.f32 %v1812_v4, %v997_v16  ;;  %v1018_v11 = vmul.f32 %v1812_v4, %v998_v53  ;;  %3129 = vst [vmem:[#allocation10_spill] sm:$0xff] %v2693_v50  ;;  %v3131_v5 = vld [vmem:[#allocation15_spill] sm:$0xff] }
  0xa6   : > { %v1019_v45 = vmul.f32 %v1812_v4, %v2666_v6  ;;  %v1020_v15 = vmul.f32 %v1812_v4, %v2668_v60  ;;  %v1021_v32 = vmul.f32 %v1812_v4, %v2670_v24  ;;  %v1022_v12 = vmul.f32 %v1812_v4, %v2672_v8  ;;  %3130 = vst [vmem:[#allocation11_spill] sm:$0xff] %v2695_v22 }
  0xa7   : > { %v1023_v14 = vmul.f32 %v1812_v4, %v2674_v63  ;;  %v1024_v10 = vmul.f32 %v1812_v4, %v2676_v2  ;;  %v1025_v9 = vmul.f32 %v1812_v4, %v2681_v57  ;;  %v1026_v7 = vmul.f32 %v1812_v4, %v2683_v36 }
  0xa8   : > { %v1027_v31 = vmul.f32 %v1812_v4, %v2685_v49  ;;  %v1028_v58 = vmul.f32 %v1812_v4, %v2691_v25  ;;  %v1029_v33 = vmul.f32 %v1812_v4, %v2693_v50  ;;  %v1030_v20 = vmul.f32 %v1812_v4, %v2695_v22 }
  0xa9   : > { %v1031_v48 = vadd.f32 %v1015_v13, %v979_v61  ;;  %v1032_v38 = vadd.f32 %v1016_v1, %v980_v23  ;;  %v1033_v21 = vadd.f32 %v1017_v40, %v981_v59  ;;  %v1034_v27 = vadd.f32 %v1018_v11, %v982_v52 }
  0xaa   : > { %v1035_v28 = vadd.f32 %v1019_v45, %v983_v0  ;;  %v1036_v44 = vadd.f32 %v1020_v15, %v984_v41  ;;  %v1037_v26 = vadd.f32 %v1021_v32, %v985_v47  ;;  %v1038_v29 = vadd.f32 %v1022_v12, %v986_v39  ;;  %v1011_v47 = vld [vmem:[#allocation2 + $0x181] sm:$0xff]  ;;  %v1012_v39 = vld [vmem:[#allocation2 + $0x189] sm:$0xff] }
  0xab   : > { %v1039_v62 = vadd.f32 %v1023_v14, %v987_v18  ;;  %v1040_v55 = vadd.f32 %v1024_v10, %v988_v42  ;;  %v1041_v3 = vadd.f32 %v1025_v9, %v989_v17  ;;  %v1042_v34 = vadd.f32 %v1026_v7, %v990_v54 }
  0xac   : > { %v1043_v43 = vadd.f32 %v1027_v31, %v991_v37  ;;  %v1044_v30 = vadd.f32 %v1028_v58, %v992_v19  ;;  %v1045_v51 = vadd.f32 %v1029_v33, %v993_v56  ;;  %v1046_v46 = vadd.f32 %v1030_v20, %v994_v35  ;;  %v3132_v54 = vld [vmem:[#allocation10_spill] sm:$0xff]  ;;  %v3133_v33 = vld [vmem:[#allocation16_spill] sm:$0xff] }
  0xad   : > { %v1047_v50 = vmul.f32 %v3131_v5, %v997_v16  ;;  %v1048_v4 = vmul.f32 %v3131_v5, %v998_v53  ;;  %v1049_v61 = vmul.f32 %v3131_v5, %v2666_v6  ;;  %v1050_v23 = vmul.f32 %v3131_v5, %v2668_v60 }
  0xae   : > { %v1051_v59 = vmul.f32 %v3131_v5, %v2670_v24  ;;  %v1052_v52 = vmul.f32 %v3131_v5, %v2672_v8  ;;  %v1053_v0 = vmul.f32 %v3131_v5, %v2674_v63  ;;  %v1054_v41 = vmul.f32 %v3131_v5, %v2676_v2 }
  0xaf   : > { %v1055_v16 = vmul.f32 %v3131_v5, %v2681_v57  ;;  %v1056_v18 = vmul.f32 %v3131_v5, %v2683_v36  ;;  %v1057_v42 = vmul.f32 %v3131_v5, %v2685_v49  ;;  %v1058_v17 = vmul.f32 %v3131_v5, %v2691_v25 }
  0xb0   : > { %v1059_v53 = vmul.f32 %v3131_v5, %v3132_v54  ;;  %v1060_v37 = vmul.f32 %v3131_v5, %v2695_v22  ;;  %v1061_v19 = vmul.f32 %v3131_v5, %v1011_v47  ;;  %v1062_v56 = vmul.f32 %v3131_v5, %v1012_v39 }
  0xb1   : > { %v1063_v35 = vadd.f32 %v1047_v50, %v1031_v48  ;;  %v1064_v13 = vadd.f32 %v1048_v4, %v1032_v38  ;;  %v1065_v1 = vadd.f32 %v1049_v61, %v1033_v21  ;;  %v1066_v40 = vadd.f32 %v1050_v23, %v1034_v27  ;;  %v1013_v38 = vld [vmem:[#allocation2 + $0x199] sm:$0xff]  ;;  %v1014_v21 = vld [vmem:[#allocation2 + $0x1a1] sm:$0xff]  ;;  %v3138_v4 = vld [vmem:[#allocation24_spill] sm:$0xff] }
  0xb2   : > { %v1067_v11 = vadd.f32 %v1051_v59, %v1035_v28  ;;  %v1068_v45 = vadd.f32 %v1052_v52, %v1036_v44  ;;  %v1069_v15 = vadd.f32 %v1053_v0, %v1037_v26  ;;  %v1070_v32 = vadd.f32 %v1054_v41, %v1038_v29  ;;  %v3134_v26 = vld [vmem:[#allocation11_spill] sm:$0xff]  ;;  %v1115_v41 = vld [vmem:[#allocation2 + $0xf2] sm:$0xff] }
  0xb3   : > { %v1071_v12 = vadd.f32 %v1055_v16, %v1039_v62  ;;  %v1072_v14 = vadd.f32 %v1056_v18, %v1040_v55  ;;  %v1073_v10 = vadd.f32 %v1057_v42, %v1041_v3  ;;  %v1074_v9 = vadd.f32 %v1058_v17, %v1042_v34  ;;  %v3135_v62 = vld [vmem:[#allocation22_spill] sm:$0xff]  ;;  %v3136_v55 = vld [vmem:[#allocation17_spill] sm:$0xff]  ;;  %v3140_v42 = vld [vmem:[#allocation19_spill] sm:$0xff] }
  0xb4   : > { %v1075_v7 = vadd.f32 %v1059_v53, %v1043_v43  ;;  %v1076_v31 = vadd.f32 %v1060_v37, %v1044_v30  ;;  %v1077_v58 = vadd.f32 %v1061_v19, %v1045_v51  ;;  %v1079_v20 = vmul.f32 %v3133_v33, %v2666_v6 }
  0xb5   : > { %v1078_v22 = vadd.f32 %v1062_v56, %v1046_v46  ;;  %v1080_v5 = vmul.f32 %v3133_v33, %v2668_v60  ;;  %v1081_v50 = vmul.f32 %v3133_v33, %v2670_v24  ;;  %v1082_v48 = vmul.f32 %v3133_v33, %v2672_v8 }
  0xb6   : > { %v1083_v27 = vmul.f32 %v3133_v33, %v2674_v63  ;;  %v1084_v28 = vmul.f32 %v3133_v33, %v2676_v2  ;;  %v1085_v6 = vmul.f32 %v3133_v33, %v2681_v57  ;;  %v1086_v60 = vmul.f32 %v3133_v33, %v2683_v36 }
  0xb7   : > { %v1087_v24 = vmul.f32 %v3133_v33, %v2685_v49  ;;  %v1088_v8 = vmul.f32 %v3133_v33, %v2691_v25  ;;  %v1089_v44 = vmul.f32 %v3133_v33, %v3132_v54  ;;  %v1090_v63 = vmul.f32 %v3133_v33, %v3134_v26  ;;  %v3137_v25 = vld [vmem:[#allocation23_spill] sm:$0xff] }
  0xb8   : > { %v1091_v2 = vmul.f32 %v3133_v33, %v1011_v47  ;;  %v1092_v29 = vmul.f32 %v3133_v33, %v1012_v39  ;;  %v1095_v57 = vadd.f32 %v1079_v20, %v1063_v35  ;;  %v1131_v36 = vmul.f32 %v3136_v55, %v3135_v62  ;;  %v3139_v39 = vld [vmem:[#allocation28_spill] sm:$0xff]  ;;  %v1116_v35 = vld [vmem:[#allocation2 + $0xfa] sm:$0xff]  ;;  %v1122_v26 = vld [vmem:[#allocation2 + $0x142] sm:$0xff] }
  0xb9   : > { %v1093_v3 = vmul.f32 %v3133_v33, %v1013_v38  ;;  %v1094_v49 = vmul.f32 %v3133_v33, %v1014_v21  ;;  %v1096_v34 = vadd.f32 %v1080_v5, %v1064_v13  ;;  %v1132_v43 = vmul.f32 %v3136_v55, %v3137_v25  ;;  %v3141_v33 = vld [vmem:[#allocation20_spill] sm:$0xff]  ;;  %v1121_v38 = vld [vmem:[#allocation2 + $0x13a] sm:$0xff] }
  0xba   : > { %v1097_v30 = vadd.f32 %v1081_v50, %v1065_v1  ;;  %v1098_v51 = vadd.f32 %v1082_v48, %v1066_v40  ;;  %v1099_v46 = vadd.f32 %v1083_v27, %v1067_v11  ;;  %v1133_v61 = vmul.f32 %v3136_v55, %v3138_v4  ;;  %v1119_v48 = vld [vmem:[#allocation2 + $0x122] sm:$0xff]  ;;  %v1124_v25 = vld [vmem:[#allocation2 + $0x15a] sm:$0xff] }
  0xbb   : > { %v1100_v23 = vadd.f32 %v1084_v28, %v1068_v45  ;;  %v1101_v59 = vadd.f32 %v1085_v6, %v1069_v15  ;;  %v1102_v52 = vadd.f32 %v1086_v60, %v1070_v32  ;;  %v2767_v0 = vadd.f32 %v1087_v24, %v1071_v12  ;;  %v1117_v32 = vld [vmem:[#allocation2 + $0x10a] sm:$0xff] }
  0xbc   : > { %v2769_v47 = vadd.f32 %v1088_v8, %v1072_v14  ;;  %v1134_v16 = vmul.f32 %v3136_v55, %v3139_v39  ;;  %v1147_v18 = vadd.f32 %v1131_v36, %v1095_v57  ;;  %v1163_v17 = vmul.f32 %v3140_v42, %v3138_v4  ;;  %v1118_v14 = vld [vmem:[#allocation2 + $0x112] sm:$0xff] }
  0xbd   : > { %v2775_v54 = vadd.f32 %v1089_v44, %v1073_v10  ;;  %v2777_v53 = vadd.f32 %v1090_v63, %v1074_v9  ;;  %v1148_v37 = vadd.f32 %v1132_v43, %v1096_v34  ;;  %v1164_v19 = vmul.f32 %v3140_v42, %v3139_v39  ;;  %v1123_v63 = vld [vmem:[#allocation2 + $0x152] sm:$0xff]  ;;  %v1125_v43 = vld [vmem:[#allocation2 + $0x16a] sm:$0xff] }
  0xbe   : > { %v2781_v56 = vadd.f32 %v1091_v2, %v1075_v7  ;;  %v1135_v13 = vmul.f32 %v3136_v55, %v1115_v41  ;;  %v1149_v1 = vadd.f32 %v1133_v61, %v1097_v30  ;;  %v1165_v40 = vmul.f32 %v3140_v42, %v1115_v41 }
  0xbf   : > { %v2785_v11 = vadd.f32 %v1092_v29, %v1076_v31  ;;  %v2787_v45 = vadd.f32 %v1093_v3, %v1077_v58  ;;  %v2789_v15 = vadd.f32 %v1094_v49, %v1078_v22  ;;  %v1136_v12 = vmul.f32 %v3136_v55, %v1116_v35  ;;  %v1120_v22 = vld [vmem:[#allocation2 + $0x12a] sm:$0xff] }
  0xc0   : > { %v1150_v10 = vadd.f32 %v1134_v16, %v1098_v51  ;;  %v1166_v9 = vmul.f32 %v3140_v42, %v1116_v35  ;;  %v1179_v7 = vadd.f32 %v1163_v17, %v1147_v18  ;;  %v1195_v20 = vmul.f32 %v3141_v33, %v1115_v41  ;;  %v1126_v16 = vld [vmem:[#allocation2 + $0x172] sm:$0xff] }
  0xc1   : > { %v1137_v5 = vmul.f32 %v3136_v55, %v1117_v32  ;;  %v1138_v50 = vmul.f32 %v3136_v55, %v1118_v14  ;;  %v1180_v31 = vadd.f32 %v1164_v19, %v1148_v37  ;;  %v1196_v58 = vmul.f32 %v3141_v33, %v1116_v35  ;;  %v3142_v37 = vld [vmem:[#allocation21_spill] sm:$0xff] }
  0xc2   : > { %v1151_v21 = vadd.f32 %v1135_v13, %v1099_v46  ;;  %v1167_v27 = vmul.f32 %v3140_v42, %v1117_v32  ;;  %v1181_v28 = vadd.f32 %v1165_v40, %v1149_v1  ;;  %v1197_v6 = vmul.f32 %v3141_v33, %v1117_v32 }
  0xc3   : > { %v1139_v60 = vmul.f32 %v3136_v55, %v1119_v48  ;;  %v1140_v24 = vmul.f32 %v3136_v55, %v1120_v22  ;;  %v1141_v8 = vmul.f32 %v3136_v55, %v1121_v38  ;;  %v1152_v44 = vadd.f32 %v1136_v12, %v1100_v23 }
  0xc4   : > { %v1168_v2 = vmul.f32 %v3140_v42, %v1118_v14  ;;  %v1182_v29 = vadd.f32 %v1166_v9, %v1150_v10  ;;  %v1198_v57 = vmul.f32 %v3141_v33, %v1118_v14  ;;  %v1211_v62 = vadd.f32 %v1195_v20, %v1179_v7 }
  0xc5   : > { %v1142_v36 = vmul.f32 %v3136_v55, %v1122_v26  ;;  %v1143_v3 = vmul.f32 %v3136_v55, %v1123_v63  ;;  %v1153_v49 = vadd.f32 %v1137_v5, %v1101_v59  ;;  %v1212_v34 = vadd.f32 %v1196_v58, %v1180_v31 }
  0xc6   : > { %v1169_v30 = vmul.f32 %v3140_v42, %v1119_v48  ;;  %v1183_v51 = vadd.f32 %v1167_v27, %v1151_v21  ;;  %v1199_v46 = vmul.f32 %v3141_v33, %v1119_v48  ;;  %v1213_v4 = vadd.f32 %v1197_v6, %v1181_v28  ;;  %v1371_v27 = vld [vmem:[%s2962_s4] sm:$0xff]  ;;  %v1372_v28 = vld [vmem:[%s2962_s4 + $0x8] sm:$0xff] }
  0xc7   : > { %v1144_v61 = vmul.f32 %v3136_v55, %v1124_v25  ;;  %v1145_v23 = vmul.f32 %v3136_v55, %v1125_v43  ;;  %v1154_v41 = vadd.f32 %v1138_v50, %v1102_v52  ;;  %v1170_v39 = vmul.f32 %v3140_v42, %v1120_v22 }
  0xc8   : > { %v1184_v18 = vadd.f32 %v1168_v2, %v1152_v44  ;;  %v1200_v59 = vmul.f32 %v3141_v33, %v1120_v22  ;;  %v1214_v17 = vadd.f32 %v1198_v57, %v1182_v29  ;;  %v1227_v19 = vadd.f32 %v3142_v37, %v1211_v62 }
  0xc9   : > { %v2814_v35 = vmul.f32 %v3136_v55, %v1126_v16  ;;  %v1155_v13 = vadd.f32 %v1139_v60, %v2767_v0  ;;  %v1171_v1 = vmul.f32 %v3140_v42, %v1121_v38  ;;  %v1228_v40 = vadd.f32 %v3142_v37, %v1212_v34 }
  0xca   : > { %v1185_v32 = vadd.f32 %v1169_v30, %v1153_v49  ;;  %v1201_v52 = vmul.f32 %v3141_v33, %v1121_v38  ;;  %v1215_v12 = vadd.f32 %v1199_v46, %v1183_v51  ;;  %v1229_v14 = vadd.f32 %v3142_v37, %v1213_v4  ;;  %v1128_v4 = vld [vmem:[#allocation2 + $0x18a] sm:$0xff] }
  0xcb   : > { %v1156_v10 = vadd.f32 %v1140_v24, %v2769_v47  ;;  %v1157_v9 = vadd.f32 %v1141_v8, %v2775_v54  ;;  %v1172_v7 = vmul.f32 %v3140_v42, %v1122_v26  ;;  %v1186_v55 = vadd.f32 %v1170_v39, %v1154_v41 }
  0xcc   : > { %v1202_v20 = vmul.f32 %v3141_v33, %v1122_v26  ;;  %v1216_v0 = vadd.f32 %v1200_v59, %v1184_v18  ;;  %v1230_v5 = vadd.f32 %v3142_v37, %v1214_v17  ;;  %v1243_v50 = vmax.f32 %v1227_v19, 0.0 }
  0xcd   : > { %v1158_v31 = vadd.f32 %v1142_v36, %v2777_v53  ;;  %v1173_v58 = vmul.f32 %v3140_v42, %v1123_v63  ;;  %v1187_v48 = vadd.f32 %v1171_v1, %v1155_v13  ;;  %v1244_v22 = vmax.f32 %v1228_v40, 0.0  ;;  %v1127_v36 = vld [vmem:[#allocation2 + $0x182] sm:$0xff] }
  0xce   : > { %v1203_v38 = vmul.f32 %v3141_v33, %v1123_v63  ;;  %v1217_v47 = vadd.f32 %v1201_v52, %v1185_v32  ;;  %v1231_v54 = vadd.f32 %v3142_v37, %v1215_v12  ;;  %v1245_v21 = vmax.f32 %v1229_v14, 0.0 }
  0xcf   : > { %v1159_v53 = vadd.f32 %v1143_v3, %v2781_v56  ;;  %v1174_v6 = vmul.f32 %v3140_v42, %v1124_v25  ;;  %v1188_v60 = vadd.f32 %v1172_v7, %v1156_v10  ;;  %v1204_v24 = vmul.f32 %v3141_v33, %v1124_v25 }
  0xd0   : > { %v1218_v8 = vadd.f32 %v1202_v20, %v1186_v55  ;;  %v1232_v44 = vadd.f32 %v3142_v37, %v1216_v0  ;;  %v1246_v26 = vmax.f32 %v1230_v5, 0.0  ;;  %v1259_v63 = vadd.f32 %v1244_v22, %v1243_v50 }
  0xd1   : > { %v1175_v2 = vmul.f32 %v3140_v42, %v1125_v43  ;;  %v1189_v29 = vadd.f32 %v1173_v58, %v1157_v9  ;;  %v1205_v57 = vmul.f32 %v3141_v33, %v1125_v43  ;;  %v1759_v62 = vpack.c.bf16 %v1372_v28, %v1371_v27 }
  0xd2   : > { %v1219_v49 = vadd.f32 %v1203_v38, %v1187_v48  ;;  %v1233_v56 = vadd.f32 %v3142_v37, %v1217_v47  ;;  %v1247_v3 = vmax.f32 %v1231_v54, 0.0  ;;  %v1260_v34 = vadd.f32 %v1259_v63, %v1245_v21 }
  0xd3   : > { %v1160_v30 = vadd.f32 %v1144_v61, %v2785_v11  ;;  %v1176_v25 = vmul.f32 %v3140_v42, %v1126_v16  ;;  %v1190_v51 = vadd.f32 %v1174_v6, %v1158_v31  ;;  %v1206_v46 = vmul.f32 %v3141_v33, %v1126_v16  ;;  %1760 = vmatpush3.bf16.msra.mxu1 %v1759_v62  ;;  %v1129_v61 = vld [vmem:[#allocation2 + $0x19a] sm:$0xff] }
  0xd4   : > { %v1220_v41 = vadd.f32 %v1204_v24, %v1188_v60  ;;  %v1234_v39 = vadd.f32 %v3142_v37, %v1218_v8  ;;  %v1248_v43 = vmax.f32 %v1232_v44, 0.0  ;;  %v1261_v18 = vadd.f32 %v1260_v34, %v1246_v26  ;;  %v3144_v24 = vld [vmem:[#allocation34_spill] sm:$0xff] }
  0xd5   : > { %v3143_v59 = vmov 0.0|0.0   ;;  %v1161_v17 = vadd.f32 %v1145_v23, %v2787_v45  ;;  %v1177_v19 = vmul.f32 %v3140_v42, %v1127_v36  ;;  %v1191_v13 = vadd.f32 %v1175_v2, %v1159_v53  ;;  %v1130_v45 = vld [vmem:[#allocation2 + $0x1a2] sm:$0xff] }
  0xd6   : > { %1761 = vmatprep.subr.bf16.mxu1 %v3143_v59  ;;  %v1207_v11 = vmul.f32 %v3141_v33, %v1127_v36  ;;  %v1221_v1 = vadd.f32 %v1205_v57, %v1189_v29  ;;  %v1235_v16 = vadd.f32 %v3142_v37, %v1219_v49  ;;  %v1249_v40 = vmax.f32 %v1233_v56, 0.0 }
  0xd7   : > { %v1262_v32 = vadd.f32 %v1261_v18, %v1247_v3  ;;  %v1162_v52 = vadd.f32 %v2814_v35, %v2789_v15  ;;  %v1178_v12 = vmul.f32 %v3140_v42, %v1128_v4  ;;  %v1192_v14 = vadd.f32 %v1176_v25, %v1160_v30 }
  0xd8   : > { %v1208_v10 = vmul.f32 %v3141_v33, %v1128_v4  ;;  %v1222_v23 = vadd.f32 %v1206_v46, %v1190_v51  ;;  %v1236_v9 = vadd.f32 %v3142_v37, %v1220_v41  ;;  %v1250_v7 = vmax.f32 %v1234_v39, 0.0 }
  0xd9   : > { %v1263_v55 = vadd.f32 %v1262_v32, %v1248_v43  ;;  %v1193_v20 = vadd.f32 %v1177_v19, %v1161_v17  ;;  %v1209_v0 = vmul.f32 %v3141_v33, %v1129_v61  ;;  %v1223_v5 = vadd.f32 %v1207_v11, %v1191_v13  ;;  %v1373_v19 = vld [vmem:[%s2962_s4 + $0x10] sm:$0xff]  ;;  %v1374_v13 = vld [vmem:[%s2962_s4 + $0x18] sm:$0xff]  ;;  %v1298_v61 = vld [vmem:[%s2961_s3] sm:$0x1] }
  0xda   : > { %v1237_v50 = vadd.f32 %v3142_v37, %v1221_v1  ;;  %v1251_v31 = vmax.f32 %v1235_v16, 0.0  ;;  %v1194_v15 = vadd.f32 %v1178_v12, %v1162_v52  ;;  %v1210_v42 = vmul.f32 %v3141_v33, %v1130_v45 }
  0xdb   : > { %v1264_v58 = vadd.f32 %v1263_v55, %v1249_v40  ;;  %v1224_v35 = vadd.f32 %v1208_v10, %v1192_v14  ;;  %v1238_v48 = vadd.f32 %v3142_v37, %v1222_v23  ;;  %v1252_v22 = vmax.f32 %v1236_v9, 0.0 }
  0xdc   : > { %v1225_v47 = vadd.f32 %v1209_v0, %v1193_v20  ;;  %v1239_v54 = vadd.f32 %v3142_v37, %v1223_v5  ;;  %v1253_v21 = vmax.f32 %v1237_v50, 0.0  ;;  %v1226_v28 = vadd.f32 %v1210_v42, %v1194_v15 }
  0xdd   : > { %v1265_v38 = vadd.f32 %v1264_v58, %v1250_v7  ;;  %v1240_v53 = vadd.f32 %v3142_v37, %v1224_v35  ;;  %v1254_v6 = vmax.f32 %v1238_v48, 0.0  ;;  %v871_v8 = vrot.slane %v3144_v24, 4 }
  0xde   : > { %v1241_v44 = vadd.f32 %v3142_v37, %v1225_v47  ;;  %v1255_v33 = vmax.f32 %v1239_v54, 0.0  ;;  %v1242_v63 = vadd.f32 %v3142_v37, %v1226_v28  ;;  %v1762_v11 = vpack.c.bf16 %v1374_v13, %v1373_v19 }
  0xdf   : > { %v1266_v27 = vadd.f32 %v1265_v38, %v1251_v31  ;;  %v1256_v2 = vmax.f32 %v1240_v53, 0.0  ;;  %v872_v57 = vadd.f32 %v871_v8, %v3144_v24 }
  0xe0   : > { %v1257_v62 = vmax.f32 %v1241_v44, 0.0  ;;  %v1258_v49 = vmax.f32 %v1242_v63, 0.0  ;;  %1763 = vmatpush3.bf16.msra.mxu1 %v1762_v11 }
  0xe1   : > { %v1267_v60 = vadd.f32 %v1266_v27, %v1252_v22  ;;  %v873_v3 = vrot.slane %v872_v57, 2 }
  0xe3   : > { %v1268_v26 = vadd.f32 %v1267_v60, %v1253_v21  ;;  %v874_v25 = vadd.f32 %v873_v3, %v872_v57 }
  0xe5   : > { %v1269_v29 = vadd.f32 %v1268_v26, %v1254_v6  ;;  %v875_v4 = vrot.slane %v874_v25, 1 }
  0xe7   : > { %v1270_v36 = vadd.f32 %v1269_v29, %v1255_v33  ;;  %v876_v43 = vadd.f32 %v875_v4, %v874_v25 }
  0xe9   : > { %v1271_v56 = vadd.f32 %v1270_v36, %v1256_v2 }
  0xeb   : > { %v1272_v34 = vadd.f32 %v1271_v56, %v1257_v62 }
  0xed   : > { %v1273_v30 = vadd.f32 %v1272_v34, %v1258_v49 }
  0xef   : > { %v1274_v51 = vrot.slane %v1273_v30, 4 }
  0xf1   : > { %v1275_v46 = vadd.f32 %v1274_v51, %v1273_v30 }
  0xf3   : > { %v1276_v41 = vrot.slane %v1275_v46, 2 }
  0xf5   : > { %v1277_v39 = vadd.f32 %v1276_v41, %v1275_v46 }
  0xf7   : > { %v1278_v37 = vrot.slane %v1277_v39, 1 }
  0xf9   : > { %v1279_v18 = vadd.f32 %v1278_v37, %v1277_v39 }
  0xfb   : > { %v1280_v59 = vadd.f32 %v1279_v18, %v876_v43 }
  0xfd   : > { %v1281_v17 = vmul.f32 0.00390625, %v1280_v59 }
  0xff   : > { %1721 = vmatmul.mubr.f32.vlgmr.msra.gmra.mrb[0].mxu0 %v1281_v17 }
 0x1d2   : > { %v1365_v1 = vpop.f32.mrb[0].mxu0 }
 0x1d3   : > { %v1366_v16 = vadd.f32 %v1365_v1, %v1298_v61  ;;  %v1722_v40 = vpop.f32.mrb[1].mxu0 }
 0x1d5   : > { %1732 = vmatmul.mubr.msk.f32.vlgmr.msra.gmra.mrb[0].mxu1 %vm1376_vm1, %v1366_v16  ;;  %1370 = vst.msk [vmem:[%s274_s13] sm:$0x1] %vm1369_vm2, %v1366_v16 }
 0x1d6   : > { %1826 = shalt.err (!%p1823_p3)
}
 0x1d7   : > { %s1827_s8 = scalar_lea.hbm %s2886_s17, 16  ;;  %s1831_s15 = scalar_lea.hbm %s2964_s6, 32 }
 0x1d8   : > { %p1828_p4 = scmp.ne.s32.totalorder %s2886_s17, %s1827_s8  ;;  %p1832_p9 = scmp.lt.u32.totalorder %s2886_s17, %s2964_s6 }
 0x1d9   : > { %p1833_p10 = scmp.lt.u32.totalorder %s1831_s15, %s1827_s8  ;;  %p1835_p12 = scmp.lt.u32.totalorder %s1827_s8, %s2886_s17 }
 0x1da   : > { %p1829_p7 = pnand %p1828_p4, %p1992_p5 }
 0x1db   : > { %p1834_p11 = por %p1833_p10, %p1832_p9 }
 0x1dc   : > { %p1830_p8 = pneg %p1829_p7 }
 0x1dd   : > { %p1836_p13 = por %p1835_p12, %p1834_p11 }
 0x1df   : > { %p1837_p0 = pnand %p1836_p13, %p1830_p8 }
 0x1e1   : > { %1840 = shalt.err (!%p1837_p0)
}
 0x1e2   : > { %1764 = dma.vmem_to_hbm [thread:$0]  (%p1992_p5), %s1470_s18, 16, %s2886_s17, %s1453_s19   ;;  %v1375_v32 = vld [vmem:[%s2963_s5] sm:$0x1]  ;;  %vm1450_vm3 = vcmask 49152  }
 0x1e3   : > { %s280_s29 = scalar_lea.vmem [#allocation5], %s2874_s23  ;;  %s2915_s15 = scalar_lea.hbm %s2965_s7, %s1582_s14 }
 0x1e4   : > { %s1482_s9 = sshll.u32 %s280_s29, 4  ;;  %s1457_s17 = scalar_lea.sflag [#allocation6], %s2874_s23  ;;  %s2917_s9 = int_to_ptr.vmem [resolvable:$true] %s1482_s9 }
 0x1e5   : > { %s1841_s18 = scalar_lea.vmem %s2917_s9, 16  ;;  %s1913_s19 = smov [#allocation5]  }
 0x1e6   : > { %p1842_p1 = scmp.ne.s32.totalorder %s2917_s9, %s1841_s18  ;;  %s1845_s16 = sshll.u32 %s1913_s19, 4  ;;  %s1846_s16 = int_to_ptr.vmem [resolvable:$false] %s1845_s16 }
 0x1e7   : > { %s1847_s28 = scalar_lea.vmem %s1846_s16, 32  ;;  %p1848_p4 = scmp.lt.s32.totalorder %s2917_s9, %s1846_s16 }
 0x1e8   : > { %p1843_p2 = pnand %p1842_p1, %p1992_p5  ;;  %p1849_p7 = scmp.lt.s32.totalorder %s1847_s28, %s1841_s18 }
 0x1ea   : > { %p1844_p3 = pneg %p1843_p2  ;;  %p1850_p8 = por %p1849_p7, %p1848_p4 }
 0x1ec   : > { %p1851_p9 = pnand %p1850_p8, %p1844_p3 }
 0x2a8   : > { %v1446_v52 = vpop.f32.mrb[0].mxu1 }
 0x2a9   : > { %v1447_v12 = vadd.f32 %v1446_v52, %v1375_v32  ;;  %v1733_v14 = vpop.f32.mrb[1].mxu1 }
 0x2ab   : > { %1451 = vst.msk [vmem:[%s280_s29] sm:$0x1] %vm1450_vm3, %v1447_v12 }
 0x2ac   : > { %1854 = shalt.err (!%p1851_p9)
}
 0x2ad   : > { %s1855_s23 = scalar_lea.hbm %s2915_s15, 16  ;;  %s1859_s20 = scalar_lea.hbm %s2965_s7, 32 }
 0x2ae   : > { %p1856_p10 = scmp.ne.s32.totalorder %s2915_s15, %s1855_s23  ;;  %p1860_p13 = scmp.lt.u32.totalorder %s2915_s15, %s2965_s7 }
 0x2af   : > { %p1861_p0 = scmp.lt.u32.totalorder %s1859_s20, %s1855_s23  ;;  %p1863_p2 = scmp.lt.u32.totalorder %s1855_s23, %s2915_s15 }
 0x2b0   : > { %p1857_p11 = pnand %p1856_p10, %p1992_p5 }
 0x2b1   : > { %p1862_p1 = por %p1861_p0, %p1860_p13 }
 0x2b2   : > { %p1858_p12 = pneg %p1857_p11 }
 0x2b3   : > { %p1864_p3 = por %p1863_p2, %p1862_p1 }
 0x2b5   : > { %p1865_p4 = pnand %p1864_p3, %p1858_p12 }
 0x2b7   : > { %1868 = shalt.err (!%p1865_p4)
}
 0x2b8   : > { %1765 = dma.vmem_to_hbm [thread:$0]  (%p1992_p5), %s2917_s9, 16, %s2915_s15, %s1457_s17  }
 0x2b9 PF: > { %p1775_p7 = scmp.ge.s32.totalorder %s1907_s27, 2  ;;  %s1494_s8 = sand.u32 1, %s1895_s24  }
 0x2ba   : > { %s1495_s13 = scalar_lea.sflag [#allocation4], %s1494_s8 }
 0x2bb   : > { %p1769_p8 = pnand %p1775_p7, %p1996_p6 }
 0x2bd   : > { %1886 = dma.done.wait (!%p1769_p8), %s1495_s13, 16  }
 0x2be   : > { %1888 = vsyncadd (!%p1769_p8), %s1495_s13, 4294967280  ;;  %s1503_s18 = scalar_lea.sflag [#allocation6], %s1494_s8 }
 0x2bf   : > { %1890 = dma.done.wait (!%p1769_p8), %s1503_s18, 16  }
 0x2c0   : > { %1892 = vsyncadd (!%p1769_p8), %s1503_s18, 4294967280  ;;  %p21_p5 = scmp.ge.s32.totalorder %s1979_s30, 4   ;;  %s3145_s24 = smov %s1899_s25 }
 0x2c1   : > { %s3146_s25 = smov %s1903_s26  ;;  %s3147_s26 = smov %s1990_s10 }
 0x2c2   : > { %s3148_s27 = smov %s1979_s30  ;;  %23 = sbr.rel (!%p21_p5) target bundleno = 5 (0x5), region = 99 }
 0x2c9   :  { %1507 = vsyncpa [#allocation4], 1 }
 0x2ca   :  { %1509 = vsyncpa [#allocation4 + $0x1], 1 }
 0x2cb   :  { %1510 = vsyncpa [#allocation6], 1 }
 0x2cc   :  { %1512 = vsyncpa [#allocation6 + $0x1], 1 }

// kernel: cdfenet_forward.3
= control target key start
LH: loop header
LB: loop body
LE: loop exit
PB: predicated region body
PF: predicated region fallthrough
CT: control target
= control target key end

     0   :  { %s4378_s15 = smov 0   ;;  %s5183_s0 = inlined_call_operand.vmem [shape: bf16[2,16,16,8], index: 0, kind: input, shape index: {}]   ;;  %s5184_s1 = inlined_call_operand.vmem [shape: bf16[9,8,128], index: 1, kind: input, shape index: {}]   ;;  %s5185_s2 = inlined_call_operand.vmem [shape: f32[8,128], index: 2, kind: input, shape index: {}]   ;;  %s5186_s3 = inlined_call_operand.vmem [shape: bf16[128,128], index: 3, kind: input, shape index: {}]   ;;  %s5187_s4 = inlined_call_operand.vmem [shape: bf16[2,256,128], index: 4, kind: output, shape index: {}]  }
   0x1 LB: > { %s3116_s16 = sadd.s32 4294967295, %s4350_s15   ;;  %p3120_p0 = scmp.ge.s32.totalorder %s4350_s15, 1  ;;  %s4350_s15 = sphi %s4378_s15, %s14_s15  }
   0x2   : > { %p162_p1 = scmp.lt.s32.totalorder %s4350_s15, 3 }
   0x4   : > { %p163_p2 = pnand %p3120_p0, %p162_p1 }
   0x5   : > { %vm447_vm0 = vcmask (!%p163_p2), 1043456   ;;  %v3192_v0 = vld [vmem:[%s5184_s1 + $0x10] sm:$0xf] (!%p163_p2)  ;;  %v3125_v1 = vld [vmem:[%s5184_s1 + $0xc] sm:$0xf] (!%p163_p2)  ;;  %p188_p3 = scmp.lt.s32.totalorder (!%p163_p2), %s3116_s16, 1 }
   0x6   : > { %166 = sbr.rel (%p163_p2) target bundleno = 808 (0x328), region = 36  ;;  %4322 = vmatprep.subr.msk.bf16.mxu0 (!%p163_p2), %vm447_vm0, %v3192_v0  ;;  %4318 = vmatprep.subr.msk.bf16.mxu1 (!%p163_p2), %vm447_vm0, %v3125_v1  ;;  %v1286_v2 = vsel (!%p163_p2), %vm447_vm0, %v3192_v0, 0  ;;  %v449_v3 = vsel (!%p163_p2), %vm447_vm0, %v3125_v1, 0  ;;  %vm199_vm1 = vcmask (!%p163_p2), 64512   ;;  %v4399_v4 = vld [vmem:[%s5184_s1 + $0x1c] sm:$0xf] (!%p163_p2) }
   0x7   : > { %3845 = vmatpush3.bf16.msra.mxu0 (!%p163_p2), %v1286_v2  ;;  %3709 = vmatpush3.bf16.msra.mxu1 (!%p163_p2), %v449_v3  ;;  %vm208_vm2 = vcmask (!%p163_p2), 57344   ;;  %v4352_v5 = vmov (!%p163_p2), 0.0   ;;  %v4410_v6 = vld [vmem:[%s5184_s1] sm:$0xf] (!%p163_p2)  ;;  %vm202_vm3 = vcmask (!%p163_p2), 58368  }
   0x8   : > { %200 = vst.msk [vmem:[#allocation2] sm:$0xff] (!%p163_p2), %vm199_vm1, %v4352_v5  ;;  %201 = vst.msk [vmem:[#allocation2 + $0x8] sm:$0xff] (!%p163_p2), %vm199_vm1, %v4352_v5  ;;  %4323 = vmatprep.subr.msk.bf16.mxu0 (!%p163_p2), %vm447_vm0, %v4399_v4  ;;  %4319 = vmatprep.subr.msk.bf16.mxu1 (!%p163_p2), %vm447_vm0, %v4410_v6  ;;  %v616_v3 = vsel (!%p163_p2), %vm447_vm0, %v4410_v6, 0 }
   0x9   : > { %205 = vst.msk [vmem:[#allocation2 + $0x198] sm:$0xff] (!%p163_p2), %vm199_vm1, %v4352_v5  ;;  %206 = vst.msk [vmem:[#allocation2 + $0x1a0] sm:$0xff] (!%p163_p2), %vm199_vm1, %v4352_v5 }
   0xa   : > { %210 = vst.msk [vmem:[#allocation2 + $0x18] sm:$0x1] (!%p163_p2), %vm208_vm2, %v4352_v5  ;;  %211 = vst.msk [vmem:[#allocation2 + $0x30] sm:$0x1] (!%p163_p2), %vm208_vm2, %v4352_v5 }
   0xb   : > { %212 = vst.msk [vmem:[#allocation2 + $0x48] sm:$0x1] (!%p163_p2), %vm208_vm2, %v4352_v5  ;;  %213 = vst.msk [vmem:[#allocation2 + $0x60] sm:$0x1] (!%p163_p2), %vm208_vm2, %v4352_v5 }
   0xc   : > { %214 = vst.msk [vmem:[#allocation2 + $0x78] sm:$0x1] (!%p163_p2), %vm208_vm2, %v4352_v5  ;;  %215 = vst.msk [vmem:[#allocation2 + $0x90] sm:$0x1] (!%p163_p2), %vm208_vm2, %v4352_v5 }
   0xd   : > { %s5189_s16 = smov (!%p188_p3, %s3116_s16), 1  ;;  %216 = vst.msk [vmem:[#allocation2 + $0xa8] sm:$0x1] %vm208_vm2, %v4352_v5  ;;  %217 = vst.msk [vmem:[#allocation2 + $0xc0] sm:$0x1] %vm208_vm2, %v4352_v5 }
   0xe   : > { %218 = vst.msk [vmem:[#allocation2 + $0xd8] sm:$0x1] %vm208_vm2, %v4352_v5  ;;  %219 = vst.msk [vmem:[#allocation2 + $0xf0] sm:$0x1] %vm208_vm2, %v4352_v5  ;;  %s3323_s25 = sshll.u32 %s5189_s16, 7 }
   0xf   : > { %220 = vst.msk [vmem:[#allocation2 + $0x108] sm:$0x1] %vm208_vm2, %v4352_v5  ;;  %221 = vst.msk [vmem:[#allocation2 + $0x120] sm:$0x1] %vm208_vm2, %v4352_v5  ;;  %s4460_s28 = scalar_lea.vmem %s5183_s0, %s3323_s25  ;;  %s5081_s18 = scalar_lea.vmem %s5187_s4, %s3323_s25 }
  0x10   : > { %222 = vst.msk [vmem:[#allocation2 + $0x138] sm:$0x1] %vm208_vm2, %v4352_v5  ;;  %223 = vst.msk [vmem:[#allocation2 + $0x150] sm:$0x1] %vm208_vm2, %v4352_v5  ;;  %v3358_v7 = vld [vmem:[%s4460_s28] sm:$0xff]   ;;  %v3501_v8 = vld [vmem:[%s4460_s28 + $0x8] sm:$0xff]  }
  0x11   : > { %224 = vst.msk [vmem:[#allocation2 + $0x168] sm:$0x1] %vm208_vm2, %v4352_v5  ;;  %225 = vst.msk [vmem:[#allocation2 + $0x180] sm:$0x1] %vm208_vm2, %v4352_v5  ;;  %v3502_v9 = vld [vmem:[%s4460_s28 + $0x10] sm:$0xff]   ;;  %v3359_v10 = vunpack.c.l.bf16 %v3358_v7  ;;  %v3360_v11 = vunpack.c.h.bf16 %v3358_v7  ;;  %v3363_v12 = vunpack.c.l.bf16 %v3501_v8  ;;  %v3364_v13 = vunpack.c.h.bf16 %v3501_v8  ;;  %v3503_v14 = vld [vmem:[%s4460_s28 + $0x18] sm:$0xff]  }
  0x12   : > { %228 = vst.msk [vmem:[#allocation2 + $0x29] sm:$0x1] %vm208_vm2, %v4352_v5  ;;  %229 = vst.msk [vmem:[#allocation2 + $0x41] sm:$0x1] %vm208_vm2, %v4352_v5  ;;  %v3504_v15 = vld [vmem:[%s4460_s28 + $0x20] sm:$0xff]   ;;  %v3505_v16 = vld [vmem:[%s4460_s28 + $0x28] sm:$0xff]   ;;  %v3367_v17 = vunpack.c.l.bf16 %v3502_v9  ;;  %v3368_v18 = vunpack.c.h.bf16 %v3502_v9  ;;  %v3371_v19 = vunpack.c.l.bf16 %v3503_v14  ;;  %v3372_v20 = vunpack.c.h.bf16 %v3503_v14 }
  0x13   : > { %230 = vst.msk [vmem:[#allocation2 + $0x59] sm:$0x1] %vm208_vm2, %v4352_v5  ;;  %231 = vst.msk [vmem:[#allocation2 + $0x71] sm:$0x1] %vm208_vm2, %v4352_v5  ;;  %v3506_v21 = vld [vmem:[%s4460_s28 + $0x30] sm:$0xff]   ;;  %v3507_v22 = vld [vmem:[%s4460_s28 + $0x38] sm:$0xff]   ;;  %v3375_v24 = vunpack.c.l.bf16 %v3504_v15  ;;  %v3376_v25 = vunpack.c.h.bf16 %v3504_v15  ;;  %v3379_v26 = vunpack.c.l.bf16 %v3505_v16  ;;  %v3380_v27 = vunpack.c.h.bf16 %v3505_v16 }
  0x14   : > { %232 = vst.msk [vmem:[#allocation2 + $0x89] sm:$0x1] %vm208_vm2, %v4352_v5  ;;  %233 = vst.msk [vmem:[#allocation2 + $0xa1] sm:$0x1] %vm208_vm2, %v4352_v5  ;;  %v3508_v23 = vld [vmem:[%s4460_s28 + $0x40] sm:$0xff]   ;;  %v3509_v28 = vld [vmem:[%s4460_s28 + $0x48] sm:$0xff]   ;;  %v3383_v31 = vunpack.c.l.bf16 %v3506_v21  ;;  %v3384_v32 = vunpack.c.h.bf16 %v3506_v21  ;;  %v3387_v33 = vunpack.c.l.bf16 %v3507_v22  ;;  %v3388_v34 = vunpack.c.h.bf16 %v3507_v22 }
  0x15   : > { %234 = vst.msk [vmem:[#allocation2 + $0xb9] sm:$0x1] %vm208_vm2, %v4352_v5  ;;  %235 = vst.msk [vmem:[#allocation2 + $0xd1] sm:$0x1] %vm208_vm2, %v4352_v5  ;;  %v3510_v29 = vld [vmem:[%s4460_s28 + $0x50] sm:$0xff]   ;;  %v3511_v30 = vld [vmem:[%s4460_s28 + $0x58] sm:$0xff]   ;;  %v3391_v37 = vunpack.c.l.bf16 %v3508_v23  ;;  %v3392_v38 = vunpack.c.h.bf16 %v3508_v23  ;;  %v3395_v39 = vunpack.c.l.bf16 %v3509_v28  ;;  %v3396_v40 = vunpack.c.h.bf16 %v3509_v28 }
  0x16   : > { %236 = vst.msk [vmem:[#allocation2 + $0xe9] sm:$0x1] %vm208_vm2, %v4352_v5  ;;  %237 = vst.msk [vmem:[#allocation2 + $0x101] sm:$0x1] %vm208_vm2, %v4352_v5  ;;  %v3512_v35 = vld [vmem:[%s4460_s28 + $0x60] sm:$0xff]   ;;  %v3513_v36 = vld [vmem:[%s4460_s28 + $0x68] sm:$0xff]   ;;  %v3399_v43 = vunpack.c.l.bf16 %v3510_v29  ;;  %v3400_v44 = vunpack.c.h.bf16 %v3510_v29  ;;  %v3403_v45 = vunpack.c.l.bf16 %v3511_v30  ;;  %v3404_v46 = vunpack.c.h.bf16 %v3511_v30 }
  0x17   : > { %238 = vst.msk [vmem:[#allocation2 + $0x119] sm:$0x1] %vm208_vm2, %v4352_v5  ;;  %239 = vst.msk [vmem:[#allocation2 + $0x131] sm:$0x1] %vm208_vm2, %v4352_v5  ;;  %v3514_v41 = vld [vmem:[%s4460_s28 + $0x70] sm:$0xff]   ;;  %v3515_v42 = vld [vmem:[%s4460_s28 + $0x78] sm:$0xff]   ;;  %v3407_v47 = vunpack.c.l.bf16 %v3512_v35  ;;  %v3408_v48 = vunpack.c.h.bf16 %v3512_v35  ;;  %v3411_v49 = vunpack.c.l.bf16 %v3513_v36  ;;  %v3412_v50 = vunpack.c.h.bf16 %v3513_v36 }
  0x18   : > { %240 = vst.msk [vmem:[#allocation2 + $0x149] sm:$0x1] %vm208_vm2, %v4352_v5  ;;  %241 = vst.msk [vmem:[#allocation2 + $0x161] sm:$0x1] %vm208_vm2, %v4352_v5  ;;  %v3415_v51 = vunpack.c.l.bf16 %v3514_v41  ;;  %v3416_v52 = vunpack.c.h.bf16 %v3514_v41  ;;  %v3419_v53 = vunpack.c.l.bf16 %v3515_v42  ;;  %v3420_v54 = vunpack.c.h.bf16 %v3515_v42 }
  0x19   : > { %242 = vst.msk [vmem:[#allocation2 + $0x179] sm:$0x1] %vm208_vm2, %v4352_v5  ;;  %243 = vst.msk [vmem:[#allocation2 + $0x191] sm:$0x1] %vm208_vm2, %v4352_v5  ;;  %v1488_v7 = vsel %vm447_vm0, %v4399_v4, 0 }
  0x1a   : > { %209 = vst.msk [vmem:[#allocation2] sm:$0x1] %vm208_vm2, %v4352_v5  ;;  %226 = vst.msk [vmem:[#allocation2 + $0x198] sm:$0x1] %vm208_vm2, %v4352_v5  ;;  %v4540_v4 = vld [vmem:[%s5184_s1 + $0x18] sm:$0xf] }
  0x1b   : > { %207 = vst.msk [vmem:[#allocation2 + $0x1a8] sm:$0x3] %vm202_vm3, %v4352_v5  ;;  %203 = vst.msk [vmem:[#allocation2 + $0x10] sm:$0x3] %vm202_vm3, %v4352_v5 }
  0x1c   : > { %244 = vst.msk [vmem:[#allocation2 + $0x1a9] sm:$0x1] %vm208_vm2, %v4352_v5  ;;  %227 = vst.msk [vmem:[#allocation2 + $0x11] sm:$0x1] %vm208_vm2, %v4352_v5 }
  0x1d   : > { %310 = vst.msk [vmem:[#allocation2 + $0x19] sm:$0xff] %vm199_vm1, %v3359_v10  ;;  %311 = vst.msk [vmem:[#allocation2 + $0x21] sm:$0xff] %vm199_vm1, %v3360_v11 }
  0x1e   : > { %312 = vst.msk [vmem:[#allocation2 + $0x31] sm:$0xff] %vm199_vm1, %v3363_v12  ;;  %313 = vst.msk [vmem:[#allocation2 + $0x39] sm:$0xff] %vm199_vm1, %v3364_v13  ;;  %v4535_v12 = vld [vmem:[%s5184_s1 + $0x8] sm:$0xf] }
  0x1f   : > { %314 = vst.msk [vmem:[#allocation2 + $0x49] sm:$0xff] %vm199_vm1, %v3367_v17  ;;  %315 = vst.msk [vmem:[#allocation2 + $0x51] sm:$0xff] %vm199_vm1, %v3368_v18 }
  0x20   : > { %316 = vst.msk [vmem:[#allocation2 + $0x61] sm:$0xff] %vm199_vm1, %v3371_v19  ;;  %317 = vst.msk [vmem:[#allocation2 + $0x69] sm:$0xff] %vm199_vm1, %v3372_v20 }
  0x21   : > { %318 = vst.msk [vmem:[#allocation2 + $0x79] sm:$0xff] %vm199_vm1, %v3375_v24  ;;  %319 = vst.msk [vmem:[#allocation2 + $0x81] sm:$0xff] %vm199_vm1, %v3376_v25 }
  0x22   : > { %320 = vst.msk [vmem:[#allocation2 + $0x91] sm:$0xff] %vm199_vm1, %v3379_v26  ;;  %321 = vst.msk [vmem:[#allocation2 + $0x99] sm:$0xff] %vm199_vm1, %v3380_v27 }
  0x23   : > { %322 = vst.msk [vmem:[#allocation2 + $0xa9] sm:$0xff] %vm199_vm1, %v3383_v31  ;;  %323 = vst.msk [vmem:[#allocation2 + $0xb1] sm:$0xff] %vm199_vm1, %v3384_v32 }
  0x24   : > { %324 = vst.msk [vmem:[#allocation2 + $0xc1] sm:$0xff] %vm199_vm1, %v3387_v33  ;;  %325 = vst.msk [vmem:[#allocation2 + $0xc9] sm:$0xff] %vm199_vm1, %v3388_v34  ;;  %v345_v55 = vld [vmem:[#allocation2 + $0x18] sm:$0xff]  ;;  %v346_v56 = vld [vmem:[#allocation2 + $0x20] sm:$0xff] }
  0x25   : > { %326 = vst.msk [vmem:[#allocation2 + $0xd9] sm:$0xff] %vm199_vm1, %v3391_v37  ;;  %327 = vst.msk [vmem:[#allocation2 + $0xe1] sm:$0xff] %vm199_vm1, %v3392_v38  ;;  %v983_v57 = vld [vmem:[#allocation2 + $0x19] sm:$0xff]  ;;  %v4510_v58 = vpack.c.bf16 %v346_v56, %v345_v55  ;;  %v984_v59 = vld [vmem:[#allocation2 + $0x21] sm:$0xff] }
  0x26   : > { %328 = vst.msk [vmem:[#allocation2 + $0xf1] sm:$0xff] %vm199_vm1, %v3395_v39  ;;  %329 = vst.msk [vmem:[#allocation2 + $0xf9] sm:$0xff] %vm199_vm1, %v3396_v40  ;;  %v347_v60 = vld [vmem:[#allocation2 + $0x30] sm:$0xff]  ;;  %v348_v61 = vld [vmem:[#allocation2 + $0x38] sm:$0xff]  ;;  %v4512_v62 = vpack.c.bf16 %v984_v59, %v983_v57 }
  0x27   : > { %330 = vst.msk [vmem:[#allocation2 + $0x109] sm:$0xff] %vm199_vm1, %v3399_v43  ;;  %331 = vst.msk [vmem:[#allocation2 + $0x111] sm:$0xff] %vm199_vm1, %v3400_v44  ;;  %v4514_v63 = vpack.c.bf16 %v348_v61, %v347_v60  ;;  %v985_v0 = vld [vmem:[#allocation2 + $0x31] sm:$0xff]  ;;  %v986_v1 = vld [vmem:[#allocation2 + $0x39] sm:$0xff]  ;;  %3710 = vmatprep.mubr.msk.bf16.mxu1 %vm199_vm1, %v4510_v58 }
  0x28   : > { %332 = vst.msk [vmem:[#allocation2 + $0x121] sm:$0xff] %vm199_vm1, %v3403_v45  ;;  %333 = vst.msk [vmem:[#allocation2 + $0x129] sm:$0xff] %vm199_vm1, %v3404_v46  ;;  %v349_v2 = vld [vmem:[#allocation2 + $0x48] sm:$0xff]  ;;  %v4520_v5 = vpack.c.bf16 %v986_v1, %v985_v0  ;;  %v350_v8 = vld [vmem:[#allocation2 + $0x50] sm:$0xff]  ;;  %3846 = vmatprep.mubr.msk.bf16.mxu0 %vm199_vm1, %v4512_v62 }
  0x29   : > { %334 = vst.msk [vmem:[#allocation2 + $0x139] sm:$0xff] %vm199_vm1, %v3407_v47  ;;  %335 = vst.msk [vmem:[#allocation2 + $0x141] sm:$0xff] %vm199_vm1, %v3408_v48  ;;  %v987_v9 = vld [vmem:[#allocation2 + $0x49] sm:$0xff]  ;;  %v988_v10 = vld [vmem:[#allocation2 + $0x51] sm:$0xff]  ;;  %3711 = vmatmul.mubr.msk.bf16.vlgmr.msra.gmra.mrb[0].mxu1 %vm199_vm1, %v4514_v63  ;;  %v4528_v11 = vpack.c.bf16 %v350_v8, %v349_v2 }
  0x2a   : > { %336 = vst.msk [vmem:[#allocation2 + $0x151] sm:$0xff] %vm199_vm1, %v3411_v49  ;;  %337 = vst.msk [vmem:[#allocation2 + $0x159] sm:$0xff] %vm199_vm1, %v3412_v50  ;;  %v4530_v6 = vpack.c.bf16 %v988_v10, %v987_v9  ;;  %3847 = vmatmul.mubr.msk.bf16.vlgmr.msra.gmra.mrb[0].mxu0 %vm199_vm1, %v4520_v5  ;;  %v351_v13 = vld [vmem:[#allocation2 + $0x60] sm:$0xff]  ;;  %v352_v14 = vld [vmem:[#allocation2 + $0x68] sm:$0xff]  ;;  %3743 = vmatpush3.bf16.msra.mxu1 %v616_v3 }
  0x2b   : > { %338 = vst.msk [vmem:[#allocation2 + $0x169] sm:$0xff] %vm199_vm1, %v3415_v51  ;;  %339 = vst.msk [vmem:[#allocation2 + $0x171] sm:$0xff] %vm199_vm1, %v3416_v52  ;;  %v989_v15 = vld [vmem:[#allocation2 + $0x61] sm:$0xff]  ;;  %3879 = vmatpush3.bf16.msra.mxu0 %v1488_v7  ;;  %3714 = vmatprep.mubr.msk.bf16.mxu1 %vm199_vm1, %v4528_v11  ;;  %v990_v16 = vld [vmem:[#allocation2 + $0x69] sm:$0xff]  ;;  %v4550_v21 = vpack.c.bf16 %v352_v14, %v351_v13 }
  0x2c   : > { %340 = vst.msk [vmem:[#allocation2 + $0x181] sm:$0xff] %vm199_vm1, %v3419_v53  ;;  %341 = vst.msk [vmem:[#allocation2 + $0x189] sm:$0xff] %vm199_vm1, %v3420_v54  ;;  %v353_v17 = vld [vmem:[#allocation2 + $0x78] sm:$0xff]  ;;  %v354_v18 = vld [vmem:[#allocation2 + $0x80] sm:$0xff]  ;;  %3850 = vmatprep.mubr.msk.bf16.mxu0 %vm199_vm1, %v4530_v6  ;;  %4324 = vmatprep.subr.msk.bf16.mxu0 %vm447_vm0, %v4535_v12  ;;  %v4554_v22 = vpack.c.bf16 %v990_v16, %v989_v15 }
  0x2d   : > { %v991_v19 = vld [vmem:[#allocation2 + $0x79] sm:$0xff]  ;;  %v992_v20 = vld [vmem:[#allocation2 + $0x81] sm:$0xff]  ;;  %4320 = vmatprep.subr.msk.bf16.mxu1 %vm447_vm0, %v4540_v4  ;;  %v4556_v23 = vpack.c.bf16 %v354_v18, %v353_v17  ;;  %v355_v25 = vld [vmem:[#allocation2 + $0x90] sm:$0xff] }
  0x2e   : > { %v4558_v24 = vpack.c.bf16 %v992_v20, %v991_v19  ;;  %v356_v26 = vld [vmem:[#allocation2 + $0x98] sm:$0xff]  ;;  %v357_v29 = vld [vmem:[#allocation2 + $0xa8] sm:$0xff]  ;;  %v358_v30 = vld [vmem:[#allocation2 + $0xb0] sm:$0xff] }
  0x2f   : > { %v993_v27 = vld [vmem:[#allocation2 + $0x91] sm:$0xff]  ;;  %v994_v28 = vld [vmem:[#allocation2 + $0x99] sm:$0xff]  ;;  %v995_v31 = vld [vmem:[#allocation2 + $0xa9] sm:$0xff]  ;;  %v4568_v33 = vpack.c.bf16 %v356_v26, %v355_v25  ;;  %v4572_v35 = vpack.c.bf16 %v358_v30, %v357_v29 }
  0x30   : > { %v996_v32 = vld [vmem:[#allocation2 + $0xb1] sm:$0xff]  ;;  %v4570_v34 = vpack.c.bf16 %v994_v28, %v993_v27  ;;  %v359_v37 = vld [vmem:[#allocation2 + $0xc0] sm:$0xff]  ;;  %v360_v38 = vld [vmem:[#allocation2 + $0xc8] sm:$0xff] }
  0x31   : > { %3715 = vmatmul.mubr.msk.bf16.gmra.mrb[4].mxu1 %vm199_vm1, %v4550_v21  ;;  %v4574_v36 = vpack.c.bf16 %v996_v32, %v995_v31  ;;  %v997_v39 = vld [vmem:[#allocation2 + $0xc1] sm:$0xff]  ;;  %v998_v40 = vld [vmem:[#allocation2 + $0xc9] sm:$0xff]  ;;  %v361_v41 = vld [vmem:[#allocation2 + $0xd8] sm:$0xff]  ;;  %v4584_v45 = vpack.c.bf16 %v360_v38, %v359_v37 }
  0x32   : > { %3851 = vmatmul.mubr.msk.bf16.gmra.mrb[4].mxu0 %vm199_vm1, %v4554_v22  ;;  %3718 = vmatprep.mubr.msk.bf16.mxu1 %vm199_vm1, %v4556_v23  ;;  %v362_v42 = vld [vmem:[#allocation2 + $0xe0] sm:$0xff]  ;;  %v4586_v46 = vpack.c.bf16 %v998_v40, %v997_v39  ;;  %v363_v49 = vld [vmem:[#allocation2 + $0xf0] sm:$0xff]  ;;  %v364_v50 = vld [vmem:[#allocation2 + $0xf8] sm:$0xff] }
  0x33   : > { %3854 = vmatprep.mubr.msk.bf16.mxu0 %vm199_vm1, %v4558_v24  ;;  %v999_v43 = vld [vmem:[#allocation2 + $0xd9] sm:$0xff]  ;;  %v1000_v44 = vld [vmem:[#allocation2 + $0xe1] sm:$0xff]  ;;  %v4588_v47 = vpack.c.bf16 %v362_v42, %v361_v41  ;;  %v1001_v51 = vld [vmem:[#allocation2 + $0xf1] sm:$0xff]  ;;  %v4600_v57 = vpack.c.bf16 %v364_v50, %v363_v49  ;;  %v1786_v50 = vsel %vm447_vm0, %v4535_v12, 0 }
  0x34   : > { %v4590_v48 = vpack.c.bf16 %v1000_v44, %v999_v43  ;;  %v1002_v52 = vld [vmem:[#allocation2 + $0xf9] sm:$0xff]  ;;  %v365_v53 = vld [vmem:[#allocation2 + $0x108] sm:$0xff]  ;;  %v366_v54 = vld [vmem:[#allocation2 + $0x110] sm:$0xff] }
  0x35   : > { %v1003_v55 = vld [vmem:[#allocation2 + $0x109] sm:$0xff]  ;;  %v1004_v56 = vld [vmem:[#allocation2 + $0x111] sm:$0xff]  ;;  %v4602_v59 = vpack.c.bf16 %v1002_v52, %v1001_v51  ;;  %v4604_v60 = vpack.c.bf16 %v366_v54, %v365_v53  ;;  %v367_v0 = vld [vmem:[#allocation2 + $0x120] sm:$0xff]  ;;  %v786_v51 = vsel %vm447_vm0, %v4540_v4, 0 }
  0x36   : > { %v4606_v61 = vpack.c.bf16 %v1004_v56, %v1003_v55  ;;  %v368_v1 = vld [vmem:[#allocation2 + $0x128] sm:$0xff]  ;;  %v369_v7 = vld [vmem:[#allocation2 + $0x138] sm:$0xff]  ;;  %v370_v8 = vld [vmem:[#allocation2 + $0x140] sm:$0xff] }
  0x37   : > { %v1005_v2 = vld [vmem:[#allocation2 + $0x121] sm:$0xff]  ;;  %v1006_v3 = vld [vmem:[#allocation2 + $0x129] sm:$0xff]  ;;  %v1007_v9 = vld [vmem:[#allocation2 + $0x139] sm:$0xff]  ;;  %v4616_v13 = vpack.c.bf16 %v368_v1, %v367_v0  ;;  %v4620_v15 = vpack.c.bf16 %v370_v8, %v369_v7 }
  0x38   : > { %v1008_v10 = vld [vmem:[#allocation2 + $0x141] sm:$0xff]  ;;  %v4618_v14 = vpack.c.bf16 %v1006_v3, %v1005_v2  ;;  %v371_v17 = vld [vmem:[#allocation2 + $0x150] sm:$0xff]  ;;  %v372_v18 = vld [vmem:[#allocation2 + $0x158] sm:$0xff] }
  0x39   : > { %3719 = vmatmul.mubr.msk.bf16.gmra.mrb[8].mxu1 %vm199_vm1, %v4568_v33  ;;  %v4622_v16 = vpack.c.bf16 %v1008_v10, %v1007_v9  ;;  %v1009_v19 = vld [vmem:[#allocation2 + $0x151] sm:$0xff]  ;;  %v1010_v20 = vld [vmem:[#allocation2 + $0x159] sm:$0xff]  ;;  %v373_v25 = vld [vmem:[#allocation2 + $0x168] sm:$0xff]  ;;  %v4632_v29 = vpack.c.bf16 %v372_v18, %v371_v17 }
  0x3a   : > { %3855 = vmatmul.mubr.msk.bf16.gmra.mrb[8].mxu0 %vm199_vm1, %v4570_v34  ;;  %3722 = vmatprep.mubr.msk.bf16.mxu1 %vm199_vm1, %v4572_v35  ;;  %v374_v26 = vld [vmem:[#allocation2 + $0x170] sm:$0xff]  ;;  %v4634_v30 = vpack.c.bf16 %v1010_v20, %v1009_v19  ;;  %v375_v37 = vld [vmem:[#allocation2 + $0x180] sm:$0xff]  ;;  %v376_v38 = vld [vmem:[#allocation2 + $0x188] sm:$0xff] }
  0x3b   : > { %3858 = vmatprep.mubr.msk.bf16.mxu0 %vm199_vm1, %v4574_v36  ;;  %v1011_v27 = vld [vmem:[#allocation2 + $0x169] sm:$0xff]  ;;  %v1012_v28 = vld [vmem:[#allocation2 + $0x171] sm:$0xff]  ;;  %v4636_v31 = vpack.c.bf16 %v374_v26, %v373_v25  ;;  %v343_v39 = vld [vmem:[#allocation2] sm:$0xff]  ;;  %v4648_v43 = vpack.c.bf16 %v376_v38, %v375_v37 }
  0x3c   : > { %v4638_v32 = vpack.c.bf16 %v1012_v28, %v1011_v27  ;;  %v1013_v40 = vld [vmem:[#allocation2 + $0x181] sm:$0xff]  ;;  %v1014_v41 = vld [vmem:[#allocation2 + $0x189] sm:$0xff]  ;;  %v3243_v52 = vld [vmem:[%s5184_s1 + $0x14] sm:$0xf] }
  0x3d   : > { %v344_v42 = vld [vmem:[#allocation2 + $0x8] sm:$0xff]  ;;  %v1279_v44 = vpack.c.bf16 %v1014_v41, %v1013_v40  ;;  %v3175_v12 = vld [vmem:[%s5184_s1 + $0x4] sm:$0xf]  ;;  %v1685_v0 = vld [vmem:[#allocation2 + $0x1a] sm:$0xff]  ;;  %v1988_v9 = vsel %vm447_vm0, %v3243_v52, 0 }
  0x3e   : > { %v379_v49 = vpack.c.bf16 %v344_v42, %v343_v39  ;;  %v1016_v4 = vld [vmem:[#allocation2 + $0x1a1] sm:$0xff]  ;;  %v1684_v54 = vld [vmem:[#allocation2 + $0xa] sm:$0xff]  ;;  %v1687_v2 = vld [vmem:[#allocation2 + $0x32] sm:$0xff]  ;;  %v1084_v10 = vsel %vm447_vm0, %v3175_v12, 0 }
  0x3f   : > { %v1683_v53 = vld [vmem:[#allocation2 + $0x2] sm:$0xff]  ;;  %v1688_v3 = vld [vmem:[#allocation2 + $0x3a] sm:$0xff]  ;;  %v1689_v17 = vld [vmem:[#allocation2 + $0x4a] sm:$0xff] }
  0x40   : > { %v1719_v56 = vpack.c.bf16 %v1684_v54, %v1683_v53  ;;  %v1686_v1 = vld [vmem:[#allocation2 + $0x22] sm:$0xff]  ;;  %v4731_v8 = vpack.c.bf16 %v1688_v3, %v1687_v2  ;;  %v1690_v18 = vld [vmem:[#allocation2 + $0x52] sm:$0xff]  ;;  %v1692_v19 = vld [vmem:[#allocation2 + $0x6a] sm:$0xff] }
  0x41   : > { %3723 = vmatmul.mubr.msk.bf16.gmra.mrb[12].mxu1 %vm199_vm1, %v4584_v45  ;;  %v4729_v7 = vpack.c.bf16 %v1686_v1, %v1685_v0  ;;  %v4750_v20 = vpack.c.bf16 %v1690_v18, %v1689_v17  ;;  %v1694_v26 = vld [vmem:[#allocation2 + $0x82] sm:$0xff]  ;;  %v1695_v27 = vld [vmem:[#allocation2 + $0x92] sm:$0xff]  ;;  %v1696_v28 = vld [vmem:[#allocation2 + $0x9a] sm:$0xff] }
  0x42   : > { %3859 = vmatmul.mubr.msk.bf16.gmra.mrb[12].mxu0 %vm199_vm1, %v4586_v46  ;;  %3726 = vmatprep.mubr.msk.bf16.mxu1 %vm199_vm1, %v4588_v47  ;;  %v4764_v38 = vpack.c.bf16 %v1696_v28, %v1695_v27  ;;  %v1699_v39 = vld [vmem:[#allocation2 + $0xc2] sm:$0xff]  ;;  %v1700_v40 = vld [vmem:[#allocation2 + $0xca] sm:$0xff]  ;;  %v1711_v53 = vld [vmem:[#allocation2 + $0x152] sm:$0xff] }
  0x43   : > { %3862 = vmatprep.mubr.msk.bf16.mxu0 %vm199_vm1, %v4590_v48  ;;  %v4776_v42 = vpack.c.bf16 %v1700_v40, %v1699_v39  ;;  %v1712_v54 = vld [vmem:[#allocation2 + $0x15a] sm:$0xff]  ;;  %v1713_v0 = vld [vmem:[#allocation2 + $0x16a] sm:$0xff]  ;;  %v1714_v1 = vld [vmem:[#allocation2 + $0x172] sm:$0xff] }
  0x44   : > { %v981_v2 = vld [vmem:[#allocation2 + $0x1] sm:$0xff]  ;;  %v982_v3 = vld [vmem:[#allocation2 + $0x9] sm:$0xff] }
  0x45   : > { %v1017_v17 = vpack.c.bf16 %v982_v3, %v981_v2 }
  0x49   : > { %3727 = vmatmul.mubr.msk.bf16.gmra.mrb[16].mxu1 %vm199_vm1, %v4600_v57 }
  0x4a   : > { %3863 = vmatmul.mubr.msk.bf16.gmra.mrb[16].mxu0 %vm199_vm1, %v4602_v59  ;;  %3730 = vmatprep.mubr.msk.bf16.mxu1 %vm199_vm1, %v4604_v60 }
  0x4b   : > { %3866 = vmatprep.mubr.msk.bf16.mxu0 %vm199_vm1, %v4606_v61 }
  0x51   : > { %3731 = vmatmul.mubr.msk.bf16.gmra.mrb[20].mxu1 %vm199_vm1, %v4616_v13 }
  0x52   : > { %3867 = vmatmul.mubr.msk.bf16.gmra.mrb[20].mxu0 %vm199_vm1, %v4618_v14  ;;  %3734 = vmatprep.mubr.msk.bf16.mxu1 %vm199_vm1, %v4620_v15 }
  0x53   : > { %3870 = vmatprep.mubr.msk.bf16.mxu0 %vm199_vm1, %v4622_v16 }
  0x59   : > { %3735 = vmatmul.mubr.msk.bf16.gmra.mrb[24].mxu1 %vm199_vm1, %v4632_v29 }
  0x5a   : > { %3871 = vmatmul.mubr.msk.bf16.gmra.mrb[24].mxu0 %vm199_vm1, %v4634_v30  ;;  %3738 = vmatprep.mubr.msk.bf16.mxu1 %vm199_vm1, %v4636_v31 }
  0x5b   : > { %3874 = vmatprep.mubr.msk.bf16.mxu0 %vm199_vm1, %v4638_v32 }
  0x61   : > { %3739 = vmatmul.mubr.msk.bf16.gmra.mrb[28].mxu1 %vm199_vm1, %v4648_v43 }
  0x62   : > { %3875 = vmatmul.mubr.msk.bf16.gmra.mrb[28].mxu0 %vm199_vm1, %v1279_v44  ;;  %3744 = vmatprep.mubr.msk.bf16.mxu1 %vm199_vm1, %v379_v49  ;;  %v1704_v49 = vld [vmem:[#allocation2 + $0xfa] sm:$0xff] }
  0x63   : > { %3880 = vmatprep.mubr.msk.bf16.mxu0 %vm199_vm1, %v4520_v5 }
  0x69   : > { %3745 = vmatmul.mubr.msk.bf16.vlgmr.msra.gmra.mrb[0].mxu1 %vm199_vm1, %v4510_v58  ;;  %v1015_v58 = vld [vmem:[#allocation2 + $0x199] sm:$0xff] }
  0x6a   : > { %3881 = vmatmul.mubr.msk.bf16.vlgmr.msra.gmra.mrb[0].mxu0 %vm199_vm1, %v4530_v6  ;;  %3748 = vmatprep.mubr.msk.bf16.mxu1 %vm199_vm1, %v4514_v63  ;;  %v1481_v55 = vpack.c.bf16 %v1016_v4, %v1015_v58 }
  0x6b   : > { %3913 = vmatpush3.bf16.msra.mxu0 %v1786_v50  ;;  %3884 = vmatprep.mubr.msk.bf16.mxu0 %vm199_vm1, %v4554_v22 }
  0x6c   : > { %3777 = vmatpush3.bf16.msra.mxu1 %v786_v51  ;;  %4325 = vmatprep.subr.msk.bf16.mxu0 %vm447_vm0, %v3243_v52  ;;  %v1707_v52 = vld [vmem:[#allocation2 + $0x122] sm:$0xff] }
  0x6d   : > { %4321 = vmatprep.subr.msk.bf16.mxu1 %vm447_vm0, %v3175_v12  ;;  %v1708_v12 = vld [vmem:[#allocation2 + $0x12a] sm:$0xff] }
  0x6e   : > { %v4800_v4 = vpack.c.bf16 %v1708_v12, %v1707_v52 }
  0x71   : > { %3749 = vmatmul.mubr.msk.bf16.gmra.mrb[4].mxu1 %vm199_vm1, %v4528_v11 }
  0x72   : > { %3885 = vmatmul.mubr.msk.bf16.gmra.mrb[4].mxu0 %vm199_vm1, %v4558_v24  ;;  %3752 = vmatprep.mubr.msk.bf16.mxu1 %vm199_vm1, %v4550_v21 }
  0x73   : > { %3888 = vmatprep.mubr.msk.bf16.mxu0 %vm199_vm1, %v4570_v34 }
  0x79   : > { %3753 = vmatmul.mubr.msk.bf16.gmra.mrb[8].mxu1 %vm199_vm1, %v4556_v23 }
  0x7a   : > { %3889 = vmatmul.mubr.msk.bf16.gmra.mrb[8].mxu0 %vm199_vm1, %v4574_v36  ;;  %3756 = vmatprep.mubr.msk.bf16.mxu1 %vm199_vm1, %v4568_v33 }
  0x7b   : > { %3892 = vmatprep.mubr.msk.bf16.mxu0 %vm199_vm1, %v4586_v46 }
  0x81   : > { %3757 = vmatmul.mubr.msk.bf16.gmra.mrb[12].mxu1 %vm199_vm1, %v4572_v35 }
  0x82   : > { %3893 = vmatmul.mubr.msk.bf16.gmra.mrb[12].mxu0 %vm199_vm1, %v4590_v48  ;;  %3760 = vmatprep.mubr.msk.bf16.mxu1 %vm199_vm1, %v4584_v45 }
  0x83   : > { %3896 = vmatprep.mubr.msk.bf16.mxu0 %vm199_vm1, %v4602_v59 }
  0x89   : > { %3761 = vmatmul.mubr.msk.bf16.gmra.mrb[16].mxu1 %vm199_vm1, %v4588_v47 }
  0x8a   : > { %3897 = vmatmul.mubr.msk.bf16.gmra.mrb[16].mxu0 %vm199_vm1, %v4606_v61  ;;  %3764 = vmatprep.mubr.msk.bf16.mxu1 %vm199_vm1, %v4600_v57 }
  0x8b   : > { %3900 = vmatprep.mubr.msk.bf16.mxu0 %vm199_vm1, %v4618_v14 }
  0x91   : > { %3765 = vmatmul.mubr.msk.bf16.gmra.mrb[20].mxu1 %vm199_vm1, %v4604_v60 }
  0x92   : > { %3901 = vmatmul.mubr.msk.bf16.gmra.mrb[20].mxu0 %vm199_vm1, %v4622_v16  ;;  %3768 = vmatprep.mubr.msk.bf16.mxu1 %vm199_vm1, %v4616_v13 }
  0x93   : > { %3904 = vmatprep.mubr.msk.bf16.mxu0 %vm199_vm1, %v4634_v30 }
  0x99   : > { %3769 = vmatmul.mubr.msk.bf16.gmra.mrb[24].mxu1 %vm199_vm1, %v4620_v15 }
  0x9a   : > { %3905 = vmatmul.mubr.msk.bf16.gmra.mrb[24].mxu0 %vm199_vm1, %v4638_v32  ;;  %3772 = vmatprep.mubr.msk.bf16.mxu1 %vm199_vm1, %v4632_v29 }
  0x9b   : > { %3908 = vmatprep.mubr.msk.bf16.mxu0 %vm199_vm1, %v1279_v44  ;;  %v1703_v44 = vld [vmem:[#allocation2 + $0xf2] sm:$0xff] }
  0x9c   : > { %v4788_v51 = vpack.c.bf16 %v1704_v49, %v1703_v44 }
  0xa1   : > { %3773 = vmatmul.mubr.msk.bf16.gmra.mrb[28].mxu1 %vm199_vm1, %v4636_v31 }
  0xa2   : > { %3909 = vmatmul.mubr.msk.bf16.gmra.mrb[28].mxu0 %vm199_vm1, %v1481_v55  ;;  %3778 = vmatprep.mubr.msk.bf16.mxu1 %vm199_vm1, %v4514_v63  ;;  %v4740_v63 = vld [vmem:[%s5184_s1 + $0x20] sm:$0xf] }
  0xa3   : > { %3914 = vmatprep.mubr.msk.bf16.mxu0 %vm199_vm1, %v1719_v56  ;;  %v4812_v56 = vpack.c.bf16 %v1712_v54, %v1711_v53 }
  0xa9   : > { %3779 = vmatmul.mubr.msk.bf16.vlgmr.msra.gmra.mrb[0].mxu1 %vm199_vm1, %v4528_v11  ;;  %v1691_v11 = vld [vmem:[#allocation2 + $0x62] sm:$0xff] }
  0xaa   : > { %3915 = vmatmul.mubr.msk.bf16.vlgmr.msra.gmra.mrb[0].mxu0 %vm199_vm1, %v4729_v7  ;;  %3782 = vmatprep.mubr.msk.bf16.mxu1 %vm199_vm1, %v4550_v21  ;;  %v4752_v25 = vpack.c.bf16 %v1692_v19, %v1691_v11  ;;  %v1693_v21 = vld [vmem:[#allocation2 + $0x7a] sm:$0xff] }
  0xab   : > { %3947 = vmatpush3.bf16.msra.mxu0 %v1988_v9  ;;  %3918 = vmatprep.mubr.msk.bf16.mxu0 %vm199_vm1, %v4731_v8  ;;  %v4762_v37 = vpack.c.bf16 %v1694_v26, %v1693_v21 }
  0xac   : > { %3811 = vmatpush3.bf16.msra.mxu1 %v1084_v10  ;;  %4326 = vmatprep.subr.msk.bf16.mxu0 %vm447_vm0, %v4740_v63  ;;  %v1734_v10 = vpack.c.bf16 %v1714_v1, %v1713_v0 }
  0xb1   : > { %3783 = vmatmul.mubr.msk.bf16.gmra.mrb[4].mxu1 %vm199_vm1, %v4556_v23  ;;  %v1697_v23 = vld [vmem:[#allocation2 + $0xaa] sm:$0xff] }
  0xb2   : > { %3919 = vmatmul.mubr.msk.bf16.gmra.mrb[4].mxu0 %vm199_vm1, %v4750_v20  ;;  %3786 = vmatprep.mubr.msk.bf16.mxu1 %vm199_vm1, %v4568_v33  ;;  %v1698_v33 = vld [vmem:[#allocation2 + $0xb2] sm:$0xff] }
  0xb3   : > { %3922 = vmatprep.mubr.msk.bf16.mxu0 %vm199_vm1, %v4752_v25  ;;  %v4774_v41 = vpack.c.bf16 %v1698_v33, %v1697_v23 }
  0xb9   : > { %3787 = vmatmul.mubr.msk.bf16.gmra.mrb[8].mxu1 %vm199_vm1, %v4572_v35  ;;  %v1701_v35 = vld [vmem:[#allocation2 + $0xda] sm:$0xff] }
  0xba   : > { %3923 = vmatmul.mubr.msk.bf16.gmra.mrb[8].mxu0 %vm199_vm1, %v4762_v37  ;;  %3790 = vmatprep.mubr.msk.bf16.mxu1 %vm199_vm1, %v4584_v45  ;;  %v1702_v45 = vld [vmem:[#allocation2 + $0xe2] sm:$0xff] }
  0xbb   : > { %3926 = vmatprep.mubr.msk.bf16.mxu0 %vm199_vm1, %v4764_v38  ;;  %v4786_v50 = vpack.c.bf16 %v1702_v45, %v1701_v35 }
  0xc1   : > { %3791 = vmatmul.mubr.msk.bf16.gmra.mrb[12].mxu1 %vm199_vm1, %v4588_v47  ;;  %v1705_v47 = vld [vmem:[#allocation2 + $0x10a] sm:$0xff] }
  0xc2   : > { %3927 = vmatmul.mubr.msk.bf16.gmra.mrb[12].mxu0 %vm199_vm1, %v4774_v41  ;;  %3794 = vmatprep.mubr.msk.bf16.mxu1 %vm199_vm1, %v4600_v57  ;;  %v1706_v57 = vld [vmem:[#allocation2 + $0x112] sm:$0xff] }
  0xc3   : > { %3930 = vmatprep.mubr.msk.bf16.mxu0 %vm199_vm1, %v4776_v42  ;;  %v4798_v58 = vpack.c.bf16 %v1706_v57, %v1705_v47 }
  0xc9   : > { %3795 = vmatmul.mubr.msk.bf16.gmra.mrb[16].mxu1 %vm199_vm1, %v4604_v60  ;;  %v1709_v60 = vld [vmem:[#allocation2 + $0x13a] sm:$0xff] }
  0xca   : > { %3931 = vmatmul.mubr.msk.bf16.gmra.mrb[16].mxu0 %vm199_vm1, %v4786_v50  ;;  %3798 = vmatprep.mubr.msk.bf16.mxu1 %vm199_vm1, %v4616_v13  ;;  %v1710_v13 = vld [vmem:[#allocation2 + $0x142] sm:$0xff] }
  0xcb   : > { %3934 = vmatprep.mubr.msk.bf16.mxu0 %vm199_vm1, %v4788_v51  ;;  %v4810_v55 = vpack.c.bf16 %v1710_v13, %v1709_v60 }
  0xd1   : > { %3799 = vmatmul.mubr.msk.bf16.gmra.mrb[20].mxu1 %vm199_vm1, %v4620_v15  ;;  %v377_v15 = vld [vmem:[#allocation2 + $0x198] sm:$0xff] }
  0xd2   : > { %3935 = vmatmul.mubr.msk.bf16.gmra.mrb[20].mxu0 %vm199_vm1, %v4798_v58  ;;  %3802 = vmatprep.mubr.msk.bf16.mxu1 %vm199_vm1, %v4632_v29  ;;  %v378_v29 = vld [vmem:[#allocation2 + $0x1a0] sm:$0xff] }
  0xd3   : > { %3938 = vmatprep.mubr.msk.bf16.mxu0 %vm199_vm1, %v4800_v4  ;;  %v779_v9 = vpack.c.bf16 %v378_v29, %v377_v15 }
  0xd9   : > { %3803 = vmatmul.mubr.msk.bf16.gmra.mrb[24].mxu1 %vm199_vm1, %v4636_v31  ;;  %v2190_v31 = vsel %vm447_vm0, %v4740_v63, 0 }
  0xda   : > { %3939 = vmatmul.mubr.msk.bf16.gmra.mrb[24].mxu0 %vm199_vm1, %v4810_v55  ;;  %3806 = vmatprep.mubr.msk.bf16.mxu1 %vm199_vm1, %v4648_v43 }
  0xdb   : > { %3942 = vmatprep.mubr.msk.bf16.mxu0 %vm199_vm1, %v4812_v56 }
  0xe1   : > { %3807 = vmatmul.mubr.msk.bf16.gmra.mrb[28].mxu1 %vm199_vm1, %v779_v9 }
  0xe2   : > { %3943 = vmatmul.mubr.msk.bf16.gmra.mrb[28].mxu0 %vm199_vm1, %v1734_v10  ;;  %3812 = vmatprep.mubr.msk.bf16.mxu1 %vm199_vm1, %v1017_v17 }
  0xe3   : > { %3948 = vmatprep.mubr.msk.bf16.mxu0 %vm199_vm1, %v4729_v7 }
  0xe9   : > { %3813 = vmatmul.mubr.msk.bf16.vlgmr.msra.gmra.mrb[0].mxu1 %vm199_vm1, %v4512_v62  ;;  %v1715_v62 = vld [vmem:[#allocation2 + $0x182] sm:$0xff] }
  0xea   : > { %3949 = vmatmul.mubr.msk.bf16.vlgmr.msra.gmra.mrb[0].mxu0 %vm199_vm1, %v4731_v8  ;;  %3816 = vmatprep.mubr.msk.bf16.mxu1 %vm199_vm1, %v4520_v5  ;;  %v1716_v5 = vld [vmem:[#allocation2 + $0x18a] sm:$0xff] }
  0xeb   : > { %3981 = vmatpush3.bf16.msra.mxu0 %v2190_v31  ;;  %3952 = vmatprep.mubr.msk.bf16.mxu0 %vm199_vm1, %v4750_v20 }
  0xf1   : > { %3817 = vmatmul.mubr.msk.bf16.gmra.mrb[4].mxu1 %vm199_vm1, %v4530_v6  ;;  %v1981_v6 = vpack.c.bf16 %v1716_v5, %v1715_v62 }
  0xf2   : > { %3953 = vmatmul.mubr.msk.bf16.gmra.mrb[4].mxu0 %vm199_vm1, %v4752_v25  ;;  %3820 = vmatprep.mubr.msk.bf16.mxu1 %vm199_vm1, %v4554_v22  ;;  %v4336_v22 = vld [vmem:[%s5186_s3] sm:$0xff]  }
  0xf3   : > { %3956 = vmatprep.mubr.msk.bf16.mxu0 %vm199_vm1, %v4762_v37  ;;  %4014 = vmatprep.subr.bf16.mxu1 %v4336_v22 }
  0xf4   : > { %4015 = vmatpush3.bf16.msra.mxu1 %v4336_v22 }
  0xf9   : > { %3821 = vmatmul.mubr.msk.bf16.gmra.mrb[8].mxu1 %vm199_vm1, %v4558_v24  ;;  %v4337_v24 = vld [vmem:[%s5186_s3 + $0x8] sm:$0xff]  }
  0xfa   : > { %3957 = vmatmul.mubr.msk.bf16.gmra.mrb[8].mxu0 %vm199_vm1, %v4764_v38  ;;  %3824 = vmatprep.mubr.msk.bf16.mxu1 %vm199_vm1, %v4570_v34  ;;  %v4338_v34 = vld [vmem:[%s5186_s3 + $0x10] sm:$0xff]  }
  0xfb   : > { %3960 = vmatprep.mubr.msk.bf16.mxu0 %vm199_vm1, %v4774_v41  ;;  %4016 = vmatprep.subr.bf16.mxu1 %v4337_v24 }
  0xfc   : > { %4017 = vmatpush3.bf16.msra.mxu1 %v4337_v24 }
  0xfd   : > { %4018 = vmatprep.subr.bf16.mxu1 %v4338_v34 }
 0x100   : > { %4019 = vmatpush3.bf16.msra.mxu1 %v4338_v34 }
 0x101   : > { %3825 = vmatmul.mubr.msk.bf16.gmra.mrb[12].mxu1 %vm199_vm1, %v4574_v36  ;;  %v1717_v36 = vld [vmem:[#allocation2 + $0x19a] sm:$0xff] }
 0x102   : > { %3961 = vmatmul.mubr.msk.bf16.gmra.mrb[12].mxu0 %vm199_vm1, %v4776_v42  ;;  %3828 = vmatprep.mubr.msk.bf16.mxu1 %vm199_vm1, %v4586_v46  ;;  %v1718_v46 = vld [vmem:[#allocation2 + $0x1a2] sm:$0xff] }
 0x103   : > { %3964 = vmatprep.mubr.msk.bf16.mxu0 %vm199_vm1, %v4786_v50 }
 0x109   : > { %3829 = vmatmul.mubr.msk.bf16.gmra.mrb[16].mxu1 %vm199_vm1, %v4590_v48  ;;  %v2183_v48 = vpack.c.bf16 %v1718_v46, %v1717_v36 }
 0x10a   : > { %3965 = vmatmul.mubr.msk.bf16.gmra.mrb[16].mxu0 %vm199_vm1, %v4788_v51  ;;  %3832 = vmatprep.mubr.msk.bf16.mxu1 %vm199_vm1, %v4602_v59  ;;  %v4339_v59 = vld [vmem:[%s5186_s3 + $0x18] sm:$0xff]  }
 0x10b   : > { %3968 = vmatprep.mubr.msk.bf16.mxu0 %vm199_vm1, %v4798_v58  ;;  %4020 = vmatprep.subr.bf16.mxu1 %v4339_v59 }
 0x10c   : > { %4021 = vmatpush3.bf16.msra.mxu1 %v4339_v59 }
 0x111   : > { %3833 = vmatmul.mubr.msk.bf16.gmra.mrb[20].mxu1 %vm199_vm1, %v4606_v61  ;;  %v4340_v61 = vld [vmem:[%s5186_s3 + $0x20] sm:$0xff]  }
 0x112   : > { %3969 = vmatmul.mubr.msk.bf16.gmra.mrb[20].mxu0 %vm199_vm1, %v4800_v4  ;;  %3836 = vmatprep.mubr.msk.bf16.mxu1 %vm199_vm1, %v4618_v14  ;;  %v4341_v14 = vld [vmem:[%s5186_s3 + $0x28] sm:$0xff]  }
 0x113   : > { %3972 = vmatprep.mubr.msk.bf16.mxu0 %vm199_vm1, %v4810_v55  ;;  %4022 = vmatprep.subr.bf16.mxu1 %v4340_v61 }
 0x114   : > { %4023 = vmatpush3.bf16.msra.mxu1 %v4340_v61 }
 0x115   : > { %4024 = vmatprep.subr.bf16.mxu1 %v4341_v14 }
 0x118   : > { %4025 = vmatpush3.bf16.msra.mxu1 %v4341_v14 }
 0x119   : > { %3837 = vmatmul.mubr.msk.bf16.gmra.mrb[24].mxu1 %vm199_vm1, %v4622_v16  ;;  %v4342_v16 = vld [vmem:[%s5186_s3 + $0x30] sm:$0xff]  }
 0x11a   : > { %3973 = vmatmul.mubr.msk.bf16.gmra.mrb[24].mxu0 %vm199_vm1, %v4812_v56  ;;  %3840 = vmatprep.mubr.msk.bf16.mxu1 %vm199_vm1, %v4634_v30  ;;  %v4343_v30 = vld [vmem:[%s5186_s3 + $0x38] sm:$0xff]  }
 0x11b   : > { %3976 = vmatprep.mubr.msk.bf16.mxu0 %vm199_vm1, %v1734_v10  ;;  %4026 = vmatprep.subr.bf16.mxu1 %v4342_v16 }
 0x11c   : > { %4027 = vmatpush3.bf16.msra.mxu1 %v4342_v16 }
 0x11d   : > { %4028 = vmatprep.subr.bf16.mxu1 %v4343_v30 }
 0x120   : > { %4029 = vmatpush3.bf16.msra.mxu1 %v4343_v30 }
 0x121   : > { %3841 = vmatmul.mubr.msk.bf16.gmra.mrb[28].mxu1 %vm199_vm1, %v4638_v32 }
 0x122   : > { %3977 = vmatmul.mubr.msk.bf16.gmra.mrb[28].mxu0 %vm199_vm1, %v1981_v6 }
 0x123   : > { %3982 = vmatprep.mubr.msk.bf16.mxu0 %vm199_vm1, %v4731_v8 }
 0x12a   : > { %3983 = vmatmul.mubr.msk.bf16.vlgmr.msra.gmra.mrb[0].mxu0 %vm199_vm1, %v4750_v20 }
 0x12b   : > { %3986 = vmatprep.mubr.msk.bf16.mxu0 %vm199_vm1, %v4752_v25 }
 0x132   : > { %3987 = vmatmul.mubr.msk.bf16.gmra.mrb[4].mxu0 %vm199_vm1, %v4762_v37 }
 0x133   : > { %3990 = vmatprep.mubr.msk.bf16.mxu0 %vm199_vm1, %v4764_v38 }
 0x13a   : > { %3991 = vmatmul.mubr.msk.bf16.gmra.mrb[8].mxu0 %vm199_vm1, %v4774_v41 }
 0x13b   : > { %3994 = vmatprep.mubr.msk.bf16.mxu0 %vm199_vm1, %v4776_v42 }
 0x142   : > { %3995 = vmatmul.mubr.msk.bf16.gmra.mrb[12].mxu0 %vm199_vm1, %v4786_v50 }
 0x143   : > { %3998 = vmatprep.mubr.msk.bf16.mxu0 %vm199_vm1, %v4788_v51 }
 0x14a   : > { %3999 = vmatmul.mubr.msk.bf16.gmra.mrb[16].mxu0 %vm199_vm1, %v4798_v58  ;;  %v4989_v58 = vld [vmem:[%s5185_s2] ss:$0 sm:$0xff] }
 0x14b   : > { %4002 = vmatprep.mubr.msk.bf16.mxu0 %vm199_vm1, %v4800_v4 }
 0x152   : > { %4003 = vmatmul.mubr.msk.bf16.gmra.mrb[20].mxu0 %vm199_vm1, %v4810_v55 }
 0x153   : > { %4006 = vmatprep.mubr.msk.bf16.mxu0 %vm199_vm1, %v4812_v56 }
 0x15a   : > { %4007 = vmatmul.mubr.msk.bf16.gmra.mrb[24].mxu0 %vm199_vm1, %v1734_v10 }
 0x15b   : > { %4010 = vmatprep.mubr.msk.bf16.mxu0 %vm199_vm1, %v1981_v6 }
 0x162   : > { %4011 = vmatmul.mubr.msk.bf16.gmra.mrb[28].mxu0 %vm199_vm1, %v2183_v48 }
 0x1bc   : > { %v3814_v32 = vpop.f32.mrb[0].mxu1 }
 0x1bd   : > { %v1120_v43 = vpop.f32.mrb[1].mxu1 }
 0x1be   : > { %v3815_v7 = vpop.f32.mrb[2].mxu1 }
 0x1bf   : > { %v1123_v8 = vpop.f32.mrb[3].mxu1 }
 0x1c4   : > { %v3818_v63 = vpop.f32.mrb[4].mxu1 }
 0x1c5   : > { %v1136_v18 = vpop.f32.mrb[5].mxu1 }
 0x1c6   : > { %v3819_v11 = vpop.f32.mrb[6].mxu1 }
 0x1c7   : > { %v1139_v19 = vpop.f32.mrb[7].mxu1 }
 0x1cc   : > { %v3822_v20 = vpop.f32.mrb[8].mxu1 }
 0x1cd   : > { %v4940_v25 = vpop.f32.mrb[9].mxu1 }
 0x1ce   : > { %v4942_v21 = vpop.f32.mrb[10].mxu1 }
 0x1cf   : > { %v4944_v26 = vpop.f32.mrb[11].mxu1 }
 0x1d4   : > { %v4946_v27 = vpop.f32.mrb[12].mxu1 }
 0x1d5   : > { %v4948_v28 = vpop.f32.mrb[13].mxu1 }
 0x1d6   : > { %v4950_v37 = vpop.f32.mrb[14].mxu1 }
 0x1d7   : > { %v4952_v38 = vpop.f32.mrb[15].mxu1 }
 0x1dc   : > { %v4954_v23 = vpop.f32.mrb[16].mxu1 }
 0x1dd   : > { %v4956_v33 = vpop.f32.mrb[17].mxu1 }
 0x1de   : > { %v4958_v39 = vpop.f32.mrb[18].mxu1 }
 0x1df   : > { %v4960_v40 = vpop.f32.mrb[19].mxu1 }
 0x1e4   : > { %v4962_v41 = vpop.f32.mrb[20].mxu1 }
 0x1e5   : > { %v4964_v42 = vpop.f32.mrb[21].mxu1 }
 0x1e6   : > { %v4966_v35 = vpop.f32.mrb[22].mxu1 }
 0x1e7   : > { %v4968_v45 = vpop.f32.mrb[23].mxu1 }
 0x1ec   : > { %v4970_v44 = vpop.f32.mrb[24].mxu1 }
 0x1ed   : > { %v4972_v49 = vpop.f32.mrb[25].mxu1 }
 0x1ee   : > { %v4974_v50 = vpop.f32.mrb[26].mxu1 }
 0x1ef   : > { %v4976_v51 = vpop.f32.mrb[27].mxu1 }
 0x1f4   : > { %v4978_v47 = vpop.f32.mrb[28].mxu1 }
 0x1f5   : > { %v4980_v57 = vpop.f32.mrb[29].mxu1 }
 0x1f6   : > { %v4982_v52 = vpop.f32.mrb[30].mxu1 }
 0x1f7   : > { %v4984_v12 = vpop.f32.mrb[31].mxu1 }
 0x1fd   : > { %v3984_v4 = vpop.f32.mrb[0].mxu0 }
 0x1fe   : > { %v4062_v60 = vadd.f32 %v3984_v4, %v3814_v32  ;;  %v2226_v13 = vpop.f32.mrb[1].mxu0 }
 0x1ff   : > { %v4063_v53 = vadd.f32 %v2226_v13, %v1120_v43  ;;  %v3985_v54 = vpop.f32.mrb[2].mxu0 }
 0x200   : > { %v2391_v55 = vadd.f32 %v4062_v60, %v4989_v58  ;;  %v4064_v56 = vadd.f32 %v3985_v54, %v3815_v7  ;;  %v2229_v15 = vpop.f32.mrb[3].mxu0 }
 0x201   : > { %v2389_v29 = vadd.f32 %v4063_v53, %v4989_v58  ;;  %v4065_v0 = vadd.f32 %v2229_v15, %v1123_v8 }
 0x202   : > { %v2392_v1 = vadd.f32 %v4064_v56, %v4989_v58  ;;  %v2423_v3 = vmax.f32 %v2391_v55, 0.0 }
 0x203   : > { %v2390_v2 = vadd.f32 %v4065_v0, %v4989_v58  ;;  %v2421_v10 = vmax.f32 %v2389_v29, 0.0 }
 0x204   : > { %v2424_v9 = vmax.f32 %v2392_v1, 0.0 }
 0x205   : > { %v2422_v17 = vmax.f32 %v2390_v2, 0.0  ;;  %v3988_v31 = vpop.f32.mrb[4].mxu0 }
 0x206   : > { %v2454_v62 = vpack.c.bf16 %v2424_v9, %v2423_v3  ;;  %v4066_v5 = vadd.f32 %v3988_v31, %v3818_v63  ;;  %v2242_v6 = vpop.f32.mrb[5].mxu0 }
 0x207   : > { %v4067_v22 = vadd.f32 %v2242_v6, %v1136_v18  ;;  %v3989_v24 = vpop.f32.mrb[6].mxu0  ;;  %v2453_v34 = vpack.c.bf16 %v2422_v17, %v2421_v10 }
 0x208   : > { %v2395_v36 = vadd.f32 %v4066_v5, %v4989_v58  ;;  %v4068_v46 = vadd.f32 %v3989_v24, %v3819_v11  ;;  %v2245_v48 = vpop.f32.mrb[7].mxu0 }
 0x209   : > { %v2393_v59 = vadd.f32 %v4067_v22, %v4989_v58  ;;  %v4069_v61 = vadd.f32 %v2245_v48, %v1139_v19  ;;  %4030 = vmatprep.mubr.bf16.mxu1 %v2453_v34 }
 0x20a   : > { %v2396_v14 = vadd.f32 %v4068_v46, %v4989_v58  ;;  %4031 = vmatmul.mubr.bf16.vlgmr.msra.gmra.mrb[32].mxu1 %v2454_v62  ;;  %v2427_v30 = vmax.f32 %v2395_v36, 0.0 }
 0x20b   : > { %v2394_v16 = vadd.f32 %v4069_v61, %v4989_v58  ;;  %v2425_v43 = vmax.f32 %v2393_v59, 0.0 }
 0x20c   : > { %v2428_v32 = vmax.f32 %v2396_v14, 0.0 }
 0x20d   : > { %v2426_v7 = vmax.f32 %v2394_v16, 0.0  ;;  %v3992_v8 = vpop.f32.mrb[8].mxu0 }
 0x20e   : > { %v4070_v63 = vadd.f32 %v3992_v8, %v3822_v20  ;;  %v2258_v18 = vpop.f32.mrb[9].mxu0  ;;  %v2456_v4 = vpack.c.bf16 %v2428_v32, %v2427_v30 }
 0x20f   : > { %v4071_v11 = vadd.f32 %v2258_v18, %v4940_v25  ;;  %v3993_v60 = vpop.f32.mrb[10].mxu0  ;;  %v2455_v13 = vpack.c.bf16 %v2426_v7, %v2425_v43 }
 0x210   : > { %v2399_v19 = vadd.f32 %v4070_v63, %v4989_v58  ;;  %v4072_v53 = vadd.f32 %v3993_v60, %v4942_v21  ;;  %v2261_v54 = vpop.f32.mrb[11].mxu0 }
 0x211   : > { %v2397_v55 = vadd.f32 %v4071_v11, %v4989_v58  ;;  %v4073_v56 = vadd.f32 %v2261_v54, %v4944_v26  ;;  %4034 = vmatprep.mubr.bf16.mxu1 %v2455_v13 }
 0x212   : > { %v2400_v15 = vadd.f32 %v4072_v53, %v4989_v58  ;;  %4035 = vmatmul.mubr.bf16.gmra.mrb[36].mxu1 %v2456_v4  ;;  %v2431_v29 = vmax.f32 %v2399_v19, 0.0 }
 0x213   : > { %v2398_v20 = vadd.f32 %v4073_v56, %v4989_v58  ;;  %v2429_v25 = vmax.f32 %v2397_v55, 0.0 }
 0x214   : > { %v2432_v0 = vmax.f32 %v2400_v15, 0.0 }
 0x215   : > { %v2430_v1 = vmax.f32 %v2398_v20, 0.0  ;;  %v3996_v2 = vpop.f32.mrb[12].mxu0 }
 0x216   : > { %v4074_v3 = vadd.f32 %v3996_v2, %v4946_v27  ;;  %v2274_v9 = vpop.f32.mrb[13].mxu0  ;;  %v2458_v21 = vpack.c.bf16 %v2432_v0, %v2431_v29 }
 0x217   : > { %v4075_v10 = vadd.f32 %v2274_v9, %v4948_v28  ;;  %v3997_v17 = vpop.f32.mrb[14].mxu0  ;;  %v2457_v31 = vpack.c.bf16 %v2430_v1, %v2429_v25 }
 0x218   : > { %v2403_v26 = vadd.f32 %v4074_v3, %v4989_v58  ;;  %v4076_v62 = vadd.f32 %v3997_v17, %v4950_v37  ;;  %v2277_v5 = vpop.f32.mrb[15].mxu0 }
 0x219   : > { %v2401_v6 = vadd.f32 %v4075_v10, %v4989_v58  ;;  %v4077_v22 = vadd.f32 %v2277_v5, %v4952_v38  ;;  %4038 = vmatprep.mubr.bf16.mxu1 %v2457_v31 }
 0x21a   : > { %v2404_v24 = vadd.f32 %v4076_v62, %v4989_v58  ;;  %4039 = vmatmul.mubr.bf16.gmra.mrb[40].mxu1 %v2458_v21  ;;  %v2435_v34 = vmax.f32 %v2403_v26, 0.0 }
 0x21b   : > { %v2402_v27 = vadd.f32 %v4077_v22, %v4989_v58  ;;  %v2433_v28 = vmax.f32 %v2401_v6, 0.0 }
 0x21c   : > { %v2436_v36 = vmax.f32 %v2404_v24, 0.0 }
 0x21d   : > { %v2434_v46 = vmax.f32 %v2402_v27, 0.0  ;;  %v4000_v48 = vpop.f32.mrb[16].mxu0 }
 0x21e   : > { %v4078_v59 = vadd.f32 %v4000_v48, %v4954_v23  ;;  %v2290_v61 = vpop.f32.mrb[17].mxu0  ;;  %v2460_v37 = vpack.c.bf16 %v2436_v36, %v2435_v34 }
 0x21f   : > { %v4079_v14 = vadd.f32 %v2290_v61, %v4956_v33  ;;  %v4001_v16 = vpop.f32.mrb[18].mxu0  ;;  %v2459_v30 = vpack.c.bf16 %v2434_v46, %v2433_v28 }
 0x220   : > { %v2407_v38 = vadd.f32 %v4078_v59, %v4989_v58  ;;  %v4080_v32 = vadd.f32 %v4001_v16, %v4958_v39  ;;  %v2293_v43 = vpop.f32.mrb[19].mxu0 }
 0x221   : > { %v2405_v7 = vadd.f32 %v4079_v14, %v4989_v58  ;;  %v4081_v8 = vadd.f32 %v2293_v43, %v4960_v40  ;;  %4042 = vmatprep.mubr.bf16.mxu1 %v2459_v30 }
 0x222   : > { %v2408_v63 = vadd.f32 %v4080_v32, %v4989_v58  ;;  %4043 = vmatmul.mubr.bf16.gmra.mrb[44].mxu1 %v2460_v37  ;;  %v2439_v18 = vmax.f32 %v2407_v38, 0.0 }
 0x223   : > { %v2406_v23 = vadd.f32 %v4081_v8, %v4989_v58  ;;  %v2437_v33 = vmax.f32 %v2405_v7, 0.0 }
 0x224   : > { %v2440_v4 = vmax.f32 %v2408_v63, 0.0 }
 0x225   : > { %v2438_v11 = vmax.f32 %v2406_v23, 0.0  ;;  %v4004_v60 = vpop.f32.mrb[20].mxu0 }
 0x226   : > { %v4082_v13 = vadd.f32 %v4004_v60, %v4962_v41  ;;  %v2306_v19 = vpop.f32.mrb[21].mxu0  ;;  %v2462_v39 = vpack.c.bf16 %v2440_v4, %v2439_v18 }
 0x227   : > { %v4083_v53 = vadd.f32 %v2306_v19, %v4964_v42  ;;  %v4005_v54 = vpop.f32.mrb[22].mxu0  ;;  %v2461_v55 = vpack.c.bf16 %v2438_v11, %v2437_v33  ;;  %v5056_v11 = vld [vmem:[%s5185_s2 + $0x2] ss:$0 sm:$0xff] }
 0x228   : > { %v2411_v40 = vadd.f32 %v4082_v13, %v4989_v58  ;;  %v4084_v56 = vadd.f32 %v4005_v54, %v4966_v35  ;;  %v2309_v15 = vpop.f32.mrb[23].mxu0  ;;  %v5063_v54 = vld [vmem:[%s5185_s2 + $0x3] ss:$0 sm:$0xff] }
 0x229   : > { %v2409_v20 = vadd.f32 %v4083_v53, %v4989_v58  ;;  %v4085_v29 = vadd.f32 %v2309_v15, %v4968_v45  ;;  %4046 = vmatprep.mubr.bf16.mxu1 %v2461_v55 }
 0x22a   : > { %v2412_v0 = vadd.f32 %v4084_v56, %v4989_v58  ;;  %4047 = vmatmul.mubr.bf16.gmra.mrb[48].mxu1 %v2462_v39  ;;  %v2443_v25 = vmax.f32 %v2411_v40, 0.0 }
 0x22b   : > { %v2410_v41 = vadd.f32 %v4085_v29, %v4989_v58  ;;  %v2441_v42 = vmax.f32 %v2409_v20, 0.0 }
 0x22c   : > { %v2444_v1 = vmax.f32 %v2412_v0, 0.0 }
 0x22d   : > { %v2442_v2 = vmax.f32 %v2410_v41, 0.0  ;;  %v4008_v3 = vpop.f32.mrb[24].mxu0 }
 0x22e   : > { %v4086_v9 = vadd.f32 %v4008_v3, %v4970_v44  ;;  %v2322_v21 = vpop.f32.mrb[25].mxu0  ;;  %v2464_v35 = vpack.c.bf16 %v2444_v1, %v2443_v25 }
 0x22f   : > { %v4087_v10 = vadd.f32 %v2322_v21, %v4972_v49  ;;  %v4009_v17 = vpop.f32.mrb[26].mxu0  ;;  %v2463_v31 = vpack.c.bf16 %v2442_v2, %v2441_v42 }
 0x230   : > { %v2415_v45 = vadd.f32 %v4086_v9, %v4989_v58  ;;  %v4088_v26 = vadd.f32 %v4009_v17, %v4974_v50  ;;  %v2325_v62 = vpop.f32.mrb[27].mxu0 }
 0x231   : > { %v2413_v5 = vadd.f32 %v4087_v10, %v4989_v58  ;;  %v4089_v6 = vadd.f32 %v2325_v62, %v4976_v51  ;;  %4050 = vmatprep.mubr.bf16.mxu1 %v2463_v31 }
 0x232   : > { %v2416_v22 = vadd.f32 %v4088_v26, %v4989_v58  ;;  %4051 = vmatmul.mubr.bf16.gmra.mrb[52].mxu1 %v2464_v35  ;;  %v2447_v24 = vmax.f32 %v2415_v45, 0.0 }
 0x233   : > { %v2414_v44 = vadd.f32 %v4089_v6, %v4989_v58  ;;  %v2445_v49 = vmax.f32 %v2413_v5, 0.0 }
 0x234   : > { %v2448_v27 = vmax.f32 %v2416_v22, 0.0 }
 0x235   : > { %v2446_v34 = vmax.f32 %v2414_v44, 0.0  ;;  %v4012_v36 = vpop.f32.mrb[28].mxu0 }
 0x236   : > { %v4090_v28 = vadd.f32 %v4012_v36, %v4978_v47  ;;  %v2338_v46 = vpop.f32.mrb[29].mxu0  ;;  %v2466_v50 = vpack.c.bf16 %v2448_v27, %v2447_v24 }
 0x237   : > { %v4091_v48 = vadd.f32 %v2338_v46, %v4980_v57  ;;  %v4013_v59 = vpop.f32.mrb[30].mxu0  ;;  %v2465_v61 = vpack.c.bf16 %v2446_v34, %v2445_v49 }
 0x238   : > { %v2419_v51 = vadd.f32 %v4090_v28, %v4989_v58  ;;  %v4092_v37 = vadd.f32 %v4013_v59, %v4982_v52  ;;  %v2341_v14 = vpop.f32.mrb[31].mxu0  ;;  %v5049_v52 = vld [vmem:[%s5185_s2 + $0x1] ss:$0 sm:$0xff] }
 0x239   : > { %v2417_v16 = vadd.f32 %v4091_v48, %v4989_v58  ;;  %v4093_v30 = vadd.f32 %v2341_v14, %v4984_v12  ;;  %4054 = vmatprep.mubr.bf16.mxu1 %v2465_v61 }
 0x23a   : > { %v2420_v38 = vadd.f32 %v4092_v37, %v4989_v58  ;;  %4055 = vmatmul.mubr.bf16.gmra.mrb[56].mxu1 %v2466_v50  ;;  %v2451_v32 = vmax.f32 %v2419_v51, 0.0 }
 0x23b   : > { %v2418_v47 = vadd.f32 %v4093_v30, %v4989_v58  ;;  %v2449_v57 = vmax.f32 %v2417_v16, 0.0 }
 0x23c   : > { %v2452_v43 = vmax.f32 %v2420_v38, 0.0 }
 0x23d   : > { %v2450_v7 = vmax.f32 %v2418_v47, 0.0 }
 0x23e   : > { %v2468_v8 = vpack.c.bf16 %v2452_v43, %v2451_v32 }
 0x23f   : > { %v2467_v63 = vpack.c.bf16 %v2450_v7, %v2449_v57 }
 0x241   : > { %4058 = vmatprep.mubr.bf16.mxu1 %v2467_v63 }
 0x242   : > { %4059 = vmatmul.mubr.bf16.gmra.mrb[60].mxu1 %v2468_v8 }
 0x2dd   : > { %v4032_v12 = vpop.f32.mrb[32].mxu1 }
 0x2de   : > { %v2581_v23 = vadd.f32 %v4032_v12, %v5049_v52  ;;  %v2572_v18 = vpop.f32.mrb[33].mxu1 }
 0x2df   : > { %v2573_v4 = vadd.f32 %v5049_v52, %v2572_v18  ;;  %v4033_v58 = vpop.f32.mrb[34].mxu1 }
 0x2e0   : > { %vm2701_vm4 = vcmp.ge.f32.partialorder %v2581_v23, 0.0  ;;  %v2733_v33 = vmul.f32 0.01, %v2581_v23  ;;  %v2584_v60 = vadd.f32 %v4033_v58, %v5049_v52  ;;  %v2575_v13 = vpop.f32.mrb[35].mxu1 }
 0x2e1   : > { %vm2699_vm5 = vcmp.ge.f32.partialorder %v2573_v4, 0.0  ;;  %v2731_v19 = vmul.f32 0.01, %v2573_v4  ;;  %v2576_v39 = vadd.f32 %v5049_v52, %v2575_v13 }
 0x2e2   : > { %v2765_v53 = vsel %vm2701_vm4, %v2581_v23, %v2733_v33  ;;  %vm2702_vm6 = vcmp.ge.f32.partialorder %v2584_v60, 0.0  ;;  %v2734_v55 = vmul.f32 0.01, %v2584_v60 }
 0x2e3   : > { %v2802_v40 = vmul.f32 %v5056_v11, %v2765_v53  ;;  %v2763_v56 = vsel %vm2699_vm5, %v2573_v4, %v2731_v19  ;;  %vm2700_vm7 = vcmp.ge.f32.partialorder %v2576_v39, 0.0  ;;  %v2732_v15 = vmul.f32 0.01, %v2576_v39 }
 0x2e4   : > { %v2800_v20 = vmul.f32 %v5056_v11, %v2763_v56  ;;  %v2766_v29 = vsel %vm2702_vm6, %v2584_v60, %v2734_v55 }
 0x2e5   : > { %v2839_v0 = vadd.f32 %v5063_v54, %v2802_v40  ;;  %v2803_v41 = vmul.f32 %v5056_v11, %v2766_v29  ;;  %v2764_v25 = vsel %vm2700_vm7, %v2576_v39, %v2732_v15  ;;  %v4036_v1 = vpop.f32.mrb[36].mxu1 }
 0x2e6   : > { %v2837_v42 = vadd.f32 %v5063_v54, %v2800_v20  ;;  %v2801_v2 = vmul.f32 %v5056_v11, %v2764_v25  ;;  %v2597_v3 = vadd.f32 %v4036_v1, %v5049_v52  ;;  %v2588_v9 = vpop.f32.mrb[37].mxu1 }
 0x2e7   : > { %v2840_v21 = vadd.f32 %v5063_v54, %v2803_v41  ;;  %v2589_v35 = vadd.f32 %v5049_v52, %v2588_v9  ;;  %v4037_v10 = vpop.f32.mrb[38].mxu1  ;;  %v2871_v17 = vmax.f32 %v2839_v0, 0.0 }
 0x2e8   : > { %v2838_v31 = vadd.f32 %v5063_v54, %v2801_v2  ;;  %vm2705_vm8 = vcmp.ge.f32.partialorder %v2597_v3, 0.0  ;;  %v2737_v45 = vmul.f32 0.01, %v2597_v3  ;;  %v2591_v26 = vpop.f32.mrb[39].mxu1  ;;  %v2600_v6 = vadd.f32 %v4037_v10, %v5049_v52 }
 0x2e9   : > { %v2872_v62 = vmax.f32 %v2840_v21, 0.0  ;;  %vm2703_vm9 = vcmp.ge.f32.partialorder %v2589_v35, 0.0  ;;  %v2735_v5 = vmul.f32 0.01, %v2589_v35  ;;  %v2869_v22 = vmax.f32 %v2837_v42, 0.0 }
 0x2ea   : > { %v2870_v44 = vmax.f32 %v2838_v31, 0.0  ;;  %v2769_v24 = vsel %vm2705_vm8, %v2597_v3, %v2737_v45  ;;  %v2592_v27 = vadd.f32 %v5049_v52, %v2591_v26  ;;  %vm2706_vm10 = vcmp.ge.f32.partialorder %v2600_v6, 0.0 }
 0x2eb   : > { %v3429_v49 = vpack.c.bf16 %v2872_v62, %v2871_v17  ;;  %v2806_v34 = vmul.f32 %v5056_v11, %v2769_v24  ;;  %v2767_v36 = vsel %vm2703_vm9, %v2589_v35, %v2735_v5  ;;  %v2738_v50 = vmul.f32 0.01, %v2600_v6 }
 0x2ec   : > { %v3424_v28 = vpack.c.bf16 %v2870_v44, %v2869_v22  ;;  %v2804_v46 = vmul.f32 %v5056_v11, %v2767_v36  ;;  %vm2704_vm11 = vcmp.ge.f32.partialorder %v2592_v27, 0.0  ;;  %v2736_v59 = vmul.f32 0.01, %v2592_v27 }
 0x2ed   : > { %3516 = vst [vmem:[%s5081_s18 + $0x8] sm:$0xff] %v3429_v49   ;;  %v2843_v48 = vadd.f32 %v5063_v54, %v2806_v34  ;;  %v4040_v61 = vpop.f32.mrb[40].mxu1  ;;  %v2770_v37 = vsel %vm2706_vm10, %v2600_v6, %v2738_v50 }
 0x2ee   : > { %3425 = vst [vmem:[%s5081_s18] sm:$0xff] %v3424_v28   ;;  %v2841_v51 = vadd.f32 %v5063_v54, %v2804_v46  ;;  %v2613_v14 = vadd.f32 %v4040_v61, %v5049_v52  ;;  %v2604_v16 = vpop.f32.mrb[41].mxu1  ;;  %v2807_v30 = vmul.f32 %v5056_v11, %v2770_v37  ;;  %v2768_v38 = vsel %vm2704_vm11, %v2592_v27, %v2736_v59 }
 0x2ef   : > { %v2605_v47 = vadd.f32 %v5049_v52, %v2604_v16  ;;  %v4041_v32 = vpop.f32.mrb[42].mxu1  ;;  %v2875_v43 = vmax.f32 %v2843_v48, 0.0  ;;  %v2805_v57 = vmul.f32 %v5056_v11, %v2768_v38 }
 0x2f0   : > { %vm2709_vm12 = vcmp.ge.f32.partialorder %v2613_v14, 0.0  ;;  %v2741_v7 = vmul.f32 0.01, %v2613_v14  ;;  %v2607_v8 = vpop.f32.mrb[43].mxu1  ;;  %v2844_v63 = vadd.f32 %v5063_v54, %v2807_v30  ;;  %v2616_v23 = vadd.f32 %v4041_v32, %v5049_v52 }
 0x2f1   : > { %vm2707_vm13 = vcmp.ge.f32.partialorder %v2605_v47, 0.0  ;;  %v2739_v12 = vmul.f32 0.01, %v2605_v47  ;;  %v2873_v18 = vmax.f32 %v2841_v51, 0.0  ;;  %v2842_v4 = vadd.f32 %v5063_v54, %v2805_v57 }
 0x2f2   : > { %v2773_v58 = vsel %vm2709_vm12, %v2613_v14, %v2741_v7  ;;  %v2608_v33 = vadd.f32 %v5049_v52, %v2607_v8  ;;  %v2876_v60 = vmax.f32 %v2844_v63, 0.0  ;;  %vm2710_vm14 = vcmp.ge.f32.partialorder %v2616_v23, 0.0 }
 0x2f3   : > { %v2810_v13 = vmul.f32 %v5056_v11, %v2773_v58  ;;  %v2771_v19 = vsel %vm2707_vm13, %v2605_v47, %v2739_v12  ;;  %v2874_v39 = vmax.f32 %v2842_v4, 0.0  ;;  %v2742_v55 = vmul.f32 0.01, %v2616_v23 }
 0x2f4   : > { %v2808_v53 = vmul.f32 %v5056_v11, %v2771_v19  ;;  %vm2708_vm15 = vcmp.ge.f32.partialorder %v2608_v33, 0.0  ;;  %v3439_v40 = vpack.c.bf16 %v2876_v60, %v2875_v43  ;;  %v2740_v15 = vmul.f32 0.01, %v2608_v33 }
 0x2f5   : > { %v2847_v56 = vadd.f32 %v5063_v54, %v2810_v13  ;;  %v4044_v20 = vpop.f32.mrb[44].mxu1  ;;  %v3434_v29 = vpack.c.bf16 %v2874_v39, %v2873_v18  ;;  %v2774_v41 = vsel %vm2710_vm14, %v2616_v23, %v2742_v55 }
 0x2f6   : > { %v2845_v0 = vadd.f32 %v5063_v54, %v2808_v53  ;;  %v2629_v25 = vadd.f32 %v4044_v20, %v5049_v52  ;;  %v2620_v1 = vpop.f32.mrb[45].mxu1  ;;  %3518 = vst [vmem:[%s5081_s18 + $0x18] sm:$0xff] %v3439_v40   ;;  %v2811_v42 = vmul.f32 %v5056_v11, %v2774_v41  ;;  %v2772_v2 = vsel %vm2708_vm15, %v2608_v33, %v2740_v15 }
 0x2f7   : > { %v2621_v3 = vadd.f32 %v5049_v52, %v2620_v1  ;;  %v4045_v9 = vpop.f32.mrb[46].mxu1  ;;  %3517 = vst [vmem:[%s5081_s18 + $0x10] sm:$0xff] %v3434_v29   ;;  %v2879_v21 = vmax.f32 %v2847_v56, 0.0  ;;  %v2809_v35 = vmul.f32 %v5056_v11, %v2772_v2 }
 0x2f8   : > { %vm2713_vm0 = vcmp.ge.f32.partialorder %v2629_v25, 0.0  ;;  %v2745_v10 = vmul.f32 0.01, %v2629_v25  ;;  %v2623_v17 = vpop.f32.mrb[47].mxu1  ;;  %v2848_v31 = vadd.f32 %v5063_v54, %v2811_v42  ;;  %v2632_v26 = vadd.f32 %v4045_v9, %v5049_v52 }
 0x2f9   : > { %vm2711_vm1 = vcmp.ge.f32.partialorder %v2621_v3, 0.0  ;;  %v2743_v45 = vmul.f32 0.01, %v2621_v3  ;;  %v2877_v62 = vmax.f32 %v2845_v0, 0.0  ;;  %v2846_v5 = vadd.f32 %v5063_v54, %v2809_v35 }
 0x2fa   : > { %v2777_v6 = vsel %vm2713_vm0, %v2629_v25, %v2745_v10  ;;  %v2624_v22 = vadd.f32 %v5049_v52, %v2623_v17  ;;  %v2880_v44 = vmax.f32 %v2848_v31, 0.0  ;;  %vm2714_vm2 = vcmp.ge.f32.partialorder %v2632_v26, 0.0 }
 0x2fb   : > { %v2814_v24 = vmul.f32 %v5056_v11, %v2777_v6  ;;  %v2775_v27 = vsel %vm2711_vm1, %v2621_v3, %v2743_v45  ;;  %v2878_v49 = vmax.f32 %v2846_v5, 0.0  ;;  %v2746_v36 = vmul.f32 0.01, %v2632_v26 }
 0x2fc   : > { %v2812_v34 = vmul.f32 %v5056_v11, %v2775_v27  ;;  %vm2712_vm3 = vcmp.ge.f32.partialorder %v2624_v22, 0.0  ;;  %v3449_v28 = vpack.c.bf16 %v2880_v44, %v2879_v21  ;;  %v2744_v50 = vmul.f32 0.01, %v2624_v22 }
 0x2fd   : > { %v2851_v46 = vadd.f32 %v5063_v54, %v2814_v24  ;;  %v4048_v48 = vpop.f32.mrb[48].mxu1  ;;  %v3444_v59 = vpack.c.bf16 %v2878_v49, %v2877_v62  ;;  %v2778_v51 = vsel %vm2714_vm2, %v2632_v26, %v2746_v36 }
 0x2fe   : > { %v2849_v61 = vadd.f32 %v5063_v54, %v2812_v34  ;;  %v2645_v37 = vadd.f32 %v4048_v48, %v5049_v52  ;;  %v2636_v14 = vpop.f32.mrb[49].mxu1  ;;  %3520 = vst [vmem:[%s5081_s18 + $0x28] sm:$0xff] %v3449_v28   ;;  %v2815_v16 = vmul.f32 %v5056_v11, %v2778_v51  ;;  %v2776_v30 = vsel %vm2712_vm3, %v2624_v22, %v2744_v50 }
 0x2ff   : > { %v2637_v38 = vadd.f32 %v5049_v52, %v2636_v14  ;;  %v4049_v47 = vpop.f32.mrb[50].mxu1  ;;  %3519 = vst [vmem:[%s5081_s18 + $0x20] sm:$0xff] %v3444_v59   ;;  %v2883_v32 = vmax.f32 %v2851_v46, 0.0  ;;  %v2813_v43 = vmul.f32 %v5056_v11, %v2776_v30 }
 0x300   : > { %vm2717_vm4 = vcmp.ge.f32.partialorder %v2645_v37, 0.0  ;;  %v2749_v57 = vmul.f32 0.01, %v2645_v37  ;;  %v2639_v7 = vpop.f32.mrb[51].mxu1  ;;  %v2852_v8 = vadd.f32 %v5063_v54, %v2815_v16  ;;  %v2648_v12 = vadd.f32 %v4049_v47, %v5049_v52 }
 0x301   : > { %vm2715_vm5 = vcmp.ge.f32.partialorder %v2637_v38, 0.0  ;;  %v2747_v63 = vmul.f32 0.01, %v2637_v38  ;;  %v2881_v23 = vmax.f32 %v2849_v61, 0.0  ;;  %v2850_v18 = vadd.f32 %v5063_v54, %v2813_v43 }
 0x302   : > { %v2781_v4 = vsel %vm2717_vm4, %v2645_v37, %v2749_v57  ;;  %v2640_v58 = vadd.f32 %v5049_v52, %v2639_v7  ;;  %v2884_v33 = vmax.f32 %v2852_v8, 0.0  ;;  %vm2718_vm6 = vcmp.ge.f32.partialorder %v2648_v12, 0.0 }
 0x303   : > { %v2818_v60 = vmul.f32 %v5056_v11, %v2781_v4  ;;  %v2779_v13 = vsel %vm2715_vm5, %v2637_v38, %v2747_v63  ;;  %v2882_v19 = vmax.f32 %v2850_v18, 0.0  ;;  %v2750_v53 = vmul.f32 0.01, %v2648_v12 }
 0x304   : > { %v2816_v39 = vmul.f32 %v5056_v11, %v2779_v13  ;;  %vm2716_vm7 = vcmp.ge.f32.partialorder %v2640_v58, 0.0  ;;  %v3459_v55 = vpack.c.bf16 %v2884_v33, %v2883_v32  ;;  %v2748_v56 = vmul.f32 0.01, %v2640_v58 }
 0x305   : > { %v2855_v40 = vadd.f32 %v5063_v54, %v2818_v60  ;;  %v4052_v15 = vpop.f32.mrb[52].mxu1  ;;  %v3454_v20 = vpack.c.bf16 %v2882_v19, %v2881_v23  ;;  %v2782_v0 = vsel %vm2718_vm6, %v2648_v12, %v2750_v53 }
 0x306   : > { %v2853_v29 = vadd.f32 %v5063_v54, %v2816_v39  ;;  %v2661_v41 = vadd.f32 %v4052_v15, %v5049_v52  ;;  %v2652_v25 = vpop.f32.mrb[53].mxu1  ;;  %3522 = vst [vmem:[%s5081_s18 + $0x38] sm:$0xff] %v3459_v55   ;;  %v2819_v1 = vmul.f32 %v5056_v11, %v2782_v0  ;;  %v2780_v42 = vsel %vm2716_vm7, %v2640_v58, %v2748_v56 }
 0x307   : > { %v2653_v2 = vadd.f32 %v5049_v52, %v2652_v25  ;;  %v4053_v3 = vpop.f32.mrb[54].mxu1  ;;  %3521 = vst [vmem:[%s5081_s18 + $0x30] sm:$0xff] %v3454_v20   ;;  %v2887_v9 = vmax.f32 %v2855_v40, 0.0  ;;  %v2817_v21 = vmul.f32 %v5056_v11, %v2780_v42 }
 0x308   : > { %vm2721_vm8 = vcmp.ge.f32.partialorder %v2661_v41, 0.0  ;;  %v2753_v35 = vmul.f32 0.01, %v2661_v41  ;;  %v2655_v10 = vpop.f32.mrb[55].mxu1  ;;  %v2856_v17 = vadd.f32 %v5063_v54, %v2819_v1  ;;  %v2664_v45 = vadd.f32 %v4053_v3, %v5049_v52 }
 0x309   : > { %vm2719_vm9 = vcmp.ge.f32.partialorder %v2653_v2, 0.0  ;;  %v2751_v31 = vmul.f32 0.01, %v2653_v2  ;;  %v2885_v26 = vmax.f32 %v2853_v29, 0.0  ;;  %v2854_v62 = vadd.f32 %v5063_v54, %v2817_v21 }
 0x30a   : > { %v2785_v5 = vsel %vm2721_vm8, %v2661_v41, %v2753_v35  ;;  %v2656_v6 = vadd.f32 %v5049_v52, %v2655_v10  ;;  %v2888_v22 = vmax.f32 %v2856_v17, 0.0  ;;  %vm2722_vm10 = vcmp.ge.f32.partialorder %v2664_v45, 0.0 }
 0x30b   : > { %v2822_v44 = vmul.f32 %v5056_v11, %v2785_v5  ;;  %v2783_v24 = vsel %vm2719_vm9, %v2653_v2, %v2751_v31  ;;  %v2886_v27 = vmax.f32 %v2854_v62, 0.0  ;;  %v2754_v34 = vmul.f32 0.01, %v2664_v45 }
 0x30c   : > { %v2820_v49 = vmul.f32 %v5056_v11, %v2783_v24  ;;  %vm2720_vm11 = vcmp.ge.f32.partialorder %v2656_v6, 0.0  ;;  %v3469_v36 = vpack.c.bf16 %v2888_v22, %v2887_v9  ;;  %v2752_v46 = vmul.f32 0.01, %v2656_v6 }
 0x30d   : > { %v2859_v28 = vadd.f32 %v5063_v54, %v2822_v44  ;;  %v4056_v50 = vpop.f32.mrb[56].mxu1  ;;  %v3464_v48 = vpack.c.bf16 %v2886_v27, %v2885_v26  ;;  %v2786_v61 = vsel %vm2722_vm10, %v2664_v45, %v2754_v34 }
 0x30e   : > { %v2857_v59 = vadd.f32 %v5063_v54, %v2820_v49  ;;  %v2677_v51 = vadd.f32 %v4056_v50, %v5049_v52  ;;  %v2668_v37 = vpop.f32.mrb[57].mxu1  ;;  %3524 = vst [vmem:[%s5081_s18 + $0x48] sm:$0xff] %v3469_v36   ;;  %v2823_v14 = vmul.f32 %v5056_v11, %v2786_v61  ;;  %v2784_v16 = vsel %vm2720_vm11, %v2656_v6, %v2752_v46 }
 0x30f   : > { %v2669_v30 = vadd.f32 %v5049_v52, %v2668_v37  ;;  %v4057_v38 = vpop.f32.mrb[58].mxu1  ;;  %3523 = vst [vmem:[%s5081_s18 + $0x40] sm:$0xff] %v3464_v48   ;;  %v2891_v47 = vmax.f32 %v2859_v28, 0.0  ;;  %v2821_v32 = vmul.f32 %v5056_v11, %v2784_v16 }
 0x310   : > { %vm2725_vm12 = vcmp.ge.f32.partialorder %v2677_v51, 0.0  ;;  %v2757_v43 = vmul.f32 0.01, %v2677_v51  ;;  %v2671_v57 = vpop.f32.mrb[59].mxu1  ;;  %v2860_v7 = vadd.f32 %v5063_v54, %v2823_v14  ;;  %v2680_v63 = vadd.f32 %v4057_v38, %v5049_v52 }
 0x311   : > { %vm2723_vm13 = vcmp.ge.f32.partialorder %v2669_v30, 0.0  ;;  %v2755_v8 = vmul.f32 0.01, %v2669_v30  ;;  %v2889_v12 = vmax.f32 %v2857_v59, 0.0  ;;  %v2858_v23 = vadd.f32 %v5063_v54, %v2821_v32 }
 0x312   : > { %v2789_v18 = vsel %vm2725_vm12, %v2677_v51, %v2757_v43  ;;  %v2672_v4 = vadd.f32 %v5049_v52, %v2671_v57  ;;  %v2892_v58 = vmax.f32 %v2860_v7, 0.0  ;;  %vm2726_vm14 = vcmp.ge.f32.partialorder %v2680_v63, 0.0 }
 0x313   : > { %v2826_v33 = vmul.f32 %v5056_v11, %v2789_v18  ;;  %v2787_v60 = vsel %vm2723_vm13, %v2669_v30, %v2755_v8  ;;  %v2890_v13 = vmax.f32 %v2858_v23, 0.0  ;;  %v2758_v39 = vmul.f32 0.01, %v2680_v63 }
 0x314   : > { %v2824_v19 = vmul.f32 %v5056_v11, %v2787_v60  ;;  %vm2724_vm15 = vcmp.ge.f32.partialorder %v2672_v4, 0.0  ;;  %v3479_v53 = vpack.c.bf16 %v2892_v58, %v2891_v47  ;;  %v2756_v40 = vmul.f32 0.01, %v2672_v4 }
 0x315   : > { %v2863_v55 = vadd.f32 %v5063_v54, %v2826_v33  ;;  %v4060_v56 = vpop.f32.mrb[60].mxu1  ;;  %v3474_v15 = vpack.c.bf16 %v2890_v13, %v2889_v12  ;;  %v2790_v29 = vsel %vm2726_vm14, %v2680_v63, %v2758_v39 }
 0x316   : > { %v2861_v20 = vadd.f32 %v5063_v54, %v2824_v19  ;;  %v2693_v0 = vadd.f32 %v4060_v56, %v5049_v52  ;;  %v2684_v41 = vpop.f32.mrb[61].mxu1  ;;  %3526 = vst [vmem:[%s5081_s18 + $0x58] sm:$0xff] %v3479_v53   ;;  %v2827_v25 = vmul.f32 %v5056_v11, %v2790_v29  ;;  %v2788_v1 = vsel %vm2724_vm15, %v2672_v4, %v2756_v40 }
 0x317   : > { %v2685_v42 = vadd.f32 %v5049_v52, %v2684_v41  ;;  %v4061_v2 = vpop.f32.mrb[62].mxu1  ;;  %3525 = vst [vmem:[%s5081_s18 + $0x50] sm:$0xff] %v3474_v15   ;;  %v2895_v3 = vmax.f32 %v2863_v55, 0.0  ;;  %v2825_v9 = vmul.f32 %v5056_v11, %v2788_v1 }
 0x318   : > { %vm2729_vm0 = vcmp.ge.f32.partialorder %v2693_v0, 0.0  ;;  %v2761_v21 = vmul.f32 0.01, %v2693_v0  ;;  %v2687_v35 = vpop.f32.mrb[63].mxu1  ;;  %v2864_v10 = vadd.f32 %v5063_v54, %v2827_v25  ;;  %v2696_v31 = vadd.f32 %v4061_v2, %v5049_v52 }
 0x319   : > { %vm2727_vm1 = vcmp.ge.f32.partialorder %v2685_v42, 0.0  ;;  %v2759_v17 = vmul.f32 0.01, %v2685_v42  ;;  %v2893_v45 = vmax.f32 %v2861_v20, 0.0  ;;  %v2862_v26 = vadd.f32 %v5063_v54, %v2825_v9 }
 0x31a   : > { %v2793_v62 = vsel %vm2729_vm0, %v2693_v0, %v2761_v21  ;;  %v2688_v5 = vadd.f32 %v5049_v52, %v2687_v35  ;;  %v2896_v6 = vmax.f32 %v2864_v10, 0.0  ;;  %vm2730_vm2 = vcmp.ge.f32.partialorder %v2696_v31, 0.0 }
 0x31b   : > { %v2830_v22 = vmul.f32 %v5056_v11, %v2793_v62  ;;  %v2791_v44 = vsel %vm2727_vm1, %v2685_v42, %v2759_v17  ;;  %v2894_v24 = vmax.f32 %v2862_v26, 0.0  ;;  %v2762_v49 = vmul.f32 0.01, %v2696_v31 }
 0x31c   : > { %v2828_v27 = vmul.f32 %v5056_v11, %v2791_v44  ;;  %vm2728_vm3 = vcmp.ge.f32.partialorder %v2688_v5, 0.0  ;;  %v3489_v34 = vpack.c.bf16 %v2896_v6, %v2895_v3  ;;  %v2760_v36 = vmul.f32 0.01, %v2688_v5 }
 0x31d   : > { %v3484_v28 = vpack.c.bf16 %v2894_v24, %v2893_v45  ;;  %v2794_v46 = vsel %vm2730_vm2, %v2696_v31, %v2762_v49  ;;  %v2867_v52 = vadd.f32 %v5063_v54, %v2830_v22 }
 0x31e   : > { %3528 = vst [vmem:[%s5081_s18 + $0x68] sm:$0xff] %v3489_v34   ;;  %v2831_v50 = vmul.f32 %v5056_v11, %v2794_v46  ;;  %v2792_v48 = vsel %vm2728_vm3, %v2688_v5, %v2760_v36  ;;  %v2865_v59 = vadd.f32 %v5063_v54, %v2828_v27 }
 0x31f   : > { %3527 = vst [vmem:[%s5081_s18 + $0x60] sm:$0xff] %v3484_v28   ;;  %v2829_v61 = vmul.f32 %v5056_v11, %v2792_v48  ;;  %v2899_v14 = vmax.f32 %v2867_v52, 0.0 }
 0x320   : > { %v2868_v51 = vadd.f32 %v5063_v54, %v2831_v50  ;;  %v2897_v30 = vmax.f32 %v2865_v59, 0.0 }
 0x321   : > { %v2866_v37 = vadd.f32 %v5063_v54, %v2829_v61 }
 0x322   : > { %v2900_v16 = vmax.f32 %v2868_v51, 0.0 }
 0x323   : > { %v2898_v38 = vmax.f32 %v2866_v37, 0.0 }
 0x324   : > { %v3499_v47 = vpack.c.bf16 %v2900_v16, %v2899_v14 }
 0x325   : > { %v3494_v32 = vpack.c.bf16 %v2898_v38, %v2897_v30 }
 0x326   : > { %3530 = vst [vmem:[%s5081_s18 + $0x78] sm:$0xff] %v3499_v47  }
 0x327   : > { %3529 = vst [vmem:[%s5081_s18 + $0x70] sm:$0xff] %v3494_v32  }
 0x328 PF: > { %s14_s15 = sadd.s32 1, %s4350_s15  }
 0x329   : > { %p11_p4 = scmp.ge.s32.totalorder %s14_s15, 4  }
 0x32b   :  { %13 = sbr.rel (!%p11_p4) target bundleno = 1 (0x1), region = 76 }

// kernel: cdfenet_forward.4
= control target key start
LH: loop header
LB: loop body
LE: loop exit
PB: predicated region body
PF: predicated region fallthrough
CT: control target
= control target key end

     0   :  { %s4589_s12 = smov 0   ;;  %s5259_s0 = inlined_call_operand.vmem [shape: bf16[2,16,16,128], index: 0, kind: input, shape index: {}]   ;;  %s5260_s1 = inlined_call_operand.vmem [shape: bf16[9,128,128], index: 1, kind: input, shape index: {}]   ;;  %s5261_s2 = inlined_call_operand.vmem [shape: f32[8,128], index: 2, kind: input, shape index: {}]   ;;  %s5262_s3 = inlined_call_operand.vmem [shape: bf16[2,256,128], index: 3, kind: output, shape index: {}]  }
   0x1 LB: > { %s3079_s13 = sadd.s32 4294967295, %s4566_s12   ;;  %p3083_p0 = scmp.ge.s32.totalorder %s4566_s12, 1  ;;  %s4566_s12 = sphi %s4589_s12, %s13_s12  }
   0x2   : > { %p137_p1 = scmp.lt.s32.totalorder %s4566_s12, 3 }
   0x4   : > { %p138_p2 = pnand %p3083_p0, %p137_p1 }
   0x5   : > { %v4460_v0 = vld [vmem:[%s5260_s1 + $0xc0] sm:$0xff] (!%p138_p2)   ;;  %v4462_v2 = vld [vmem:[%s5260_s1 + $0xc8] sm:$0xff] (!%p138_p2)   ;;  %p4608_p3 = scmp.lt.s32.totalorder (!%p138_p2), %s3079_s13, 1  ;;  %v4568_v3 = vmov (!%p138_p2), 0.0   ;;  %v4464_v5 = vld [vmem:[%s5260_s1 + $0xd0] sm:$0xff] (!%p138_p2)  }
   0x6   : > { %141 = sbr.rel (%p138_p2) target bundleno = 544 (0x220), region = 32  ;;  %v4461_v1 = vld [vmem:[%s5260_s1 + $0x100] sm:$0xff] (!%p138_p2)   ;;  %3747 = vmatprep.subr.bf16.mxu1 (!%p138_p2), %v4460_v0  ;;  %180 = vst [vmem:[#allocation2 + $0x18] sm:$0x1] (!%p138_p2), %v4568_v3  ;;  %172 = vst [vmem:[#allocation2] sm:$0xff] (!%p138_p2), %v4568_v3  ;;  %v4463_v4 = vld [vmem:[%s5260_s1 + $0x108] sm:$0xff] (!%p138_p2)  }
   0x7   : > { %173 = vst [vmem:[#allocation2 + $0x8] sm:$0xff] (!%p138_p2), %v4568_v3  ;;  %174 = vst [vmem:[#allocation2 + $0x10] sm:$0x3] (!%p138_p2), %v4568_v3  ;;  %3939 = vmatprep.subr.bf16.mxu0 (!%p138_p2), %v4461_v1  ;;  %3748 = vmatpush3.bf16.msra.mxu1 (!%p138_p2), %v4460_v0  ;;  %v4465_v6 = vld [vmem:[%s5260_s1 + $0x110] sm:$0xff] (!%p138_p2)   ;;  %v4466_v7 = vld [vmem:[%s5260_s1 + $0xd8] sm:$0xff] (!%p138_p2)  }
   0x8   : > { %176 = vst [vmem:[#allocation2 + $0x198] sm:$0xff] (!%p138_p2), %v4568_v3  ;;  %177 = vst [vmem:[#allocation2 + $0x1a0] sm:$0xff] (!%p138_p2), %v4568_v3  ;;  %3940 = vmatpush3.bf16.msra.mxu0 (!%p138_p2), %v4461_v1  ;;  %3749 = vmatprep.subr.bf16.mxu1 (!%p138_p2), %v4462_v2  ;;  %v4467_v8 = vld [vmem:[%s5260_s1 + $0x118] sm:$0xff] (!%p138_p2)   ;;  %v4468_v9 = vld [vmem:[%s5260_s1 + $0xe0] sm:$0xff] (!%p138_p2)  }
   0x9   : > { %178 = vst [vmem:[#allocation2 + $0x1a8] sm:$0x3] (!%p138_p2), %v4568_v3  ;;  %181 = vst [vmem:[#allocation2 + $0x30] sm:$0x1] (!%p138_p2), %v4568_v3  ;;  %3941 = vmatprep.subr.bf16.mxu0 (!%p138_p2), %v4463_v4  ;;  %v4469_v10 = vld [vmem:[%s5260_s1 + $0x120] sm:$0xff] (!%p138_p2)   ;;  %v4470_v11 = vld [vmem:[%s5260_s1 + $0xe8] sm:$0xff] (!%p138_p2)  }
   0xa   : > { %182 = vst [vmem:[#allocation2 + $0x48] sm:$0x1] (!%p138_p2), %v4568_v3  ;;  %183 = vst [vmem:[#allocation2 + $0x60] sm:$0x1] (!%p138_p2), %v4568_v3  ;;  %v4471_v15 = vld [vmem:[%s5260_s1 + $0x128] sm:$0xff] (!%p138_p2)   ;;  %v4472_v20 = vld [vmem:[%s5260_s1 + $0xf0] sm:$0xff] (!%p138_p2)  }
   0xb   : > { %184 = vst [vmem:[#allocation2 + $0x78] sm:$0x1] (!%p138_p2), %v4568_v3  ;;  %185 = vst [vmem:[#allocation2 + $0x90] sm:$0x1] (!%p138_p2), %v4568_v3  ;;  %3750 = vmatpush3.bf16.msra.mxu1 (!%p138_p2), %v4462_v2  ;;  %v4473_v21 = vld [vmem:[%s5260_s1 + $0x130] sm:$0xff] (!%p138_p2)   ;;  %v4474_v28 = vld [vmem:[%s5260_s1 + $0xf8] sm:$0xff] (!%p138_p2)  }
   0xc   : > { %186 = vst [vmem:[#allocation2 + $0xa8] sm:$0x1] (!%p138_p2), %v4568_v3  ;;  %187 = vst [vmem:[#allocation2 + $0xc0] sm:$0x1] (!%p138_p2), %v4568_v3  ;;  %3942 = vmatpush3.bf16.msra.mxu0 (!%p138_p2), %v4463_v4  ;;  %3751 = vmatprep.subr.bf16.mxu1 (!%p138_p2), %v4464_v5  ;;  %v4475_v30 = vld [vmem:[%s5260_s1 + $0x138] sm:$0xff] (!%p138_p2)   ;;  %v4477_v41 = vld [vmem:[%s5260_s1] sm:$0xff] (!%p138_p2)  }
   0xd   : > { %188 = vst [vmem:[#allocation2 + $0xd8] sm:$0x1] %v4568_v3  ;;  %189 = vst [vmem:[#allocation2 + $0xf0] sm:$0x1] %v4568_v3  ;;  %s5265_s13 = smov (!%p4608_p3, %s3079_s13), 1  ;;  %3943 = vmatprep.subr.bf16.mxu0 %v4465_v6  ;;  %v4479_v42 = vld [vmem:[%s5260_s1 + $0x1c0] sm:$0xff]  }
   0xe   : > { %190 = vst [vmem:[#allocation2 + $0x108] sm:$0x1] %v4568_v3  ;;  %191 = vst [vmem:[#allocation2 + $0x120] sm:$0x1] %v4568_v3  ;;  %s3323_s4 = sshll.u32 %s5265_s13, 7  ;;  %v4480_v48 = vld [vmem:[%s5260_s1 + $0x1c8] sm:$0xff]  }
   0xf   : > { %192 = vst [vmem:[#allocation2 + $0x138] sm:$0x1] %v4568_v3  ;;  %193 = vst [vmem:[#allocation2 + $0x150] sm:$0x1] %v4568_v3  ;;  %3752 = vmatpush3.bf16.msra.mxu1 %v4464_v5  ;;  %s4687_s11 = scalar_lea.vmem %s5259_s0, %s3323_s4  ;;  %v4482_v54 = vld [vmem:[%s5260_s1 + $0x8] sm:$0xff]   ;;  %v4487_v60 = vld [vmem:[%s5260_s1 + $0x10] sm:$0xff]   ;;  %s5203_s19 = scalar_lea.vmem %s5262_s3, %s3323_s4 }
  0x10   : > { %194 = vst [vmem:[#allocation2 + $0x168] sm:$0x1] %v4568_v3  ;;  %195 = vst [vmem:[#allocation2 + $0x180] sm:$0x1] %v4568_v3  ;;  %3944 = vmatpush3.bf16.msra.mxu0 %v4465_v6  ;;  %3753 = vmatprep.subr.bf16.mxu1 %v4466_v7  ;;  %v3358_v12 = vld [vmem:[%s4687_s11] sm:$0xff]   ;;  %v3501_v14 = vld [vmem:[%s4687_s11 + $0x8] sm:$0xff]  }
  0x11   : > { %198 = vst [vmem:[#allocation2 + $0x29] sm:$0x1] %v4568_v3  ;;  %199 = vst [vmem:[#allocation2 + $0x41] sm:$0x1] %v4568_v3  ;;  %3945 = vmatprep.subr.bf16.mxu0 %v4467_v8  ;;  %v4476_v13 = vld [vmem:[%s4687_s11] sm:$0xff]  ;;  %v3359_v16 = vunpack.c.l.bf16 %v3358_v12  ;;  %v3360_v17 = vunpack.c.h.bf16 %v3358_v12  ;;  %v3363_v18 = vunpack.c.l.bf16 %v3501_v14  ;;  %v3364_v19 = vunpack.c.h.bf16 %v3501_v14  ;;  %v3502_v22 = vld [vmem:[%s4687_s11 + $0x10] sm:$0xff]  }
  0x12   : > { %200 = vst [vmem:[#allocation2 + $0x59] sm:$0x1] %v4568_v3  ;;  %201 = vst [vmem:[#allocation2 + $0x71] sm:$0x1] %v4568_v3  ;;  %3955 = vmatprep.mubr.bf16.mxu0 %v4476_v13  ;;  %v3367_v23 = vunpack.c.l.bf16 %v3502_v22  ;;  %v3368_v24 = vunpack.c.h.bf16 %v3502_v22  ;;  %v3503_v25 = vld [vmem:[%s4687_s11 + $0x18] sm:$0xff]   ;;  %v3504_v29 = vld [vmem:[%s4687_s11 + $0x20] sm:$0xff]  }
  0x13   : > { %202 = vst [vmem:[#allocation2 + $0x89] sm:$0x1] %v4568_v3  ;;  %203 = vst [vmem:[#allocation2 + $0xa1] sm:$0x1] %v4568_v3  ;;  %3754 = vmatpush3.bf16.msra.mxu1 %v4466_v7  ;;  %v3371_v26 = vunpack.c.l.bf16 %v3503_v25  ;;  %v3372_v27 = vunpack.c.h.bf16 %v3503_v25  ;;  %v3375_v31 = vunpack.c.l.bf16 %v3504_v29  ;;  %v3376_v32 = vunpack.c.h.bf16 %v3504_v29  ;;  %v3505_v33 = vld [vmem:[%s4687_s11 + $0x28] sm:$0xff]   ;;  %v3506_v47 = vld [vmem:[%s4687_s11 + $0x30] sm:$0xff]  }
  0x14   : > { %204 = vst [vmem:[#allocation2 + $0xb9] sm:$0x1] %v4568_v3  ;;  %205 = vst [vmem:[#allocation2 + $0xd1] sm:$0x1] %v4568_v3  ;;  %3946 = vmatpush3.bf16.msra.mxu0 %v4467_v8  ;;  %3755 = vmatprep.subr.bf16.mxu1 %v4468_v9  ;;  %v3379_v36 = vunpack.c.l.bf16 %v3505_v33  ;;  %v3380_v37 = vunpack.c.h.bf16 %v3505_v33  ;;  %v4726_v46 = vld [vmem:[%s4687_s11 + $0x8] sm:$0xff]  ;;  %v3383_v50 = vunpack.c.l.bf16 %v3506_v47  ;;  %v3384_v51 = vunpack.c.h.bf16 %v3506_v47  ;;  %v3507_v52 = vld [vmem:[%s4687_s11 + $0x38] sm:$0xff]  }
  0x15   : > { %206 = vst [vmem:[#allocation2 + $0xe9] sm:$0x1] %v4568_v3  ;;  %207 = vst [vmem:[#allocation2 + $0x101] sm:$0x1] %v4568_v3  ;;  %3947 = vmatprep.subr.bf16.mxu0 %v4469_v10  ;;  %v4736_v53 = vld [vmem:[%s4687_s11 + $0x10] sm:$0xff]  ;;  %v3387_v55 = vunpack.c.l.bf16 %v3507_v52  ;;  %v3388_v56 = vunpack.c.h.bf16 %v3507_v52  ;;  %v3508_v0 = vld [vmem:[%s4687_s11 + $0x40] sm:$0xff]  }
  0x16   : > { %208 = vst [vmem:[#allocation2 + $0x119] sm:$0x1] %v4568_v3  ;;  %209 = vst [vmem:[#allocation2 + $0x131] sm:$0x1] %v4568_v3  ;;  %v4484_v63 = vld [vmem:[%s5260_s1 + $0x1d0] sm:$0xff]   ;;  %v3509_v1 = vld [vmem:[%s4687_s11 + $0x48] sm:$0xff]   ;;  %v3391_v4 = vunpack.c.l.bf16 %v3508_v0  ;;  %v3392_v5 = vunpack.c.h.bf16 %v3508_v0 }
  0x17   : > { %210 = vst [vmem:[#allocation2 + $0x149] sm:$0x1] %v4568_v3  ;;  %211 = vst [vmem:[#allocation2 + $0x161] sm:$0x1] %v4568_v3  ;;  %3756 = vmatpush3.bf16.msra.mxu1 %v4468_v9  ;;  %v4756_v2 = vld [vmem:[%s4687_s11 + $0x18] sm:$0xff]  ;;  %v3395_v6 = vunpack.c.l.bf16 %v3509_v1  ;;  %v3396_v7 = vunpack.c.h.bf16 %v3509_v1  ;;  %v4761_v9 = vld [vmem:[%s4687_s11 + $0x20] sm:$0xff] }
  0x18   : > { %212 = vst [vmem:[#allocation2 + $0x179] sm:$0x1] %v4568_v3  ;;  %213 = vst [vmem:[#allocation2 + $0x191] sm:$0x1] %v4568_v3  ;;  %3948 = vmatpush3.bf16.msra.mxu0 %v4469_v10  ;;  %3757 = vmatprep.subr.bf16.mxu1 %v4470_v11  ;;  %v3510_v10 = vld [vmem:[%s4687_s11 + $0x50] sm:$0xff]   ;;  %v4485_v12 = vld [vmem:[%s5260_s1 + $0x1d8] sm:$0xff]  }
  0x19   : > { %179 = vst [vmem:[#allocation2] sm:$0x1] %v4568_v3  ;;  %196 = vst [vmem:[#allocation2 + $0x198] sm:$0x1] %v4568_v3  ;;  %3949 = vmatprep.subr.bf16.mxu0 %v4471_v15  ;;  %v4492_v13 = vld [vmem:[%s5260_s1 + $0x18] sm:$0xff]   ;;  %v3399_v14 = vunpack.c.l.bf16 %v3510_v10  ;;  %v3512_v22 = vld [vmem:[%s4687_s11 + $0x60] sm:$0xff]  }
  0x1a   : > { %197 = vst [vmem:[#allocation2 + $0x11] sm:$0x1] %v4568_v3  ;;  %214 = vst [vmem:[#allocation2 + $0x1a9] sm:$0x1] %v4568_v3  ;;  %v3407_v25 = vunpack.c.l.bf16 %v3512_v22  ;;  %v4500_v52 = vld [vmem:[%s5260_s1 + $0x30] sm:$0xff]   ;;  %v4836_v1 = vld [vmem:[%s5260_s1 + $0x180] sm:$0xff]  }
  0x1b   : > { %280 = vst [vmem:[#allocation2 + $0x19] sm:$0xff] %v3359_v16  ;;  %281 = vst [vmem:[#allocation2 + $0x21] sm:$0xff] %v3360_v17  ;;  %3758 = vmatpush3.bf16.msra.mxu1 %v4470_v11  ;;  %v3511_v11 = vld [vmem:[%s4687_s11 + $0x58] sm:$0xff]  }
  0x1c   : > { %282 = vst [vmem:[#allocation2 + $0x31] sm:$0xff] %v3363_v18  ;;  %283 = vst [vmem:[#allocation2 + $0x39] sm:$0xff] %v3364_v19  ;;  %3950 = vmatpush3.bf16.msra.mxu0 %v4471_v15  ;;  %3759 = vmatprep.subr.bf16.mxu1 %v4472_v20  ;;  %v3400_v15 = vunpack.c.h.bf16 %v3510_v10  ;;  %v3403_v16 = vunpack.c.l.bf16 %v3511_v11  ;;  %v3404_v17 = vunpack.c.h.bf16 %v3511_v11  ;;  %v4501_v11 = vld [vmem:[%s5260_s1 + $0x90] sm:$0xff]  }
  0x1d   : > { %284 = vst [vmem:[#allocation2 + $0x49] sm:$0xff] %v3367_v23  ;;  %285 = vst [vmem:[#allocation2 + $0x51] sm:$0xff] %v3368_v24  ;;  %3951 = vmatprep.subr.bf16.mxu0 %v4473_v21  ;;  %v3513_v23 = vld [vmem:[%s4687_s11 + $0x68] sm:$0xff]   ;;  %v4489_v24 = vld [vmem:[%s5260_s1 + $0x1e0] sm:$0xff]  }
  0x1e   : > { %286 = vst [vmem:[#allocation2 + $0x61] sm:$0xff] %v3371_v26  ;;  %287 = vst [vmem:[#allocation2 + $0x69] sm:$0xff] %v3372_v27  ;;  %v3408_v26 = vunpack.c.h.bf16 %v3512_v22  ;;  %v3411_v27 = vunpack.c.l.bf16 %v3513_v23 }
  0x1f   : > { %3760 = vmatpush3.bf16.msra.mxu1 %v4472_v20  ;;  %288 = vst [vmem:[#allocation2 + $0x79] sm:$0xff] %v3375_v31  ;;  %289 = vst [vmem:[#allocation2 + $0x81] sm:$0xff] %v3376_v32  ;;  %v3514_v31 = vld [vmem:[%s4687_s11 + $0x70] sm:$0xff]   ;;  %v4787_v32 = vld [vmem:[%s4687_s11 + $0x28] sm:$0xff] }
  0x20   : > { %3952 = vmatpush3.bf16.msra.mxu0 %v4473_v21  ;;  %3761 = vmatprep.subr.bf16.mxu1 %v4474_v28  ;;  %290 = vst [vmem:[#allocation2 + $0x91] sm:$0xff] %v3379_v36  ;;  %291 = vst [vmem:[#allocation2 + $0x99] sm:$0xff] %v3380_v37  ;;  %v4792_v36 = vld [vmem:[%s4687_s11 + $0x30] sm:$0xff]  ;;  %v3515_v37 = vld [vmem:[%s4687_s11 + $0x78] sm:$0xff]  }
  0x21   : > { %3953 = vmatprep.subr.bf16.mxu0 %v4475_v30  ;;  %292 = vst [vmem:[#allocation2 + $0xa9] sm:$0xff] %v3383_v50  ;;  %293 = vst [vmem:[#allocation2 + $0xb1] sm:$0xff] %v3384_v51  ;;  %v4494_v50 = vld [vmem:[%s5260_s1 + $0x1f0] sm:$0xff]  }
  0x22   : > { %v315_v34 = vld [vmem:[#allocation2 + $0x18] sm:$0xff]  ;;  %v316_v35 = vld [vmem:[#allocation2 + $0x20] sm:$0xff]  ;;  %294 = vst [vmem:[#allocation2 + $0xc1] sm:$0xff] %v3387_v55  ;;  %295 = vst [vmem:[#allocation2 + $0xc9] sm:$0xff] %v3388_v56 }
  0x23   : > { %v4714_v38 = vpack.c.bf16 %v316_v35, %v315_v34  ;;  %v317_v39 = vld [vmem:[#allocation2 + $0x30] sm:$0xff]  ;;  %v318_v40 = vld [vmem:[#allocation2 + $0x38] sm:$0xff]  ;;  %3762 = vmatpush3.bf16.msra.mxu1 %v4474_v28  ;;  %296 = vst [vmem:[#allocation2 + $0xd9] sm:$0xff] %v3391_v4  ;;  %297 = vst [vmem:[#allocation2 + $0xe1] sm:$0xff] %v3392_v5  ;;  %v3412_v28 = vunpack.c.h.bf16 %v3513_v23  ;;  %v3415_v34 = vunpack.c.l.bf16 %v3514_v31  ;;  %v3416_v35 = vunpack.c.h.bf16 %v3514_v31 }
  0x24   : > { %v4723_v43 = vpack.c.bf16 %v318_v40, %v317_v39  ;;  %v319_v44 = vld [vmem:[#allocation2 + $0x48] sm:$0xff]  ;;  %v320_v45 = vld [vmem:[#allocation2 + $0x50] sm:$0xff]  ;;  %3954 = vmatpush3.bf16.msra.mxu0 %v4475_v30  ;;  %3795 = vmatprep.subr.bf16.mxu1 %v4477_v41  ;;  %298 = vst [vmem:[#allocation2 + $0xf1] sm:$0xff] %v3395_v6  ;;  %299 = vst [vmem:[#allocation2 + $0xf9] sm:$0xff] %v3396_v7  ;;  %v3419_v40 = vunpack.c.l.bf16 %v3515_v37 }
  0x25   : > { %3763 = vmatprep.mubr.bf16.mxu1 %v4714_v38  ;;  %v4732_v49 = vpack.c.bf16 %v320_v45, %v319_v44  ;;  %3987 = vmatprep.subr.bf16.mxu0 %v4479_v42  ;;  %v321_v57 = vld [vmem:[#allocation2 + $0x60] sm:$0xff]  ;;  %v322_v58 = vld [vmem:[#allocation2 + $0x68] sm:$0xff]  ;;  %300 = vst [vmem:[#allocation2 + $0x109] sm:$0xff] %v3399_v14  ;;  %301 = vst [vmem:[#allocation2 + $0x111] sm:$0xff] %v3400_v15 }
  0x26   : > { %3764 = vmatmul.mubr.bf16.vlgmr.msra.gmra.mrb[0].mxu1 %v4723_v43  ;;  %v323_v59 = vld [vmem:[#allocation2 + $0x78] sm:$0xff]  ;;  %v324_v61 = vld [vmem:[#allocation2 + $0x80] sm:$0xff]  ;;  %v4748_v62 = vpack.c.bf16 %v322_v58, %v321_v57  ;;  %302 = vst [vmem:[#allocation2 + $0x121] sm:$0xff] %v3403_v16  ;;  %303 = vst [vmem:[#allocation2 + $0x129] sm:$0xff] %v3404_v17 }
  0x27   : > { %3956 = vmatmul.mubr.bf16.vlgmr.msra.gmra.mrb[0].mxu0 %v4726_v46  ;;  %3796 = vmatpush3.bf16.msra.mxu1 %v4477_v41  ;;  %v4758_v8 = vpack.c.bf16 %v324_v61, %v323_v59  ;;  %v325_v18 = vld [vmem:[#allocation2 + $0x90] sm:$0xff]  ;;  %v326_v19 = vld [vmem:[#allocation2 + $0x98] sm:$0xff]  ;;  %v4496_v30 = vld [vmem:[%s5260_s1 + $0x20] sm:$0xff]   ;;  %304 = vst [vmem:[#allocation2 + $0x139] sm:$0xff] %v3407_v25  ;;  %v3420_v41 = vunpack.c.h.bf16 %v3515_v37 }
  0x28   : > { %3988 = vmatpush3.bf16.msra.mxu0 %v4479_v42  ;;  %3767 = vmatprep.mubr.bf16.mxu1 %v4732_v49  ;;  %v327_v20 = vld [vmem:[#allocation2 + $0xa8] sm:$0xff]  ;;  %v328_v21 = vld [vmem:[#allocation2 + $0xb0] sm:$0xff]  ;;  %v4780_v29 = vpack.c.bf16 %v326_v19, %v325_v18  ;;  %305 = vst [vmem:[#allocation2 + $0x141] sm:$0xff] %v3408_v26  ;;  %306 = vst [vmem:[#allocation2 + $0x151] sm:$0xff] %v3411_v27 }
  0x29   : > { %3989 = vmatprep.subr.bf16.mxu0 %v4480_v48  ;;  %3959 = vmatprep.mubr.bf16.mxu0 %v4736_v53  ;;  %v4789_v33 = vpack.c.bf16 %v328_v21, %v327_v20  ;;  %307 = vst [vmem:[#allocation2 + $0x159] sm:$0xff] %v3412_v28  ;;  %v4490_v39 = vld [vmem:[%s5260_s1 + $0x1e8] sm:$0xff]   ;;  %308 = vst [vmem:[#allocation2 + $0x169] sm:$0xff] %v3415_v34  ;;  %v329_v42 = vld [vmem:[#allocation2 + $0xc0] sm:$0xff] }
  0x2a   : > { %3797 = vmatprep.subr.bf16.mxu1 %v4482_v54  ;;  %309 = vst [vmem:[#allocation2 + $0x171] sm:$0xff] %v3416_v35  ;;  %v4498_v44 = vld [vmem:[%s5260_s1 + $0x28] sm:$0xff]   ;;  %310 = vst [vmem:[#allocation2 + $0x181] sm:$0xff] %v3419_v40  ;;  %v331_v47 = vld [vmem:[#allocation2 + $0xd8] sm:$0xff] }
  0x2b   : > { %3798 = vmatpush3.bf16.msra.mxu1 %v4482_v54  ;;  %v330_v45 = vld [vmem:[#allocation2 + $0xc8] sm:$0xff]  ;;  %311 = vst [vmem:[#allocation2 + $0x189] sm:$0xff] %v3420_v41  ;;  %v4814_v54 = vld [vmem:[%s4687_s11 + $0x38] sm:$0xff]  ;;  %v333_v58 = vld [vmem:[#allocation2 + $0xf0] sm:$0xff] }
  0x2c   : > { %3990 = vmatpush3.bf16.msra.mxu0 %v4480_v48  ;;  %3799 = vmatprep.subr.bf16.mxu1 %v4487_v60  ;;  %v332_v48 = vld [vmem:[#allocation2 + $0xe0] sm:$0xff]  ;;  %v4808_v51 = vpack.c.bf16 %v330_v45, %v329_v42  ;;  %v4495_v56 = vld [vmem:[%s5260_s1 + $0x1f8] sm:$0xff]   ;;  %v336_v61 = vld [vmem:[#allocation2 + $0x110] sm:$0xff] }
  0x2d   : > { %3991 = vmatprep.subr.bf16.mxu0 %v4484_v63  ;;  %v4816_v55 = vpack.c.bf16 %v332_v48, %v331_v47  ;;  %v4502_v57 = vld [vmem:[%s5260_s1 + $0x38] sm:$0xff]   ;;  %v337_v5 = vld [vmem:[#allocation2 + $0x120] sm:$0xff]  ;;  %v338_v6 = vld [vmem:[#allocation2 + $0x128] sm:$0xff] }
  0x2e   : > { %3768 = vmatmul.mubr.bf16.gmra.mrb[4].mxu1 %v4748_v62  ;;  %v334_v59 = vld [vmem:[#allocation2 + $0xf8] sm:$0xff]  ;;  %v4508_v18 = vld [vmem:[%s5260_s1 + $0xa0] sm:$0xff]   ;;  %v4512_v21 = vld [vmem:[%s5260_s1 + $0xa8] sm:$0xff]  }
  0x2f   : > { %3960 = vmatmul.mubr.bf16.gmra.mrb[4].mxu0 %v4756_v2  ;;  %3771 = vmatprep.mubr.bf16.mxu1 %v4758_v8  ;;  %v4831_v0 = vpack.c.bf16 %v334_v59, %v333_v58  ;;  %v339_v7 = vld [vmem:[#allocation2 + $0x138] sm:$0xff]  ;;  %v340_v10 = vld [vmem:[#allocation2 + $0x140] sm:$0xff]  ;;  %v341_v14 = vld [vmem:[#allocation2 + $0x150] sm:$0xff] }
  0x30   : > { %3992 = vmatpush3.bf16.msra.mxu0 %v4484_v63  ;;  %3963 = vmatprep.mubr.bf16.mxu0 %v4761_v9  ;;  %v4497_v63 = vld [vmem:[%s5260_s1 + $0x80] sm:$0xff]   ;;  %v342_v15 = vld [vmem:[#allocation2 + $0x158] sm:$0xff]  ;;  %v343_v16 = vld [vmem:[#allocation2 + $0x168] sm:$0xff] }
  0x31   : > { %3993 = vmatprep.subr.bf16.mxu0 %v4485_v12  ;;  %3800 = vmatpush3.bf16.msra.mxu1 %v4487_v60  ;;  %v335_v60 = vld [vmem:[#allocation2 + $0x108] sm:$0xff]  ;;  %v344_v17 = vld [vmem:[#allocation2 + $0x170] sm:$0xff]  ;;  %v4865_v19 = vpack.c.bf16 %v342_v15, %v341_v14  ;;  %v345_v22 = vld [vmem:[#allocation2 + $0x180] sm:$0xff] }
  0x32   : > { %3801 = vmatprep.subr.bf16.mxu1 %v4492_v13  ;;  %v4838_v4 = vpack.c.bf16 %v336_v61, %v335_v60  ;;  %v4867_v20 = vpack.c.bf16 %v344_v17, %v343_v16  ;;  %v346_v23 = vld [vmem:[#allocation2 + $0x188] sm:$0xff]  ;;  %v4516_v25 = vld [vmem:[%s5260_s1 + $0xb0] sm:$0xff]   ;;  %v4882_v27 = vld [vmem:[%s4687_s11 + $0x40] sm:$0xff] }
  0x33   : > { %v4879_v26 = vpack.c.bf16 %v346_v23, %v345_v22  ;;  %v4519_v31 = vld [vmem:[%s5260_s1 + $0xb8] sm:$0xff]   ;;  %v4900_v34 = vld [vmem:[%s4687_s11 + $0x50] sm:$0xff]  ;;  %v4510_v37 = vld [vmem:[%s5260_s1 + $0x188] sm:$0xff]  }
  0x34   : > { %3994 = vmatpush3.bf16.msra.mxu0 %v4485_v12  ;;  %v4851_v12 = vpack.c.bf16 %v338_v6, %v337_v5  ;;  %v4903_v35 = vld [vmem:[%s4687_s11 + $0x58] sm:$0xff]  ;;  %v4918_v40 = vld [vmem:[%s4687_s11 + $0x60] sm:$0xff]  ;;  %v4921_v41 = vld [vmem:[%s4687_s11 + $0x68] sm:$0xff] }
  0x35   : > { %3995 = vmatprep.subr.bf16.mxu0 %v4489_v24  ;;  %3802 = vmatpush3.bf16.msra.mxu1 %v4492_v13  ;;  %v4853_v13 = vpack.c.bf16 %v340_v10, %v339_v7  ;;  %v4520_v42 = vld [vmem:[%s5260_s1 + $0x1a0] sm:$0xff]   ;;  %v4937_v45 = vld [vmem:[%s4687_s11 + $0x78] sm:$0xff]  ;;  %v4522_v47 = vld [vmem:[%s5260_s1 + $0x1a8] sm:$0xff]  }
  0x36   : > { %3772 = vmatmul.mubr.bf16.gmra.mrb[8].mxu1 %v4780_v29  ;;  %3803 = vmatprep.subr.bf16.mxu1 %v4496_v30  ;;  %v1110_v48 = vld [vmem:[#allocation2 + $0x199] sm:$0xff]  ;;  %v4523_v10 = vld [vmem:[%s5260_s1 + $0x148] sm:$0xff]   ;;  %v4525_v16 = vld [vmem:[%s5260_s1 + $0x150] sm:$0xff]  }
  0x37   : > { %3964 = vmatmul.mubr.bf16.gmra.mrb[8].mxu0 %v4787_v32  ;;  %3775 = vmatprep.mubr.bf16.mxu1 %v4789_v33  ;;  %v4526_v60 = vld [vmem:[%s5260_s1 + $0x1b8] sm:$0xff]   ;;  %v4957_v5 = vld [vmem:[%s5260_s1 + $0x40] sm:$0xff]   ;;  %v1913_v15 = vld [vmem:[#allocation2 + $0x6a] sm:$0xff] }
  0x38   : > { %3996 = vmatpush3.bf16.msra.mxu0 %v4489_v24  ;;  %3967 = vmatprep.mubr.bf16.mxu0 %v4792_v36  ;;  %v313_v24 = vld [vmem:[#allocation2] sm:$0xff] }
  0x39   : > { %3997 = vmatprep.subr.bf16.mxu0 %v4490_v39  ;;  %3804 = vmatpush3.bf16.msra.mxu1 %v4496_v30  ;;  %v349_v28 = vpack.c.bf16 %v4568_v3, %v313_v24  ;;  %v4886_v30 = vld [vmem:[%s4687_s11 + $0x48] sm:$0xff]  ;;  %v4897_v3 = vld [vmem:[%s5260_s1 + $0x140] sm:$0xff]   ;;  %v1916_v24 = vld [vmem:[#allocation2 + $0x92] sm:$0xff] }
  0x3a   : > { %3805 = vmatprep.subr.bf16.mxu1 %v4498_v44  ;;  %v1906_v61 = vld [vmem:[#allocation2 + $0x1a] sm:$0xff]  ;;  %v1912_v14 = vld [vmem:[#allocation2 + $0x62] sm:$0xff] }
  0x3b   : > { %v1914_v22 = vld [vmem:[#allocation2 + $0x7a] sm:$0xff]  ;;  %v1915_v23 = vld [vmem:[#allocation2 + $0x82] sm:$0xff] }
  0x3c   : > { %3998 = vmatpush3.bf16.msra.mxu0 %v4490_v39  ;;  %v4514_v39 = vld [vmem:[%s5260_s1 + $0x190] sm:$0xff]  }
  0x3d   : > { %3999 = vmatprep.subr.bf16.mxu0 %v4494_v50  ;;  %3806 = vmatpush3.bf16.msra.mxu1 %v4498_v44  ;;  %v4934_v44 = vld [vmem:[%s4687_s11 + $0x70] sm:$0xff] }
  0x3e   : > { %3776 = vmatmul.mubr.bf16.gmra.mrb[12].mxu1 %v4808_v51  ;;  %3807 = vmatprep.subr.bf16.mxu1 %v4500_v52 }
  0x3f   : > { %3968 = vmatmul.mubr.bf16.gmra.mrb[12].mxu0 %v4814_v54  ;;  %3779 = vmatprep.mubr.bf16.mxu1 %v4816_v55 }
  0x40   : > { %4000 = vmatpush3.bf16.msra.mxu0 %v4494_v50  ;;  %4003 = vmatprep.mubr.bf16.mxu0 %v4726_v46  ;;  %v4499_v46 = vld [vmem:[%s5260_s1 + $0x88] sm:$0xff]  }
  0x41   : > { %4001 = vmatprep.subr.bf16.mxu0 %v4495_v56  ;;  %3808 = vmatpush3.bf16.msra.mxu1 %v4500_v52  ;;  %v1111_v50 = vld [vmem:[#allocation2 + $0x1a1] sm:$0xff] }
  0x42   : > { %3809 = vmatprep.subr.bf16.mxu1 %v4502_v57  ;;  %v1904_v52 = vld [vmem:[#allocation2 + $0x2] sm:$0xff]  ;;  %v1645_v58 = vpack.c.bf16 %v1111_v50, %v1110_v48  ;;  %v4533_v48 = vld [vmem:[%s5260_s1 + $0x170] sm:$0xff]  }
  0x44   : > { %4002 = vmatpush3.bf16.msra.mxu0 %v4495_v56  ;;  %v1905_v56 = vld [vmem:[#allocation2 + $0xa] sm:$0xff] }
  0x45   : > { %4035 = vmatprep.subr.bf16.mxu0 %v4497_v63  ;;  %3810 = vmatpush3.bf16.msra.mxu1 %v4502_v57  ;;  %v4524_v57 = vld [vmem:[%s5260_s1 + $0x1b0] sm:$0xff]   ;;  %v1940_v59 = vpack.c.bf16 %v1905_v56, %v1904_v52  ;;  %v4535_v56 = vld [vmem:[%s5260_s1 + $0x178] sm:$0xff]  }
  0x46   : > { %3780 = vmatmul.mubr.bf16.gmra.mrb[16].mxu1 %v4831_v0  ;;  %3843 = vmatprep.subr.bf16.mxu1 %v4836_v1 }
  0x47   : > { %4004 = vmatmul.mubr.bf16.vlgmr.msra.gmra.mrb[0].mxu0 %v4736_v53  ;;  %3783 = vmatprep.mubr.bf16.mxu1 %v4838_v4  ;;  %v4504_v53 = vld [vmem:[%s5260_s1 + $0x98] sm:$0xff]  }
  0x48   : > { %4036 = vmatpush3.bf16.msra.mxu0 %v4497_v63  ;;  %4007 = vmatprep.mubr.bf16.mxu0 %v4756_v2  ;;  %v1907_v63 = vld [vmem:[#allocation2 + $0x22] sm:$0xff] }
  0x49   : > { %4037 = vmatprep.subr.bf16.mxu0 %v4499_v46  ;;  %v4959_v6 = vpack.c.bf16 %v1907_v63, %v1906_v61  ;;  %v5017_v61 = vld [vmem:[%s5260_s1 + $0x200] sm:$0xff]  }
  0x4c   : > { %4038 = vmatpush3.bf16.msra.mxu0 %v4499_v46  ;;  %v1909_v46 = vld [vmem:[#allocation2 + $0x3a] sm:$0xff] }
  0x4d   : > { %4039 = vmatprep.subr.bf16.mxu0 %v4501_v11 }
  0x4e   : > { %3784 = vmatmul.mubr.bf16.gmra.mrb[20].mxu1 %v4851_v12 }
  0x4f   : > { %4008 = vmatmul.mubr.bf16.gmra.mrb[4].mxu0 %v4761_v9  ;;  %3787 = vmatprep.mubr.bf16.mxu1 %v4853_v13 }
  0x50   : > { %4011 = vmatprep.mubr.bf16.mxu0 %v4787_v32  ;;  %4040 = vmatpush3.bf16.msra.mxu0 %v4501_v11  ;;  %v1910_v11 = vld [vmem:[#allocation2 + $0x4a] sm:$0xff] }
  0x51   : > { %4041 = vmatprep.subr.bf16.mxu0 %v4504_v53 }
  0x54   : > { %4042 = vmatpush3.bf16.msra.mxu0 %v4504_v53  ;;  %v1911_v53 = vld [vmem:[#allocation2 + $0x52] sm:$0xff] }
  0x55   : > { %4043 = vmatprep.subr.bf16.mxu0 %v4508_v18  ;;  %v4975_v17 = vpack.c.bf16 %v1911_v53, %v1910_v11  ;;  %v4532_v11 = vld [vmem:[%s5260_s1 + $0x50] sm:$0xff]   ;;  %v1928_v53 = vld [vmem:[#allocation2 + $0x122] sm:$0xff] }
  0x56   : > { %3788 = vmatmul.mubr.bf16.gmra.mrb[24].mxu1 %v4865_v19 }
  0x57   : > { %4012 = vmatmul.mubr.bf16.gmra.mrb[8].mxu0 %v4792_v36  ;;  %3791 = vmatprep.mubr.bf16.mxu1 %v4867_v20 }
  0x58   : > { %4015 = vmatprep.mubr.bf16.mxu0 %v4814_v54  ;;  %4044 = vmatpush3.bf16.msra.mxu0 %v4508_v18  ;;  %v4977_v18 = vpack.c.bf16 %v1913_v15, %v1912_v14  ;;  %v1929_v14 = vld [vmem:[#allocation2 + $0x12a] sm:$0xff] }
  0x59   : > { %4045 = vmatprep.subr.bf16.mxu0 %v4512_v21 }
  0x5c   : > { %4046 = vmatpush3.bf16.msra.mxu0 %v4512_v21  ;;  %v4527_v21 = vld [vmem:[%s5260_s1 + $0x158] sm:$0xff]  }
  0x5d   : > { %4047 = vmatprep.subr.bf16.mxu0 %v4516_v25 }
  0x5e   : > { %3792 = vmatmul.mubr.bf16.gmra.mrb[28].mxu1 %v4879_v26 }
  0x5f   : > { %4016 = vmatmul.mubr.bf16.gmra.mrb[12].mxu0 %v4882_v27  ;;  %3811 = vmatprep.mubr.bf16.mxu1 %v349_v28  ;;  %v4529_v28 = vld [vmem:[%s5260_s1 + $0x160] sm:$0xff]  }
  0x60   : > { %4019 = vmatprep.mubr.bf16.mxu0 %v4886_v30  ;;  %4048 = vmatpush3.bf16.msra.mxu0 %v4516_v25  ;;  %v1917_v25 = vld [vmem:[#allocation2 + $0x9a] sm:$0xff] }
  0x61   : > { %4049 = vmatprep.subr.bf16.mxu0 %v4519_v31 }
  0x64   : > { %4050 = vmatpush3.bf16.msra.mxu0 %v4519_v31  ;;  %v4989_v31 = vpack.c.bf16 %v1915_v23, %v1914_v22  ;;  %v1933_v22 = vld [vmem:[#allocation2 + $0x15a] sm:$0xff] }
  0x65   : > { %4083 = vmatprep.subr.bf16.mxu0 %v4897_v3  ;;  %v4536_v23 = vld [vmem:[%s5260_s1 + $0x60] sm:$0xff]  }
  0x66   : > { %3812 = vmatmul.mubr.bf16.vlgmr.msra.gmra.mrb[0].mxu1 %v4714_v38  ;;  %v4518_v38 = vld [vmem:[%s5260_s1 + $0x198] sm:$0xff]  }
  0x67   : > { %4020 = vmatmul.mubr.bf16.gmra.mrb[16].mxu0 %v4900_v34  ;;  %3844 = vmatpush3.bf16.msra.mxu1 %v4836_v1  ;;  %v1908_v1 = vld [vmem:[#allocation2 + $0x32] sm:$0xff] }
  0x68   : > { %3815 = vmatprep.mubr.bf16.mxu1 %v4723_v43  ;;  %4023 = vmatprep.mubr.bf16.mxu0 %v4903_v35  ;;  %v4961_v7 = vpack.c.bf16 %v1909_v46, %v1908_v1  ;;  %v1926_v46 = vld [vmem:[#allocation2 + $0x10a] sm:$0xff] }
  0x69   : > { %3845 = vmatprep.subr.bf16.mxu1 %v4510_v37 }
  0x6b   : > { %3846 = vmatpush3.bf16.msra.mxu1 %v4510_v37  ;;  %v4531_v37 = vld [vmem:[%s5260_s1 + $0x168] sm:$0xff]  }
  0x6c   : > { %3847 = vmatprep.subr.bf16.mxu1 %v4514_v39 }
  0x6e   : > { %3816 = vmatmul.mubr.bf16.gmra.mrb[4].mxu1 %v4732_v49 }
  0x6f   : > { %4024 = vmatmul.mubr.bf16.gmra.mrb[20].mxu0 %v4918_v40  ;;  %3819 = vmatprep.mubr.bf16.mxu1 %v4748_v62 }
  0x70   : > { %4027 = vmatprep.mubr.bf16.mxu0 %v4921_v41  ;;  %3848 = vmatpush3.bf16.msra.mxu1 %v4514_v39  ;;  %v1918_v39 = vld [vmem:[#allocation2 + $0xaa] sm:$0xff] }
  0x71   : > { %3849 = vmatprep.subr.bf16.mxu1 %v4518_v38 }
  0x74   : > { %3850 = vmatpush3.bf16.msra.mxu1 %v4518_v38  ;;  %v1919_v38 = vld [vmem:[#allocation2 + $0xb2] sm:$0xff] }
  0x75   : > { %3851 = vmatprep.subr.bf16.mxu1 %v4520_v42  ;;  %v5003_v50 = vpack.c.bf16 %v1919_v38, %v1918_v39  ;;  %v4548_v38 = vld [vmem:[%s5260_s1 + $0x100] sm:$0xff]  }
  0x76   : > { %3820 = vmatmul.mubr.bf16.gmra.mrb[8].mxu1 %v4758_v8 }
  0x77   : > { %4028 = vmatmul.mubr.bf16.gmra.mrb[24].mxu0 %v4934_v44  ;;  %3823 = vmatprep.mubr.bf16.mxu1 %v4780_v29 }
  0x78   : > { %4031 = vmatprep.mubr.bf16.mxu0 %v4937_v45  ;;  %3852 = vmatpush3.bf16.msra.mxu1 %v4520_v42  ;;  %v1920_v42 = vld [vmem:[#allocation2 + $0xc2] sm:$0xff] }
  0x79   : > { %3853 = vmatprep.subr.bf16.mxu1 %v4522_v47 }
  0x7c   : > { %3854 = vmatpush3.bf16.msra.mxu1 %v4522_v47  ;;  %v1921_v47 = vld [vmem:[#allocation2 + $0xca] sm:$0xff] }
  0x7d   : > { %3855 = vmatprep.subr.bf16.mxu1 %v4524_v57  ;;  %v5005_v52 = vpack.c.bf16 %v1921_v47, %v1920_v42  ;;  %v4546_v42 = vld [vmem:[%s5260_s1 + $0x230] sm:$0xff]   ;;  %v4549_v47 = vld [vmem:[#allocation2 + $0x8] sm:$0xff] }
  0x7e   : > { %3824 = vmatmul.mubr.bf16.gmra.mrb[12].mxu1 %v4789_v33 }
  0x7f   : > { %4032 = vmatmul.mubr.bf16.gmra.mrb[28].mxu0 %v1645_v58  ;;  %3827 = vmatprep.mubr.bf16.mxu1 %v4808_v51  ;;  %v1923_v58 = vld [vmem:[#allocation2 + $0xe2] sm:$0xff] }
  0x80   : > { %4051 = vmatprep.mubr.bf16.mxu0 %v1940_v59  ;;  %3856 = vmatpush3.bf16.msra.mxu1 %v4524_v57  ;;  %v1922_v57 = vld [vmem:[#allocation2 + $0xda] sm:$0xff]  ;;  %v1924_v59 = vld [vmem:[#allocation2 + $0xf2] sm:$0xff] }
  0x81   : > { %3857 = vmatprep.subr.bf16.mxu1 %v4526_v60  ;;  %v5019_v63 = vpack.c.bf16 %v1923_v58, %v1922_v57  ;;  %v4551_v57 = vld [vmem:[%s4687_s11 + $0x8] sm:$0xff] }
  0x82   : > { %v4552_v58 = vld [vmem:[%s5260_s1 + $0x108] sm:$0xff]  }
  0x84   : > { %3858 = vmatpush3.bf16.msra.mxu1 %v4526_v60  ;;  %v1925_v60 = vld [vmem:[#allocation2 + $0xfa] sm:$0xff] }
  0x85   : > { %3891 = vmatprep.subr.bf16.mxu1 %v4957_v5  ;;  %v5021_v1 = vpack.c.bf16 %v1925_v60, %v1924_v59  ;;  %v4553_v59 = vld [vmem:[%s5260_s1 + $0x110] sm:$0xff]  }
  0x86   : > { %3828 = vmatmul.mubr.bf16.gmra.mrb[16].mxu1 %v4816_v55  ;;  %v4554_v60 = vld [vmem:[%s4687_s11 + $0x10] sm:$0xff] }
  0x87   : > { %4052 = vmatmul.mubr.bf16.vlgmr.msra.gmra.mrb[0].mxu0 %v4959_v6  ;;  %3831 = vmatprep.mubr.bf16.mxu1 %v4831_v0 }
  0x88   : > { %4084 = vmatpush3.bf16.msra.mxu0 %v4897_v3  ;;  %4055 = vmatprep.mubr.bf16.mxu0 %v4961_v7  ;;  %v4991_v3 = vpack.c.bf16 %v1917_v25, %v1916_v24 }
  0x89   : > { %4085 = vmatprep.subr.bf16.mxu0 %v4523_v10 }
  0x8c   : > { %4086 = vmatpush3.bf16.msra.mxu0 %v4523_v10  ;;  %v1927_v10 = vld [vmem:[#allocation2 + $0x112] sm:$0xff] }
  0x8d   : > { %4087 = vmatprep.subr.bf16.mxu0 %v4525_v16  ;;  %v5035_v15 = vpack.c.bf16 %v1927_v10, %v1926_v46  ;;  %v1937_v46 = vld [vmem:[#allocation2 + $0x18a] sm:$0xff] }
  0x8e   : > { %3832 = vmatmul.mubr.bf16.gmra.mrb[20].mxu1 %v4838_v4  ;;  %v4557_v10 = vld [vmem:[%s5260_s1 + $0x128] sm:$0xff]  }
  0x8f   : > { %4056 = vmatmul.mubr.bf16.gmra.mrb[4].mxu0 %v4975_v17  ;;  %3835 = vmatprep.mubr.bf16.mxu1 %v4851_v12 }
  0x90   : > { %4059 = vmatprep.mubr.bf16.mxu0 %v4977_v18  ;;  %4088 = vmatpush3.bf16.msra.mxu0 %v4525_v16  ;;  %v1931_v16 = vld [vmem:[#allocation2 + $0x142] sm:$0xff] }
  0x91   : > { %4089 = vmatprep.subr.bf16.mxu0 %v4527_v21 }
  0x94   : > { %4090 = vmatpush3.bf16.msra.mxu0 %v4527_v21  ;;  %v1932_v21 = vld [vmem:[#allocation2 + $0x152] sm:$0xff] }
  0x95   : > { %4091 = vmatprep.subr.bf16.mxu0 %v4529_v28  ;;  %v5051_v25 = vpack.c.bf16 %v1933_v22, %v1932_v21 }
  0x96   : > { %3836 = vmatmul.mubr.bf16.gmra.mrb[24].mxu1 %v4853_v13 }
  0x97   : > { %4060 = vmatmul.mubr.bf16.gmra.mrb[8].mxu0 %v4989_v31  ;;  %3839 = vmatprep.mubr.bf16.mxu1 %v4865_v19 }
  0x98   : > { %4063 = vmatprep.mubr.bf16.mxu0 %v4991_v3  ;;  %4092 = vmatpush3.bf16.msra.mxu0 %v4529_v28  ;;  %v1935_v28 = vld [vmem:[#allocation2 + $0x172] sm:$0xff] }
  0x99   : > { %4093 = vmatprep.subr.bf16.mxu0 %v4531_v37 }
  0x9c   : > { %4094 = vmatpush3.bf16.msra.mxu0 %v4531_v37  ;;  %v4540_v37 = vld [vmem:[%s5260_s1 + $0x70] sm:$0xff]  }
  0x9d   : > { %4095 = vmatprep.subr.bf16.mxu0 %v4533_v48 }
  0x9e   : > { %3840 = vmatmul.mubr.bf16.gmra.mrb[28].mxu1 %v4867_v20 }
  0x9f   : > { %4064 = vmatmul.mubr.bf16.gmra.mrb[12].mxu0 %v5003_v50  ;;  %3859 = vmatprep.mubr.bf16.mxu1 %v4723_v43  ;;  %v4530_v43 = vld [vmem:[%s5260_s1 + $0x48] sm:$0xff]  }
  0xa0   : > { %4067 = vmatprep.mubr.bf16.mxu0 %v5005_v52  ;;  %4096 = vmatpush3.bf16.msra.mxu0 %v4533_v48 }
  0xa1   : > { %4097 = vmatprep.subr.bf16.mxu0 %v4535_v56 }
  0xa4   : > { %4098 = vmatpush3.bf16.msra.mxu0 %v4535_v56  ;;  %v4550_v56 = vld [vmem:[%s4687_s11] sm:$0xff] }
  0xa5   : > { %4131 = vmatprep.subr.bf16.mxu0 %v5017_v61 }
  0xa6   : > { %3860 = vmatmul.mubr.bf16.vlgmr.msra.gmra.mrb[0].mxu1 %v4732_v49  ;;  %v5037_v49 = vpack.c.bf16 %v1929_v14, %v1928_v53  ;;  %v5192_v53 = vld [vmem:[%s5261_s2] ss:$0 sm:$0xff] }
  0xa7   : > { %4068 = vmatmul.mubr.bf16.gmra.mrb[16].mxu0 %v5019_v63  ;;  %3892 = vmatpush3.bf16.msra.mxu1 %v4957_v5  ;;  %v1930_v5 = vld [vmem:[#allocation2 + $0x13a] sm:$0xff] }
  0xa8   : > { %3863 = vmatprep.mubr.bf16.mxu1 %v4748_v62  ;;  %4071 = vmatprep.mubr.bf16.mxu0 %v5021_v1  ;;  %v4534_v62 = vld [vmem:[%s5260_s1 + $0x58] sm:$0xff]   ;;  %v5049_v24 = vpack.c.bf16 %v1931_v16, %v1930_v5 }
  0xa9   : > { %3893 = vmatprep.subr.bf16.mxu1 %v4530_v43 }
  0xab   : > { %3894 = vmatpush3.bf16.msra.mxu1 %v4530_v43  ;;  %v4556_v43 = vld [vmem:[%s5260_s1 + $0x120] sm:$0xff]  }
  0xac   : > { %3895 = vmatprep.subr.bf16.mxu1 %v4532_v11 }
  0xae   : > { %3864 = vmatmul.mubr.bf16.gmra.mrb[4].mxu1 %v4758_v8  ;;  %v4538_v8 = vld [vmem:[%s5260_s1 + $0x68] sm:$0xff]  }
  0xaf   : > { %4072 = vmatmul.mubr.bf16.gmra.mrb[20].mxu0 %v5035_v15  ;;  %3867 = vmatprep.mubr.bf16.mxu1 %v4780_v29  ;;  %v1934_v29 = vld [vmem:[#allocation2 + $0x16a] sm:$0xff] }
  0xb0   : > { %4075 = vmatprep.mubr.bf16.mxu0 %v5037_v49  ;;  %3896 = vmatpush3.bf16.msra.mxu1 %v4532_v11  ;;  %v5063_v39 = vpack.c.bf16 %v1935_v28, %v1934_v29 }
  0xb1   : > { %3897 = vmatprep.subr.bf16.mxu1 %v4534_v62 }
  0xb4   : > { %3898 = vmatpush3.bf16.msra.mxu1 %v4534_v62 }
  0xb5   : > { %3899 = vmatprep.subr.bf16.mxu1 %v4536_v23 }
  0xb6   : > { %3868 = vmatmul.mubr.bf16.gmra.mrb[8].mxu1 %v4789_v33  ;;  %v4542_v33 = vld [vmem:[%s5260_s1 + $0x78] sm:$0xff]  }
  0xb7   : > { %4076 = vmatmul.mubr.bf16.gmra.mrb[24].mxu0 %v5049_v24  ;;  %3871 = vmatprep.mubr.bf16.mxu1 %v4808_v51  ;;  %v4539_v51 = vld [vmem:[%s5260_s1 + $0x208] sm:$0xff]  }
  0xb8   : > { %4079 = vmatprep.mubr.bf16.mxu0 %v5051_v25  ;;  %3900 = vmatpush3.bf16.msra.mxu1 %v4536_v23 }
  0xb9   : > { %3901 = vmatprep.subr.bf16.mxu1 %v4538_v8 }
  0xbc   : > { %3902 = vmatpush3.bf16.msra.mxu1 %v4538_v8 }
  0xbd   : > { %3903 = vmatprep.subr.bf16.mxu1 %v4540_v37 }
  0xbe   : > { %3872 = vmatmul.mubr.bf16.gmra.mrb[12].mxu1 %v4816_v55  ;;  %v4541_v55 = vld [vmem:[%s5260_s1 + $0x210] sm:$0xff]  }
  0xbf   : > { %4080 = vmatmul.mubr.bf16.gmra.mrb[28].mxu0 %v5063_v39  ;;  %3875 = vmatprep.mubr.bf16.mxu1 %v4831_v0  ;;  %v4543_v0 = vld [vmem:[%s5260_s1 + $0x218] sm:$0xff]  }
  0xc0   : > { %4099 = vmatprep.mubr.bf16.mxu0 %v4959_v6  ;;  %3904 = vmatpush3.bf16.msra.mxu1 %v4540_v37  ;;  %v1077_v6 = vld [vmem:[#allocation2 + $0x9] sm:$0xff] }
  0xc1   : > { %3905 = vmatprep.subr.bf16.mxu1 %v4542_v33 }
  0xc4   : > { %3906 = vmatpush3.bf16.msra.mxu1 %v4542_v33 }
  0xc5   : > { %4179 = vmatprep.subr.bf16.mxu1 %v4548_v38 }
  0xc6   : > { %3876 = vmatmul.mubr.bf16.gmra.mrb[16].mxu1 %v4838_v4  ;;  %v4544_v4 = vld [vmem:[%s5260_s1 + $0x220] sm:$0xff]  }
  0xc7   : > { %4100 = vmatmul.mubr.bf16.vlgmr.msra.gmra.mrb[0].mxu0 %v4961_v7  ;;  %3879 = vmatprep.mubr.bf16.mxu1 %v4851_v12  ;;  %v4545_v12 = vld [vmem:[%s5260_s1 + $0x228] sm:$0xff]  }
  0xc8   : > { %4132 = vmatpush3.bf16.msra.mxu0 %v5017_v61  ;;  %4103 = vmatprep.mubr.bf16.mxu0 %v4975_v17  ;;  %v4555_v61 = vld [vmem:[%s5260_s1 + $0x118] sm:$0xff]  }
  0xc9   : > { %4133 = vmatprep.subr.bf16.mxu0 %v4539_v51 }
  0xcc   : > { %4134 = vmatpush3.bf16.msra.mxu0 %v4539_v51 }
  0xcd   : > { %4135 = vmatprep.subr.bf16.mxu0 %v4541_v55 }
  0xce   : > { %3880 = vmatmul.mubr.bf16.gmra.mrb[20].mxu1 %v4853_v13  ;;  %v347_v13 = vld [vmem:[#allocation2 + $0x198] sm:$0xff] }
  0xcf   : > { %4104 = vmatmul.mubr.bf16.gmra.mrb[4].mxu0 %v4977_v18  ;;  %3883 = vmatprep.mubr.bf16.mxu1 %v4865_v19  ;;  %v1076_v19 = vld [vmem:[#allocation2 + $0x1] sm:$0xff]  ;;  %v817_v48 = vpack.c.bf16 %v4549_v47, %v347_v13 }
  0xd0   : > { %4107 = vmatprep.mubr.bf16.mxu0 %v4989_v31  ;;  %4136 = vmatpush3.bf16.msra.mxu0 %v4541_v55 }
  0xd1   : > { %4137 = vmatprep.subr.bf16.mxu0 %v4543_v0 }
  0xd4   : > { %4138 = vmatpush3.bf16.msra.mxu0 %v4543_v0 }
  0xd5   : > { %4139 = vmatprep.subr.bf16.mxu0 %v4544_v4 }
  0xd6   : > { %3884 = vmatmul.mubr.bf16.gmra.mrb[24].mxu1 %v4867_v20  ;;  %v1112_v20 = vpack.c.bf16 %v1077_v6, %v1076_v19 }
  0xd7   : > { %4108 = vmatmul.mubr.bf16.gmra.mrb[8].mxu0 %v4991_v3  ;;  %3887 = vmatprep.mubr.bf16.mxu1 %v4879_v26  ;;  %v4547_v26 = vld [vmem:[%s5260_s1 + $0x238] sm:$0xff]  }
  0xd8   : > { %4111 = vmatprep.mubr.bf16.mxu0 %v5003_v50  ;;  %4140 = vmatpush3.bf16.msra.mxu0 %v4544_v4 }
  0xd9   : > { %4141 = vmatprep.subr.bf16.mxu0 %v4545_v12 }
  0xdc   : > { %4142 = vmatpush3.bf16.msra.mxu0 %v4545_v12 }
  0xdd   : > { %4143 = vmatprep.subr.bf16.mxu0 %v4546_v42 }
  0xde   : > { %3888 = vmatmul.mubr.bf16.gmra.mrb[28].mxu1 %v817_v48 }
  0xdf   : > { %4112 = vmatmul.mubr.bf16.gmra.mrb[12].mxu0 %v5005_v52  ;;  %3907 = vmatprep.mubr.bf16.mxu1 %v1112_v20 }
  0xe0   : > { %4115 = vmatprep.mubr.bf16.mxu0 %v5019_v63  ;;  %4144 = vmatpush3.bf16.msra.mxu0 %v4546_v42 }
  0xe1   : > { %4145 = vmatprep.subr.bf16.mxu0 %v4547_v26 }
  0xe4   : > { %4146 = vmatpush3.bf16.msra.mxu0 %v4547_v26 }
  0xe6   : > { %3908 = vmatmul.mubr.bf16.vlgmr.msra.gmra.mrb[0].mxu1 %v4550_v56 }
  0xe7   : > { %4116 = vmatmul.mubr.bf16.gmra.mrb[16].mxu0 %v5021_v1  ;;  %4187 = vmatpush3.bf16.msra.mxu1 %v4548_v38 }
  0xe8   : > { %3911 = vmatprep.mubr.bf16.mxu1 %v4551_v57  ;;  %4119 = vmatprep.mubr.bf16.mxu0 %v5035_v15 }
  0xe9   : > { %4180 = vmatprep.subr.bf16.mxu1 %v4552_v58 }
  0xeb   : > { %4188 = vmatpush3.bf16.msra.mxu1 %v4552_v58 }
  0xec   : > { %4181 = vmatprep.subr.bf16.mxu1 %v4553_v59 }
  0xee   : > { %3912 = vmatmul.mubr.bf16.gmra.mrb[4].mxu1 %v4554_v60 }
  0xef   : > { %4120 = vmatmul.mubr.bf16.gmra.mrb[20].mxu0 %v5037_v49  ;;  %3915 = vmatprep.mubr.bf16.mxu1 %v4756_v2  ;;  %v1936_v2 = vld [vmem:[#allocation2 + $0x182] sm:$0xff] }
  0xf0   : > { %4123 = vmatprep.mubr.bf16.mxu0 %v5049_v24  ;;  %4189 = vmatpush3.bf16.msra.mxu1 %v4553_v59  ;;  %v2214_v11 = vpack.c.bf16 %v1937_v46, %v1936_v2 }
  0xf1   : > { %4182 = vmatprep.subr.bf16.mxu1 %v4555_v61 }
  0xf4   : > { %4190 = vmatpush3.bf16.msra.mxu1 %v4555_v61 }
  0xf5   : > { %4183 = vmatprep.subr.bf16.mxu1 %v4556_v43 }
  0xf6   : > { %3916 = vmatmul.mubr.bf16.gmra.mrb[8].mxu1 %v4761_v9  ;;  %v4558_v9 = vld [vmem:[%s5260_s1 + $0x130] sm:$0xff]  }
  0xf7   : > { %4124 = vmatmul.mubr.bf16.gmra.mrb[24].mxu0 %v5051_v25  ;;  %3919 = vmatprep.mubr.bf16.mxu1 %v4787_v32  ;;  %v4559_v32 = vld [vmem:[%s5260_s1 + $0x138] sm:$0xff]  }
  0xf8   : > { %4127 = vmatprep.mubr.bf16.mxu0 %v5063_v39  ;;  %4191 = vmatpush3.bf16.msra.mxu1 %v4556_v43 }
  0xf9   : > { %4184 = vmatprep.subr.bf16.mxu1 %v4557_v10 }
  0xfc   : > { %4192 = vmatpush3.bf16.msra.mxu1 %v4557_v10 }
  0xfd   : > { %4185 = vmatprep.subr.bf16.mxu1 %v4558_v9 }
  0xfe   : > { %3920 = vmatmul.mubr.bf16.gmra.mrb[12].mxu1 %v4792_v36  ;;  %v1938_v36 = vld [vmem:[#allocation2 + $0x19a] sm:$0xff] }
  0xff   : > { %4128 = vmatmul.mubr.bf16.gmra.mrb[28].mxu0 %v2214_v11  ;;  %3923 = vmatprep.mubr.bf16.mxu1 %v4814_v54  ;;  %v1939_v54 = vld [vmem:[#allocation2 + $0x1a2] sm:$0xff] }
 0x100   : > { %4147 = vmatprep.mubr.bf16.mxu0 %v4961_v7  ;;  %4193 = vmatpush3.bf16.msra.mxu1 %v4558_v9 }
 0x101   : > { %4186 = vmatprep.subr.bf16.mxu1 %v4559_v32 }
 0x104   : > { %4194 = vmatpush3.bf16.msra.mxu1 %v4559_v32 }
 0x106   : > { %3924 = vmatmul.mubr.bf16.gmra.mrb[16].mxu1 %v4882_v27 }
 0x107   : > { %4148 = vmatmul.mubr.bf16.vlgmr.msra.gmra.mrb[0].mxu0 %v4975_v17  ;;  %3927 = vmatprep.mubr.bf16.mxu1 %v4886_v30 }
 0x108   : > { %4151 = vmatprep.mubr.bf16.mxu0 %v4977_v18 }
 0x10e   : > { %3928 = vmatmul.mubr.bf16.gmra.mrb[20].mxu1 %v4900_v34 }
 0x10f   : > { %4152 = vmatmul.mubr.bf16.gmra.mrb[4].mxu0 %v4989_v31  ;;  %3931 = vmatprep.mubr.bf16.mxu1 %v4903_v35 }
 0x110   : > { %4155 = vmatprep.mubr.bf16.mxu0 %v4991_v3 }
 0x116   : > { %3932 = vmatmul.mubr.bf16.gmra.mrb[24].mxu1 %v4918_v40 }
 0x117   : > { %4156 = vmatmul.mubr.bf16.gmra.mrb[8].mxu0 %v5003_v50  ;;  %3935 = vmatprep.mubr.bf16.mxu1 %v4921_v41 }
 0x118   : > { %4159 = vmatprep.mubr.bf16.mxu0 %v5005_v52 }
 0x11e   : > { %3936 = vmatmul.mubr.bf16.gmra.mrb[28].mxu1 %v4934_v44 }
 0x11f   : > { %4160 = vmatmul.mubr.bf16.gmra.mrb[12].mxu0 %v5019_v63  ;;  %3971 = vmatprep.mubr.bf16.mxu1 %v4882_v27  ;;  %v2473_v27 = vpack.c.bf16 %v1939_v54, %v1938_v36 }
 0x120   : > { %4163 = vmatprep.mubr.bf16.mxu0 %v5021_v1 }
 0x126   : > { %3972 = vmatmul.mubr.bf16.vlgmr.msra.gmra.mrb[16].mxu1 %v4886_v30 }
 0x127   : > { %4164 = vmatmul.mubr.bf16.gmra.mrb[16].mxu0 %v5035_v15  ;;  %3975 = vmatprep.mubr.bf16.mxu1 %v4900_v34 }
 0x128   : > { %4167 = vmatprep.mubr.bf16.mxu0 %v5037_v49 }
 0x12e   : > { %3976 = vmatmul.mubr.bf16.gmra.mrb[20].mxu1 %v4903_v35 }
 0x12f   : > { %4168 = vmatmul.mubr.bf16.gmra.mrb[20].mxu0 %v5049_v24  ;;  %3979 = vmatprep.mubr.bf16.mxu1 %v4918_v40 }
 0x130   : > { %4171 = vmatprep.mubr.bf16.mxu0 %v5051_v25 }
 0x136   : > { %3980 = vmatmul.mubr.bf16.gmra.mrb[24].mxu1 %v4921_v41 }
 0x137   : > { %4172 = vmatmul.mubr.bf16.gmra.mrb[24].mxu0 %v5063_v39  ;;  %3983 = vmatprep.mubr.bf16.mxu1 %v4934_v44 }
 0x138   : > { %4175 = vmatprep.mubr.bf16.mxu0 %v2214_v11 }
 0x13e   : > { %3984 = vmatmul.mubr.bf16.gmra.mrb[28].mxu1 %v4937_v45 }
 0x13f   : > { %4176 = vmatmul.mubr.bf16.gmra.mrb[28].mxu0 %v2473_v27 }
 0x1b9   : > { %v3909_v30 = vpop.f32.mrb[0].mxu1 }
 0x1ba   : > { %v1227_v34 = vpop.f32.mrb[1].mxu1 }
 0x1bb   : > { %v3910_v35 = vpop.f32.mrb[2].mxu1 }
 0x1bc   : > { %v1230_v7 = vpop.f32.mrb[3].mxu1 }
 0x1c1   : > { %v3913_v40 = vpop.f32.mrb[4].mxu1 }
 0x1c2   : > { %v1243_v17 = vpop.f32.mrb[5].mxu1 }
 0x1c3   : > { %v3914_v18 = vpop.f32.mrb[6].mxu1 }
 0x1c4   : > { %v1246_v31 = vpop.f32.mrb[7].mxu1 }
 0x1c9   : > { %v3917_v41 = vpop.f32.mrb[8].mxu1 }
 0x1ca   : > { %v5175_v3 = vpop.f32.mrb[9].mxu1 }
 0x1cb   : > { %v5177_v50 = vpop.f32.mrb[10].mxu1 }
 0x1cc   : > { %v5179_v44 = vpop.f32.mrb[11].mxu1 }
 0x1d1   : > { %v5181_v52 = vpop.f32.mrb[12].mxu1 }
 0x1d2   : > { %v5183_v63 = vpop.f32.mrb[13].mxu1 }
 0x1d3   : > { %v5185_v45 = vpop.f32.mrb[14].mxu1 }
 0x1d4   : > { %v5187_v1 = vpop.f32.mrb[15].mxu1 }
 0x1da   : > { %v4149_v14 = vpop.f32.mrb[0].mxu0 }
 0x1db   : > { %v4195_v15 = vadd.f32 %v4149_v14, %v3909_v30  ;;  %v2573_v49 = vpop.f32.mrb[1].mxu0 }
 0x1dc   : > { %v4196_v62 = vadd.f32 %v2573_v49, %v1227_v34  ;;  %v4150_v5 = vpop.f32.mrb[2].mxu0 }
 0x1dd   : > { %v2738_v16 = vadd.f32 %v4195_v15, %v5192_v53  ;;  %v4197_v21 = vadd.f32 %v4150_v5, %v3910_v35  ;;  %v2576_v22 = vpop.f32.mrb[3].mxu0 }
 0x1de   : > { %v2736_v23 = vadd.f32 %v4196_v62, %v5192_v53  ;;  %v4198_v24 = vadd.f32 %v2576_v22, %v1230_v7 }
 0x1df   : > { %v2802_v25 = vmul.f32 0.01, %v2738_v16  ;;  %v2739_v8 = vadd.f32 %v4197_v21, %v5192_v53  ;;  %vm2770_vm0 = vcmp.ge.f32.partialorder %v2738_v16, 0.0 }
 0x1e0   : > { %v2800_v29 = vmul.f32 0.01, %v2736_v23  ;;  %v2737_v28 = vadd.f32 %v4198_v24, %v5192_v53  ;;  %vm2768_vm1 = vcmp.ge.f32.partialorder %v2736_v23, 0.0 }
 0x1e1   : > { %vm2771_vm2 = vcmp.ge.f32.partialorder %v2739_v8, 0.0  ;;  %v2803_v37 = vmul.f32 0.01, %v2739_v8  ;;  %v2834_v51 = vsel %vm2770_vm0, %v2738_v16, %v2802_v25 }
 0x1e2   : > { %vm2769_vm3 = vcmp.ge.f32.partialorder %v2737_v28, 0.0  ;;  %v2801_v39 = vmul.f32 0.01, %v2737_v28  ;;  %v4153_v33 = vpop.f32.mrb[4].mxu0  ;;  %v2832_v4 = vsel %vm2768_vm1, %v2736_v23, %v2800_v29 }
 0x1e3   : > { %v2835_v38 = vsel %vm2771_vm2, %v2739_v8, %v2803_v37  ;;  %v4199_v55 = vadd.f32 %v4153_v33, %v3913_v40  ;;  %v2589_v0 = vpop.f32.mrb[5].mxu0 }
 0x1e4   : > { %v3429_v12 = vpack.c.bf16 %v2835_v38, %v2834_v51  ;;  %v2833_v13 = vsel %vm2769_vm3, %v2737_v28, %v2801_v39  ;;  %v4200_v19 = vadd.f32 %v2589_v0, %v1243_v17  ;;  %v4154_v6 = vpop.f32.mrb[6].mxu0 }
 0x1e5   : > { %v3424_v42 = vpack.c.bf16 %v2833_v13, %v2832_v4  ;;  %v2742_v47 = vadd.f32 %v4199_v55, %v5192_v53  ;;  %v4201_v48 = vadd.f32 %v4154_v6, %v3914_v18  ;;  %v2592_v20 = vpop.f32.mrb[7].mxu0 }
 0x1e6   : > { %3516 = vst [vmem:[%s5203_s19 + $0x8] sm:$0xff] %v3429_v12   ;;  %v2740_v26 = vadd.f32 %v4200_v19, %v5192_v53  ;;  %v4202_v56 = vadd.f32 %v2592_v20, %v1246_v31 }
 0x1e7   : > { %3425 = vst [vmem:[%s5203_s19] sm:$0xff] %v3424_v42   ;;  %v2806_v57 = vmul.f32 0.01, %v2742_v47  ;;  %v2743_v58 = vadd.f32 %v4201_v48, %v5192_v53  ;;  %vm2774_vm4 = vcmp.ge.f32.partialorder %v2742_v47, 0.0 }
 0x1e8   : > { %v2804_v59 = vmul.f32 0.01, %v2740_v26  ;;  %v2741_v60 = vadd.f32 %v4202_v56, %v5192_v53  ;;  %vm2772_vm5 = vcmp.ge.f32.partialorder %v2740_v26, 0.0 }
 0x1e9   : > { %vm2775_vm6 = vcmp.ge.f32.partialorder %v2743_v58, 0.0  ;;  %v2807_v61 = vmul.f32 0.01, %v2743_v58  ;;  %v2838_v46 = vsel %vm2774_vm4, %v2742_v47, %v2806_v57 }
 0x1ea   : > { %vm2773_vm7 = vcmp.ge.f32.partialorder %v2741_v60, 0.0  ;;  %v2805_v43 = vmul.f32 0.01, %v2741_v60  ;;  %v4157_v2 = vpop.f32.mrb[8].mxu0  ;;  %v2836_v32 = vsel %vm2772_vm5, %v2740_v26, %v2804_v59 }
 0x1eb   : > { %v2839_v10 = vsel %vm2775_vm6, %v2743_v58, %v2807_v61  ;;  %v4203_v11 = vadd.f32 %v4157_v2, %v3917_v41  ;;  %v2605_v9 = vpop.f32.mrb[9].mxu0 }
 0x1ec   : > { %v3439_v36 = vpack.c.bf16 %v2839_v10, %v2838_v46  ;;  %v2837_v54 = vsel %vm2773_vm7, %v2741_v60, %v2805_v43  ;;  %v4204_v27 = vadd.f32 %v2605_v9, %v5175_v3  ;;  %v4158_v30 = vpop.f32.mrb[10].mxu0 }
 0x1ed   : > { %v3434_v34 = vpack.c.bf16 %v2837_v54, %v2836_v32  ;;  %v2746_v35 = vadd.f32 %v4203_v11, %v5192_v53  ;;  %v4205_v7 = vadd.f32 %v4158_v30, %v5177_v50  ;;  %v2608_v40 = vpop.f32.mrb[11].mxu0 }
 0x1ee   : > { %3518 = vst [vmem:[%s5203_s19 + $0x18] sm:$0xff] %v3439_v36   ;;  %v2744_v17 = vadd.f32 %v4204_v27, %v5192_v53  ;;  %v4206_v18 = vadd.f32 %v2608_v40, %v5179_v44 }
 0x1ef   : > { %3517 = vst [vmem:[%s5203_s19 + $0x10] sm:$0xff] %v3434_v34   ;;  %v2810_v31 = vmul.f32 0.01, %v2746_v35  ;;  %v2747_v41 = vadd.f32 %v4205_v7, %v5192_v53  ;;  %vm2778_vm8 = vcmp.ge.f32.partialorder %v2746_v35, 0.0 }
 0x1f0   : > { %v2808_v14 = vmul.f32 0.01, %v2744_v17  ;;  %v2745_v3 = vadd.f32 %v4206_v18, %v5192_v53  ;;  %vm2776_vm9 = vcmp.ge.f32.partialorder %v2744_v17, 0.0 }
 0x1f1   : > { %vm2779_vm10 = vcmp.ge.f32.partialorder %v2747_v41, 0.0  ;;  %v2811_v15 = vmul.f32 0.01, %v2747_v41  ;;  %v2842_v62 = vsel %vm2778_vm8, %v2746_v35, %v2810_v31 }
 0x1f2   : > { %vm2777_vm11 = vcmp.ge.f32.partialorder %v2745_v3, 0.0  ;;  %v2809_v50 = vmul.f32 0.01, %v2745_v3  ;;  %v4161_v49 = vpop.f32.mrb[12].mxu0  ;;  %v2840_v21 = vsel %vm2776_vm9, %v2744_v17, %v2808_v14 }
 0x1f3   : > { %v2843_v5 = vsel %vm2779_vm10, %v2747_v41, %v2811_v15  ;;  %v4207_v44 = vadd.f32 %v4161_v49, %v5181_v52  ;;  %v2621_v16 = vpop.f32.mrb[13].mxu0 }
 0x1f4   : > { %v3449_v22 = vpack.c.bf16 %v2843_v5, %v2842_v62  ;;  %v2841_v23 = vsel %vm2777_vm11, %v2745_v3, %v2809_v50  ;;  %v4208_v24 = vadd.f32 %v2621_v16, %v5183_v63  ;;  %v4162_v25 = vpop.f32.mrb[14].mxu0 }
 0x1f5   : > { %v3444_v8 = vpack.c.bf16 %v2841_v23, %v2840_v21  ;;  %v2750_v29 = vadd.f32 %v4207_v44, %v5192_v53  ;;  %v4209_v28 = vadd.f32 %v4162_v25, %v5185_v45  ;;  %v2624_v37 = vpop.f32.mrb[15].mxu0 }
 0x1f6   : > { %3520 = vst [vmem:[%s5203_s19 + $0x28] sm:$0xff] %v3449_v22   ;;  %v2748_v39 = vadd.f32 %v4208_v24, %v5192_v53  ;;  %v4210_v33 = vadd.f32 %v2624_v37, %v5187_v1 }
 0x1f7   : > { %3519 = vst [vmem:[%s5203_s19 + $0x20] sm:$0xff] %v3444_v8   ;;  %v2814_v52 = vmul.f32 0.01, %v2750_v29  ;;  %v2751_v51 = vadd.f32 %v4209_v28, %v5192_v53  ;;  %vm2782_vm12 = vcmp.ge.f32.partialorder %v2750_v29, 0.0 }
 0x1f8   : > { %v2812_v38 = vmul.f32 0.01, %v2748_v39  ;;  %v2749_v63 = vadd.f32 %v4210_v33, %v5192_v53  ;;  %vm2780_vm13 = vcmp.ge.f32.partialorder %v2748_v39, 0.0 }
 0x1f9   : > { %vm2783_vm14 = vcmp.ge.f32.partialorder %v2751_v51, 0.0  ;;  %v2815_v55 = vmul.f32 0.01, %v2751_v51  ;;  %v3973_v0 = vpop.f32.mrb[16].mxu1  ;;  %v2846_v13 = vsel %vm2782_vm12, %v2750_v29, %v2814_v52 }
 0x1fa   : > { %vm2781_vm15 = vcmp.ge.f32.partialorder %v2749_v63, 0.0  ;;  %v2813_v45 = vmul.f32 0.01, %v2749_v63  ;;  %v4165_v4 = vpop.f32.mrb[16].mxu0  ;;  %v1550_v12 = vpop.f32.mrb[17].mxu1  ;;  %v2844_v47 = vsel %vm2780_vm13, %v2748_v39, %v2812_v38 }
 0x1fb   : > { %v2847_v19 = vsel %vm2783_vm14, %v2751_v51, %v2815_v55  ;;  %v4211_v1 = vadd.f32 %v4165_v4, %v3973_v0  ;;  %v2637_v6 = vpop.f32.mrb[17].mxu0  ;;  %v3974_v42 = vpop.f32.mrb[18].mxu1 }
 0x1fc   : > { %v3459_v48 = vpack.c.bf16 %v2847_v19, %v2846_v13  ;;  %v2845_v20 = vsel %vm2781_vm15, %v2749_v63, %v2813_v45  ;;  %v4212_v26 = vadd.f32 %v2637_v6, %v1550_v12  ;;  %v4166_v56 = vpop.f32.mrb[18].mxu0  ;;  %v1553_v57 = vpop.f32.mrb[19].mxu1 }
 0x1fd   : > { %v3454_v58 = vpack.c.bf16 %v2845_v20, %v2844_v47  ;;  %v2754_v59 = vadd.f32 %v4211_v1, %v5192_v53  ;;  %v4213_v60 = vadd.f32 %v4166_v56, %v3974_v42  ;;  %v2640_v61 = vpop.f32.mrb[19].mxu0 }
 0x1fe   : > { %3522 = vst [vmem:[%s5203_s19 + $0x38] sm:$0xff] %v3459_v48   ;;  %v2752_v43 = vadd.f32 %v4212_v26, %v5192_v53  ;;  %v4214_v2 = vadd.f32 %v2640_v61, %v1553_v57 }
 0x1ff   : > { %3521 = vst [vmem:[%s5203_s19 + $0x30] sm:$0xff] %v3454_v58   ;;  %v2818_v46 = vmul.f32 0.01, %v2754_v59  ;;  %v2755_v10 = vadd.f32 %v4213_v60, %v5192_v53  ;;  %vm2786_vm0 = vcmp.ge.f32.partialorder %v2754_v59, 0.0 }
 0x200   : > { %v2816_v11 = vmul.f32 0.01, %v2752_v43  ;;  %v2753_v9 = vadd.f32 %v4214_v2, %v5192_v53  ;;  %vm2784_vm1 = vcmp.ge.f32.partialorder %v2752_v43, 0.0 }
 0x201   : > { %vm2787_vm2 = vcmp.ge.f32.partialorder %v2755_v10, 0.0  ;;  %v2819_v32 = vmul.f32 0.01, %v2755_v10  ;;  %v3977_v36 = vpop.f32.mrb[20].mxu1  ;;  %v2850_v34 = vsel %vm2786_vm0, %v2754_v59, %v2818_v46 }
 0x202   : > { %vm2785_vm3 = vcmp.ge.f32.partialorder %v2753_v9, 0.0  ;;  %v2817_v54 = vmul.f32 0.01, %v2753_v9  ;;  %v4169_v27 = vpop.f32.mrb[20].mxu0  ;;  %v1566_v30 = vpop.f32.mrb[21].mxu1  ;;  %v2848_v18 = vsel %vm2784_vm1, %v2752_v43, %v2816_v11 }
 0x203   : > { %v2851_v35 = vsel %vm2787_vm2, %v2755_v10, %v2819_v32  ;;  %v4215_v7 = vadd.f32 %v4169_v27, %v3977_v36  ;;  %v2653_v40 = vpop.f32.mrb[21].mxu0  ;;  %v3978_v17 = vpop.f32.mrb[22].mxu1 }
 0x204   : > { %v3469_v31 = vpack.c.bf16 %v2851_v35, %v2850_v34  ;;  %v2849_v41 = vsel %vm2785_vm3, %v2753_v9, %v2817_v54  ;;  %v4216_v14 = vadd.f32 %v2653_v40, %v1566_v30  ;;  %v4170_v3 = vpop.f32.mrb[22].mxu0  ;;  %v1569_v15 = vpop.f32.mrb[23].mxu1 }
 0x205   : > { %v3464_v50 = vpack.c.bf16 %v2849_v41, %v2848_v18  ;;  %v2758_v49 = vadd.f32 %v4215_v7, %v5192_v53  ;;  %v4217_v62 = vadd.f32 %v4170_v3, %v3978_v17  ;;  %v2656_v5 = vpop.f32.mrb[23].mxu0 }
 0x206   : > { %3524 = vst [vmem:[%s5203_s19 + $0x48] sm:$0xff] %v3469_v31   ;;  %v2756_v44 = vadd.f32 %v4216_v14, %v5192_v53  ;;  %v4218_v16 = vadd.f32 %v2656_v5, %v1569_v15 }
 0x207   : > { %3523 = vst [vmem:[%s5203_s19 + $0x40] sm:$0xff] %v3464_v50   ;;  %v2822_v21 = vmul.f32 0.01, %v2758_v49  ;;  %v2759_v22 = vadd.f32 %v4217_v62, %v5192_v53  ;;  %vm2790_vm4 = vcmp.ge.f32.partialorder %v2758_v49, 0.0 }
 0x208   : > { %v2820_v23 = vmul.f32 0.01, %v2756_v44  ;;  %v2757_v24 = vadd.f32 %v4218_v16, %v5192_v53  ;;  %vm2788_vm5 = vcmp.ge.f32.partialorder %v2756_v44, 0.0 }
 0x209   : > { %vm2791_vm6 = vcmp.ge.f32.partialorder %v2759_v22, 0.0  ;;  %v2823_v25 = vmul.f32 0.01, %v2759_v22  ;;  %v3981_v8 = vpop.f32.mrb[24].mxu1  ;;  %v2854_v39 = vsel %vm2790_vm4, %v2758_v49, %v2822_v21 }
 0x20a   : > { %vm2789_vm7 = vcmp.ge.f32.partialorder %v2757_v24, 0.0  ;;  %v2821_v29 = vmul.f32 0.01, %v2757_v24  ;;  %v4173_v28 = vpop.f32.mrb[24].mxu0  ;;  %v1582_v37 = vpop.f32.mrb[25].mxu1  ;;  %v2852_v63 = vsel %vm2788_vm5, %v2756_v44, %v2820_v23 }
 0x20b   : > { %v2855_v33 = vsel %vm2791_vm6, %v2759_v22, %v2823_v25  ;;  %v4219_v52 = vadd.f32 %v4173_v28, %v3981_v8  ;;  %v2669_v51 = vpop.f32.mrb[25].mxu0  ;;  %v3982_v38 = vpop.f32.mrb[26].mxu1 }
 0x20c   : > { %v3479_v55 = vpack.c.bf16 %v2855_v33, %v2854_v39  ;;  %v2853_v0 = vsel %vm2789_vm7, %v2757_v24, %v2821_v29  ;;  %v4220_v45 = vadd.f32 %v2669_v51, %v1582_v37  ;;  %v4174_v4 = vpop.f32.mrb[26].mxu0  ;;  %v1585_v12 = vpop.f32.mrb[27].mxu1 }
 0x20d   : > { %v3474_v13 = vpack.c.bf16 %v2853_v0, %v2852_v63  ;;  %v2762_v19 = vadd.f32 %v4219_v52, %v5192_v53  ;;  %v4221_v1 = vadd.f32 %v4174_v4, %v3982_v38  ;;  %v2672_v6 = vpop.f32.mrb[27].mxu0 }
 0x20e   : > { %3526 = vst [vmem:[%s5203_s19 + $0x58] sm:$0xff] %v3479_v55   ;;  %v2760_v42 = vadd.f32 %v4220_v45, %v5192_v53  ;;  %v4222_v47 = vadd.f32 %v2672_v6, %v1585_v12 }
 0x20f   : > { %3525 = vst [vmem:[%s5203_s19 + $0x50] sm:$0xff] %v3474_v13   ;;  %v2826_v48 = vmul.f32 0.01, %v2762_v19  ;;  %v2763_v20 = vadd.f32 %v4221_v1, %v5192_v53  ;;  %vm2794_vm8 = vcmp.ge.f32.partialorder %v2762_v19, 0.0 }
 0x210   : > { %v2824_v26 = vmul.f32 0.01, %v2760_v42  ;;  %v2761_v56 = vadd.f32 %v4222_v47, %v5192_v53  ;;  %vm2792_vm9 = vcmp.ge.f32.partialorder %v2760_v42, 0.0 }
 0x211   : > { %vm2795_vm10 = vcmp.ge.f32.partialorder %v2763_v20, 0.0  ;;  %v2827_v57 = vmul.f32 0.01, %v2763_v20  ;;  %v3985_v58 = vpop.f32.mrb[28].mxu1  ;;  %v2858_v43 = vsel %vm2794_vm8, %v2762_v19, %v2826_v48 }
 0x212   : > { %vm2793_vm11 = vcmp.ge.f32.partialorder %v2761_v56, 0.0  ;;  %v2825_v59 = vmul.f32 0.01, %v2761_v56  ;;  %v4177_v60 = vpop.f32.mrb[28].mxu0  ;;  %v1598_v61 = vpop.f32.mrb[29].mxu1  ;;  %v2856_v9 = vsel %vm2792_vm9, %v2760_v42, %v2824_v26 }
 0x213   : > { %v2859_v2 = vsel %vm2795_vm10, %v2763_v20, %v2827_v57  ;;  %v4223_v46 = vadd.f32 %v4177_v60, %v3985_v58  ;;  %v2685_v10 = vpop.f32.mrb[29].mxu0  ;;  %v3986_v11 = vpop.f32.mrb[30].mxu1 }
 0x214   : > { %v3489_v32 = vpack.c.bf16 %v2859_v2, %v2858_v43  ;;  %v2857_v36 = vsel %vm2793_vm11, %v2761_v56, %v2825_v59  ;;  %v4224_v54 = vadd.f32 %v2685_v10, %v1598_v61  ;;  %v4178_v27 = vpop.f32.mrb[30].mxu0  ;;  %v1601_v30 = vpop.f32.mrb[31].mxu1 }
 0x215   : > { %v3484_v34 = vpack.c.bf16 %v2857_v36, %v2856_v9  ;;  %v2766_v35 = vadd.f32 %v4223_v46, %v5192_v53  ;;  %v4225_v7 = vadd.f32 %v4178_v27, %v3986_v11  ;;  %v2688_v40 = vpop.f32.mrb[31].mxu0 }
 0x216   : > { %3528 = vst [vmem:[%s5203_s19 + $0x68] sm:$0xff] %v3489_v32   ;;  %v2764_v17 = vadd.f32 %v4224_v54, %v5192_v53  ;;  %v4226_v18 = vadd.f32 %v2688_v40, %v1601_v30 }
 0x217   : > { %3527 = vst [vmem:[%s5203_s19 + $0x60] sm:$0xff] %v3484_v34   ;;  %v2830_v31 = vmul.f32 0.01, %v2766_v35  ;;  %v2767_v41 = vadd.f32 %v4225_v7, %v5192_v53  ;;  %vm2798_vm12 = vcmp.ge.f32.partialorder %v2766_v35, 0.0 }
 0x218   : > { %v2828_v14 = vmul.f32 0.01, %v2764_v17  ;;  %v2765_v3 = vadd.f32 %v4226_v18, %v5192_v53  ;;  %vm2796_vm13 = vcmp.ge.f32.partialorder %v2764_v17, 0.0 }
 0x219   : > { %vm2799_vm14 = vcmp.ge.f32.partialorder %v2767_v41, 0.0  ;;  %v2831_v15 = vmul.f32 0.01, %v2767_v41  ;;  %v2862_v49 = vsel %vm2798_vm12, %v2766_v35, %v2830_v31 }
 0x21a   : > { %vm2797_vm15 = vcmp.ge.f32.partialorder %v2765_v3, 0.0  ;;  %v2829_v50 = vmul.f32 0.01, %v2765_v3  ;;  %v2860_v5 = vsel %vm2796_vm13, %v2764_v17, %v2828_v14 }
 0x21b   : > { %v2863_v62 = vsel %vm2799_vm14, %v2767_v41, %v2831_v15 }
 0x21c   : > { %v3499_v44 = vpack.c.bf16 %v2863_v62, %v2862_v49  ;;  %v2861_v16 = vsel %vm2797_vm15, %v2765_v3, %v2829_v50 }
 0x21d   : > { %v3494_v21 = vpack.c.bf16 %v2861_v16, %v2860_v5 }
 0x21e   : > { %3530 = vst [vmem:[%s5203_s19 + $0x78] sm:$0xff] %v3499_v44  }
 0x21f   : > { %3529 = vst [vmem:[%s5203_s19 + $0x70] sm:$0xff] %v3494_v21  }
 0x220 PF: > { %s13_s12 = sadd.s32 1, %s4566_s12  }
 0x221   : > { %p10_p4 = scmp.ge.s32.totalorder %s13_s12, 4  }
 0x223   :  { %12 = sbr.rel (!%p10_p4) target bundleno = 1 (0x1), region = 72 }

</bundles_post_ra>
